<compile_context>
chip_gen: v7x
topology: tpu7x:2x2x1
jax: 0.10.0
libtpu: 0.0.40
codegen_flags: <defaults>
</compile_context>

<pallas_src>
import math

import jax
import jax.numpy as jnp
from jax.experimental import pallas as pl
from jax.experimental.pallas import tpu as pltpu


def _prelu(x, a=0.25):
    # nn.PReLU default init (single slope 0.25)
    return jnp.where(x >= 0, x, a * x)


# ----------------------------- fused kernel -----------------------------

def dien_fused_kernel(len_ref, q_ref, keys_ref, neg_ref,
                      w_rec_ref, b_rec_ref, w_att1_ref, at_w2_ref,
                      w_aux1_ref, ax_w2_ref, small_ref,
                      out_ref, loss_ref,
                      int_ref, gi_ref, gx_ref, sc_ref):
    T, B, D = keys_ref.shape                                   # time-major block
    H = D
    f32, bf16 = jnp.float32, jnp.bfloat16

    lengths = len_ref[...]                                     # (B, 1) int32 — loaded once

    # ---- hoisted weight loads (read once; never re-read inside the loops) ----
    g_wih = w_rec_ref[0:D]                                     # (D, 3H) bf16
    g_whh = w_rec_ref[D:D + H]                                 # (H, 3H)
    au_wx = w_rec_ref[D + H:2 * D + H]                         # (D, 3H) = [w_xr|w_xz|w_xh]
    au_wh = w_rec_ref[2 * D + H:2 * D + 2 * H]                 # (H, 3H) = [w_hr|w_hz|w_hh]
    au_whrz = au_wh[:, :2 * H]
    au_whh = au_wh[:, 2 * H:]
    g_bih = b_rec_ref[0:1]                                     # (1, 3H) f32
    g_bhh = b_rec_ref[1:2]
    au_b = b_rec_ref[2:3]

    keys = keys_ref[...]                                       # (T, B, D) f32
    keys_b = keys.astype(bf16)

    # ---- 1) interest extractor (nn.GRU); pack/pad_packed semantics via masking ----
    # bulk input projection (one big MXU matmul), staged time-major in VMEM scratch
    gi_ref[...] = (jnp.dot(keys_b.reshape(T * B, D), g_wih,
                           preferred_element_type=f32) + g_bih).reshape(T, B, 3 * H)

    def gru_step(t, h):
        gi = gi_ref[t]                                          # dense (B, 3H) slab
        gh = jnp.dot(h.astype(bf16), g_whh, preferred_element_type=f32) + g_bhh
        r = jax.nn.sigmoid(gi[:, :H] + gh[:, :H])
        z = jax.nn.sigmoid(gi[:, H:2 * H] + gh[:, H:2 * H])
        n = jnp.tanh(gi[:, 2 * H:] + r * gh[:, 2 * H:])
        h_new = (1.0 - z) * n + z * h
        valid = t < lengths                                     # (B, 1)
        h = jnp.where(valid, h_new, h)                          # freeze finished sequences
        int_ref[t] = jnp.where(valid, h, 0.0)                   # pad_packed(padding_value=0.0)
        return h

    jax.lax.fori_loop(0, T, gru_step, jnp.zeros((B, H), f32), unroll=T <= 16)

    interests = int_ref[...]                                    # (T, B, D) f32
    interests_b = interests.astype(bf16)
    valid_col = (jax.lax.broadcasted_iota(jnp.int32, (T, B, 1), 0)
                 < lengths[None, :, :])                         # (T, B, 1)

    # ---- 2) DIN attention (layer-1 algebraically decomposed, masked softmax over T) ----
    q = q_ref[...]                                              # (B, D) f32
    at_b1 = small_ref[0:1, 0:16]
    at_b2 = small_ref[1:2, 0:8]
    at_w3 = small_ref[2:3, 0:8]
    at_b3 = small_ref[3:4, 0:1]
    w1_ac = w_att1_ref[0:D]                                     # W1_q + W1_(q-k)
    w1_bc = w_att1_ref[D:2 * D]                                 # W1_k - W1_(q-k)
    w1_d = w_att1_ref[2 * D:3 * D]                              # W1_(q*k)

    qW = jnp.dot(q.astype(bf16), w1_ac, preferred_element_type=f32)          # (B, 16), once
    iW = jnp.dot(interests_b.reshape(T * B, D), w1_bc,
                 preferred_element_type=f32).reshape(T, B, 16)
    pk = (q[None, :, :] * interests).astype(bf16)
    pW = jnp.dot(pk.reshape(T * B, D), w1_d,
                 preferred_element_type=f32).reshape(T, B, 16)
    a1 = _prelu(iW + pW + qW[None, :, :] + at_b1[None])
    a2 = _prelu(jnp.dot(a1.reshape(T * B, 16).astype(bf16), at_w2_ref[...],
                        preferred_element_type=f32) + at_b2)
    # final 8 -> 1 on the VPU (lane-sparse matmul wastes the MXU)
    logits = (jnp.sum(a2 * at_w3, axis=-1, keepdims=True) + at_b3).reshape(T, B, 1)
    logits = jnp.where(valid_col, logits, -1e30)
    m = jnp.max(logits, axis=0, keepdims=True)
    e = jnp.exp(logits - m)
    # approx reciprocal (EUP): scores sum to 1 within ~1e-4 rel of exact softmax
    sc_ref[...] = e * pl.reciprocal(jnp.sum(e, axis=0, keepdims=True), approx=True)

    # ---- 3) auxiliary loss (states projection shared between click / noclick paths) ----
    ax_b1 = small_ref[4:5, 0:64]
    ax_b2 = small_ref[5:6, 0:32]
    ax_w3 = small_ref[6:7, 0:32]
    ax_b3 = small_ref[7:8, 0:1]
    w1_s = w_aux1_ref[0:D]                                      # states rows of aux W1
    w1_i = w_aux1_ref[D:2 * D]                                  # item (click/noclick) rows
    ax_w2 = ax_w2_ref[...]

    Tm1 = T - 1
    states = interests_b[:Tm1].reshape(Tm1 * B, D)
    click = keys_b[1:].reshape(Tm1 * B, D)
    noclk = neg_ref[...][1:].astype(bf16).reshape(Tm1 * B, D)

    sW = jnp.dot(states, w1_s, preferred_element_type=f32)      # computed once, shared
    cW = jnp.dot(click, w1_i, preferred_element_type=f32)
    nW = jnp.dot(noclk, w1_i, preferred_element_type=f32)

    def aux_head(pre):
        x1 = jax.nn.sigmoid(pre + ax_b1)
        x2 = jax.nn.sigmoid(jnp.dot(x1.astype(bf16), ax_w2,
                                    preferred_element_type=f32) + ax_b2)
        return jax.nn.sigmoid(jnp.sum(x2 * ax_w3, axis=-1, keepdims=True) + ax_b3)

    p_click = aux_head(sW + cW).reshape(Tm1, B, 1)
    p_noclk = aux_head(sW + nW).reshape(Tm1, B, 1)
    amask = (jax.lax.broadcasted_iota(jnp.int32, (Tm1, B, 1), 0)
             < (lengths - 1)[None, :, :]).astype(f32)
    # F.binary_cross_entropy clamps log at -100
    l_sum = jnp.sum((-jnp.maximum(jnp.log(p_click), -100.0)
                     - jnp.maximum(jnp.log(1.0 - p_noclk), -100.0)) * amask)
    n_cnt = jnp.sum(amask)
    lane = jax.lax.broadcasted_iota(jnp.int32, (1, 128), 1)
    vec = jnp.where(lane == 0, l_sum, jnp.where(lane == 1, n_cnt, 0.0))
    loss_ref[...] = vec.reshape(1, 1, 128)                      # per-tile [sum_loss, count]

    # ---- 4) AUGRU interest evolution; output = hidden at position keys_length - 1 ----
    gx_ref[...] = (jnp.dot(interests_b.reshape(T * B, D), au_wx,
                           preferred_element_type=f32) + au_b).reshape(T, B, 3 * H)

    def augru_step(t, h):
        gx = gx_ref[t]                                          # (B, 3H) = [r|z|n] x-proj + bias
        hrz = jnp.dot(h.astype(bf16), au_whrz, preferred_element_type=f32)   # fused r|z h-matmul
        r = jax.nn.sigmoid(gx[:, :H] + hrz[:, :H])
        z = jax.nn.sigmoid(gx[:, H:2 * H] + hrz[:, H:])
        # matches PyTorch precedence: (r * hx) @ w_hh
        h_tilda = jnp.tanh(gx[:, 2 * H:] +
                           jnp.dot((r * h).astype(bf16), au_whh,
                                   preferred_element_type=f32))
        att = sc_ref[t]                                         # (B, 1) dense read
        zz = att * z
        hy = (1.0 - zz) * h + zz * h_tilda
        return jnp.where(t < lengths, hy, h)                    # frozen final h == output[len-1]

    hA = jax.lax.fori_loop(0, T, augru_step, jnp.zeros((B, H), f32), unroll=T <= 16)
    out_ref[...] = hA


# ----------------------------- wrapper (glue) -----------------------------

def interest_forward(params, query, keys, keys_length, neg_keys, *, b_tile=None):
    """query: (B, D); keys/neg_keys: (B, T, D); keys_length: (B,) int32.
    Returns (outputs (B, D), aux_loss scalar) — matches Interest(gru_type='AUGRU',
    use_negsampling=True).forward."""
    B, T, D = keys.shape
    H = D
    if b_tile is None:
        b_tile = B
        for cand in (256, 128, 64, 32, 16, 8):
            if B % cand == 0:
                b_tile = cand
                break
    assert B % b_tile == 0 and (b_tile == B or b_tile % 8 == 0)
    num_tiles = B // b_tile

    g, u, at, a = params["gru"], params["augru"], params["att"], params["aux"]
    bf16 = jnp.bfloat16

    # --- one-time weight packing / fusion (host side); bf16 MXU operands, fp32 biases ---
    au_wx = jnp.concatenate([u["w_xr"], u["w_xz"], u["w_xh"]], axis=1)      # (D, 3H)
    au_wh = jnp.concatenate([u["w_hr"], u["w_hz"], u["w_hh"]], axis=1)      # (H, 3H)
    w_rec = jnp.concatenate([g["w_ih"], g["w_hh"], au_wx, au_wh], axis=0).astype(bf16)
    au_b = jnp.concatenate([u["b_r"], u["b_z"], u["b_h"]], axis=1)          # (1, 3H)
    b_rec = jnp.concatenate([g["b_ih"], g["b_hh"], au_b], axis=0).astype(jnp.float32)

    w1 = at["w1"]                                                           # (4D, 16)
    w1a, w1b, w1c, w1d = w1[:D], w1[D:2 * D], w1[2 * D:3 * D], w1[3 * D:]
    w_att1 = jnp.concatenate([w1a + w1c, w1b - w1c, w1d], axis=0).astype(bf16)   # (3D, 16)
    at_w2 = at["w2"].astype(bf16)                                           # (16, 8)
    w_aux1 = a["w1"].astype(bf16)                                           # (2D, 64)
    ax_w2 = a["w2"].astype(bf16)                                            # (64, 32)

    def row64(v):
        v = v.reshape(1, -1).astype(jnp.float32)
        return jnp.pad(v, ((0, 0), (0, 64 - v.shape[1])))

    small_v = jnp.concatenate(
        [row64(at["b1"]), row64(at["b2"]), row64(at["w3"]), row64(at["b3"]),
         row64(a["b1"]), row64(a["b2"]), row64(a["w3"]), row64(a["b3"])], axis=0)   # (8, 64)

    # --- data prep: time-major feed so every in-kernel recurrence access is a dense slab ---
    keys_tm = jnp.transpose(keys.astype(jnp.float32), (1, 0, 2))            # (T, B, D)
    neg_tm = jnp.transpose(neg_keys.astype(jnp.float32), (1, 0, 2))
    len2d = keys_length.reshape(B, 1).astype(jnp.int32)
    q32 = query.astype(jnp.float32)

    def full(arr):
        nd = arr.ndim
        return pl.BlockSpec(arr.shape, lambda b, _nd=nd: (0,) * _nd)

    grid_spec = pltpu.PrefetchScalarGridSpec(
        num_scalar_prefetch=0,
        grid=(num_tiles,),
        in_specs=[
            pl.BlockSpec((b_tile, 1), lambda b: (b, 0)),                    # keys_length
            pl.BlockSpec((b_tile, D), lambda b: (b, 0)),                    # query
            pl.BlockSpec((T, b_tile, D), lambda b: (0, b, 0)),              # keys (time-major)
            pl.BlockSpec((T, b_tile, D), lambda b: (0, b, 0)),              # neg_keys
            full(w_rec), full(b_rec), full(w_att1), full(at_w2),
            full(w_aux1), full(ax_w2), full(small_v),
        ],
        out_specs=(
            pl.BlockSpec((b_tile, D), lambda b: (b, 0)),                    # outputs
            pl.BlockSpec((1, 1, 128), lambda b: (b, 0, 0)),                 # per-tile loss partials
        ),
        scratch_shapes=[
            pltpu.VMEM((T, b_tile, D), jnp.float32),        # interests (time-major)
            pltpu.VMEM((T, b_tile, 3 * H), jnp.float32),    # GRU input projections
            pltpu.VMEM((T, b_tile, 3 * H), jnp.float32),    # AUGRU input projections
            pltpu.VMEM((T, b_tile, 1), jnp.float32),        # attention scores
        ],
    )

    # explicit VMEM budget with headroom (keeps v7x's 64 MiB in bounds at production tiles)
    vmem_bytes = 4 * T * b_tile * (8 * D + 8 * H + 256) + (4 << 20)
    vmem_limit = int(min(100 << 20, max(32 << 20, vmem_bytes)))

    outputs, partial = pl.pallas_call(
        dien_fused_kernel,
        grid_spec=grid_spec,
        out_shape=(jax.ShapeDtypeStruct((B, D), jnp.float32),
                   jax.ShapeDtypeStruct((num_tiles, 1, 128), jnp.float32)),
        compiler_params=pltpu.CompilerParams(
            dimension_semantics=("parallel",),
            vmem_limit_bytes=vmem_limit),
    )(len2d, q32, keys_tm, neg_tm,
      w_rec, b_rec, w_att1, at_w2, w_aux1, ax_w2, small_v)

    # F.binary_cross_entropy(mean) over concatenated click/noclick terms, combined across tiles
    loss_sum = jnp.sum(partial[:, 0, 0])
    n_valid = jnp.sum(partial[:, 0, 1])
    aloss = loss_sum / (2.0 * jnp.maximum(n_valid, 1.0))       # guard n==0 -> avoid NaN
    return outputs, aloss


# ----------------------------- deterministic parameter init -----------------------------

def init_params(D, seed=0):
    rng = [jax.random.PRNGKey(seed)]

    def u(shape, scale):
        rng[0], sub = jax.random.split(rng[0])
        return jax.random.uniform(sub, shape, jnp.float32, -scale, scale)

    H = D
    s = 1.0 / math.sqrt(H)
    params = {}
    # nn.GRU(input_size=D, hidden_size=D): x@W layout, gate order [r, z, n]
    params["gru"] = dict(
        w_ih=u((D, 3 * H), s), w_hh=u((H, 3 * H), s),
        b_ih=u((1, 3 * H), s), b_hh=u((1, 3 * H), s),
    )
    # AttentionUpdateGateGRU(input_size=D, hidden_size=D)
    params["augru"] = dict(
        w_xr=u((D, H), s), w_hr=u((H, H), s), b_r=u((1, H), s),
        w_xz=u((D, H), s), w_hz=u((H, H), s), b_z=u((1, H), s),
        w_xh=u((D, H), s), w_hh=u((H, H), s), b_h=u((1, H), s),
    )
    # AuxiliaryNet(2D, [64, 32]): 2D -> 64 -> 32 -> 1, sigmoid everywhere
    params["aux"] = dict(
        w1=u((2 * D, 64), 1 / math.sqrt(2 * D)), b1=u((1, 64), 1 / math.sqrt(2 * D)),
        w2=u((64, 32), 1 / math.sqrt(64)), b2=u((1, 32), 1 / math.sqrt(64)),
        w3=u((32, 1), 1 / math.sqrt(32)), b3=u((1, 1), 1 / math.sqrt(32)),
    )
    # Attention MLP: 4D -> 16 -> 8 -> 1 (PReLU), masked softmax over T
    params["att"] = dict(
        w1=u((4 * D, 16), 1 / math.sqrt(4 * D)), b1=u((1, 16), 1 / math.sqrt(4 * D)),
        w2=u((16, 8), 1 / math.sqrt(16)), b2=u((1, 8), 1 / math.sqrt(16)),
        w3=u((8, 1), 1 / math.sqrt(8)), b3=u((1, 1), 1 / math.sqrt(8)),
    )
    return params


# ----------------------------- main -----------------------------

if __name__ == "__main__":
    B, T, D = 2, 8, 32  # batch, max_len, embed_size * num_pair
    key = jax.random.PRNGKey(0)
    kq, kk, kn = jax.random.split(key, 3)
    query = jax.random.normal(kq, (B, D), jnp.float32)
    keys = jax.random.normal(kk, (B, T, D), jnp.float32)
    neg_keys = jax.random.normal(kn, (B, T, D), jnp.float32)
    keys_length = jnp.array([T, 5], dtype=jnp.int32)

    params = init_params(D, seed=0)

    fwd = jax.jit(interest_forward)
    outputs, aloss = fwd(params, query, keys, keys_length, neg_keys)
    jax.block_until_ready((outputs, aloss))

    assert outputs.shape == (B, D)
    assert aloss.shape == ()
    assert bool(jnp.all(jnp.isfinite(outputs))) and bool(jnp.isfinite(aloss))
    print("KERNEL_OK")
</pallas_src>

<mosaic_0001>
module attributes {stable_mosaic.version = 11 : i64} {
  func.func @dien_fused_kernel(%arg0: i32, %arg1: memref<2x1xi32, #tpu.memory_space<vmem>>, %arg2: memref<2x32xf32, #tpu.memory_space<vmem>>, %arg3: memref<8x2x32xf32, #tpu.memory_space<vmem>>, %arg4: memref<8x2x32xf32, #tpu.memory_space<vmem>>, %arg5: memref<128x96xbf16, #tpu.memory_space<vmem>>, %arg6: memref<3x96xf32, #tpu.memory_space<vmem>>, %arg7: memref<96x16xbf16, #tpu.memory_space<vmem>>, %arg8: memref<16x8xbf16, #tpu.memory_space<vmem>>, %arg9: memref<64x64xbf16, #tpu.memory_space<vmem>>, %arg10: memref<64x32xbf16, #tpu.memory_space<vmem>>, %arg11: memref<8x64xf32, #tpu.memory_space<vmem>>, %arg12: memref<2x32xf32, #tpu.memory_space<vmem>>, %arg13: memref<1x1x128xf32, #tpu.memory_space<vmem>>, %arg14: memref<8x2x32xf32, #tpu.memory_space<vmem>>, %arg15: memref<8x2x96xf32, #tpu.memory_space<vmem>>, %arg16: memref<8x2x96xf32, #tpu.memory_space<vmem>>, %arg17: memref<8x2x1xf32, #tpu.memory_space<vmem>>) attributes {dimension_semantics = [#tpu.dimension_semantics<parallel>], iteration_bounds = array<i64: 1>, scalar_prefetch = 0 : i64, scratch_operands = 4 : i64, tpu.core_type = #tpu.core_type<tc>, window_params = [{transform_indices = @transform_0, window_bounds = array<i64: 2, 1>}, {transform_indices = @transform_1, window_bounds = array<i64: 2, 32>}, {transform_indices = @transform_2, window_bounds = array<i64: 8, 2, 32>}, {transform_indices = @transform_3, window_bounds = array<i64: 8, 2, 32>}, {pipeline_mode = #tpu.pipeline_mode<synchronous>, transform_indices = @transform_4, window_bounds = array<i64: 128, 96>}, {pipeline_mode = #tpu.pipeline_mode<synchronous>, transform_indices = @transform_5, window_bounds = array<i64: 3, 96>}, {pipeline_mode = #tpu.pipeline_mode<synchronous>, transform_indices = @transform_6, window_bounds = array<i64: 96, 16>}, {pipeline_mode = #tpu.pipeline_mode<synchronous>, transform_indices = @transform_7, window_bounds = array<i64: 16, 8>}, {pipeline_mode = #tpu.pipeline_mode<synchronous>, transform_indices = @transform_8, window_bounds = array<i64: 64, 64>}, {pipeline_mode = #tpu.pipeline_mode<synchronous>, transform_indices = @transform_9, window_bounds = array<i64: 64, 32>}, {pipeline_mode = #tpu.pipeline_mode<synchronous>, transform_indices = @transform_10, window_bounds = array<i64: 8, 64>}, {transform_indices = @transform_11, window_bounds = array<i64: 2, 32>}, {transform_indices = @transform_12, window_bounds = array<i64: 1, 1, 128>}]} {
    %c0 = arith.constant 0 : index
    %c0_0 = arith.constant 0 : index
    %0 = vector.load %arg1[%c0, %c0_0] : memref<2x1xi32, #tpu.memory_space<vmem>>, vector<2x1xi32>
    %c0_1 = arith.constant 0 : index
    %c0_2 = arith.constant 0 : index
    %1 = vector.load %arg5[%c0_1, %c0_2] : memref<128x96xbf16, #tpu.memory_space<vmem>>, vector<32x96xbf16>
    %c32 = arith.constant 32 : index
    %c0_3 = arith.constant 0 : index
    %2 = vector.load %arg5[%c32, %c0_3] : memref<128x96xbf16, #tpu.memory_space<vmem>>, vector<32x96xbf16>
    %c64 = arith.constant 64 : index
    %c0_4 = arith.constant 0 : index
    %3 = vector.load %arg5[%c64, %c0_4] : memref<128x96xbf16, #tpu.memory_space<vmem>>, vector<32x96xbf16>
    %c96 = arith.constant 96 : index
    %c0_5 = arith.constant 0 : index
    %4 = vector.load %arg5[%c96, %c0_5] : memref<128x96xbf16, #tpu.memory_space<vmem>>, vector<32x96xbf16>
    %5 = vector.extract_strided_slice %4 {offsets = [0, 0], sizes = [32, 64], strides = [1, 1]} : vector<32x96xbf16> to vector<32x64xbf16>
    %6 = vector.extract_strided_slice %4 {offsets = [0, 64], sizes = [32, 32], strides = [1, 1]} : vector<32x96xbf16> to vector<32x32xbf16>
    %c0_6 = arith.constant 0 : index
    %c0_7 = arith.constant 0 : index
    %7 = vector.load %arg6[%c0_6, %c0_7] : memref<3x96xf32, #tpu.memory_space<vmem>>, vector<1x96xf32>
    %c1 = arith.constant 1 : index
    %c0_8 = arith.constant 0 : index
    %8 = vector.load %arg6[%c1, %c0_8] : memref<3x96xf32, #tpu.memory_space<vmem>>, vector<1x96xf32>
    %c2 = arith.constant 2 : index
    %c0_9 = arith.constant 0 : index
    %9 = vector.load %arg6[%c2, %c0_9] : memref<3x96xf32, #tpu.memory_space<vmem>>, vector<1x96xf32>
    %c0_10 = arith.constant 0 : index
    %c0_11 = arith.constant 0 : index
    %c0_12 = arith.constant 0 : index
    %10 = vector.load %arg3[%c0_10, %c0_11, %c0_12] : memref<8x2x32xf32, #tpu.memory_space<vmem>>, vector<8x2x32xf32>
    %11 = arith.truncf %10 : vector<8x2x32xf32> to vector<8x2x32xbf16>
    %12 = vector.shape_cast %11 : vector<8x2x32xbf16> to vector<16x32xbf16>
    %cst = arith.constant dense<0.000000e+00> : vector<16x96xf32>
    %13 = tpu.matmul %12, %1, %cst {dimension_numbers = #tpu.dot_dimension_numbers<[1], [0], [0], [1], [0, 0, 1, 1], [], []>} : vector<16x32xbf16>, vector<32x96xbf16>, vector<16x96xf32> -> vector<16x96xf32>
    %14 = vector.broadcast %7 : vector<1x96xf32> to vector<16x96xf32>
    %15 = arith.addf %13, %14 : vector<16x96xf32>
    %16 = vector.shape_cast %15 : vector<16x96xf32> to vector<8x2x96xf32>
    %c0_13 = arith.constant 0 : index
    %c0_14 = arith.constant 0 : index
    %c0_15 = arith.constant 0 : index
    %17 = vector.load %arg15[%c0_13, %c0_14, %c0_15] : memref<8x2x96xf32, #tpu.memory_space<vmem>>, vector<8x2x96xf32>
    tpu.vector_store %arg15[%c0_13, %c0_14, %c0_15], %16 {strides = array<i32>} : memref<8x2x96xf32, #tpu.memory_space<vmem>>, vector<8x2x96xf32>,
    %cst_16 = arith.constant 0.000000e+00 : f32
    %18 = vector.broadcast %cst_16 : f32 to vector<2x32xf32>
    %c0_i32 = arith.constant 0 : i32
    %19 = arith.index_cast %c0_i32 : i32 to index
    %c0_17 = arith.constant 0 : index
    %c0_18 = arith.constant 0 : index
    %20 = vector.load %arg15[%19, %c0_17, %c0_18] : memref<8x2x96xf32, #tpu.memory_space<vmem>>, vector<1x2x96xf32>
    %21 = vector.shape_cast %20 : vector<1x2x96xf32> to vector<2x96xf32>
    %22 = arith.truncf %18 : vector<2x32xf32> to vector<2x32xbf16>
    %cst_19 = arith.constant dense<0.000000e+00> : vector<2x96xf32>
    %23 = tpu.matmul %22, %2, %cst_19 {dimension_numbers = #tpu.dot_dimension_numbers<[1], [0], [0], [1], [0, 0, 1, 1], [], []>} : vector<2x32xbf16>, vector<32x96xbf16>, vector<2x96xf32> -> vector<2x96xf32>
    %24 = vector.broadcast %8 : vector<1x96xf32> to vector<2x96xf32>
    %25 = arith.addf %23, %24 : vector<2x96xf32>
    %26 = vector.extract_strided_slice %21 {offsets = [0, 0], sizes = [2, 32], strides = [1, 1]} : vector<2x96xf32> to vector<2x32xf32>
    %27 = vector.extract_strided_slice %25 {offsets = [0, 0], sizes = [2, 32], strides = [1, 1]} : vector<2x96xf32> to vector<2x32xf32>
    %28 = arith.addf %26, %27 : vector<2x32xf32>
    %29 = arith.negf %28 : vector<2x32xf32>
    %30 = math.exp %29 : vector<2x32xf32>
    %cst_20 = arith.constant 1.000000e+00 : f32
    %31 = vector.broadcast %cst_20 : f32 to vector<2x32xf32>
    %32 = arith.addf %31, %30 : vector<2x32xf32>
    %33 = arith.divf %31, %32 : vector<2x32xf32>
    %34 = vector.extract_strided_slice %21 {offsets = [0, 32], sizes = [2, 32], strides = [1, 1]} : vector<2x96xf32> to vector<2x32xf32>
    %35 = vector.extract_strided_slice %25 {offsets = [0, 32], sizes = [2, 32], strides = [1, 1]} : vector<2x96xf32> to vector<2x32xf32>
    %36 = arith.addf %34, %35 : vector<2x32xf32>
    %37 = arith.negf %36 : vector<2x32xf32>
    %38 = math.exp %37 : vector<2x32xf32>
    %cst_21 = arith.constant 1.000000e+00 : f32
    %39 = vector.broadcast %cst_21 : f32 to vector<2x32xf32>
    %40 = arith.addf %39, %38 : vector<2x32xf32>
    %41 = arith.divf %39, %40 : vector<2x32xf32>
    %42 = vector.extract_strided_slice %21 {offsets = [0, 64], sizes = [2, 32], strides = [1, 1]} : vector<2x96xf32> to vector<2x32xf32>
    %43 = vector.extract_strided_slice %25 {offsets = [0, 64], sizes = [2, 32], strides = [1, 1]} : vector<2x96xf32> to vector<2x32xf32>
    %44 = arith.mulf %33, %43 : vector<2x32xf32>
    %45 = arith.addf %42, %44 : vector<2x32xf32>
    %46 = math.tanh %45 : vector<2x32xf32>
    %cst_22 = arith.constant 1.000000e+00 : f32
    %47 = vector.broadcast %cst_22 : f32 to vector<2x32xf32>
    %48 = arith.subf %47, %41 : vector<2x32xf32>
    %49 = arith.mulf %48, %46 : vector<2x32xf32>
    %50 = arith.mulf %41, %18 : vector<2x32xf32>
    %51 = arith.addf %49, %50 : vector<2x32xf32>
    %52 = vector.broadcast %c0_i32 : i32 to vector<2x1xi32>
    %53 = arith.cmpi slt, %52, %0 : vector<2x1xi32>
    %54 = vector.shape_cast %53 : vector<2x1xi1> to vector<2x1xi1>
    %55 = vector.broadcast %54 : vector<2x1xi1> to vector<2x32xi1>
    %56 = arith.select %55, %51, %18 : vector<2x32xi1>, vector<2x32xf32>
    %cst_23 = arith.constant 0.000000e+00 : f32
    %57 = vector.shape_cast %53 : vector<2x1xi1> to vector<2x1xi1>
    %58 = vector.broadcast %57 : vector<2x1xi1> to vector<2x32xi1>
    %59 = vector.broadcast %cst_23 : f32 to vector<2x32xf32>
    %60 = arith.select %58, %56, %59 : vector<2x32xi1>, vector<2x32xf32>
    %61 = arith.index_cast %c0_i32 : i32 to index
    %c0_24 = arith.constant 0 : index
    %c0_25 = arith.constant 0 : index
    %62 = vector.load %arg14[%61, %c0_24, %c0_25] : memref<8x2x32xf32, #tpu.memory_space<vmem>>, vector<1x2x32xf32>
    %63 = vector.shape_cast %62 : vector<1x2x32xf32> to vector<2x32xf32>
    %64 = vector.shape_cast %60 : vector<2x32xf32> to vector<1x2x32xf32>
    tpu.vector_store %arg14[%61, %c0_24, %c0_25], %64 {strides = array<i32>} : memref<8x2x32xf32, #tpu.memory_space<vmem>>, vector<1x2x32xf32>,
    %c1_i32 = arith.constant 1 : i32
    %65 = arith.index_cast %c1_i32 : i32 to index
    %c0_26 = arith.constant 0 : index
    %c0_27 = arith.constant 0 : index
    %66 = vector.load %arg15[%65, %c0_26, %c0_27] : memref<8x2x96xf32, #tpu.memory_space<vmem>>, vector<1x2x96xf32>
    %67 = vector.shape_cast %66 : vector<1x2x96xf32> to vector<2x96xf32>
    %68 = arith.truncf %56 : vector<2x32xf32> to vector<2x32xbf16>
    %cst_28 = arith.constant dense<0.000000e+00> : vector<2x96xf32>
    %69 = tpu.matmul %68, %2, %cst_28 {dimension_numbers = #tpu.dot_dimension_numbers<[1], [0], [0], [1], [0, 0, 1, 1], [], []>} : vector<2x32xbf16>, vector<32x96xbf16>, vector<2x96xf32> -> vector<2x96xf32>
    %70 = vector.broadcast %8 : vector<1x96xf32> to vector<2x96xf32>
    %71 = arith.addf %69, %70 : vector<2x96xf32>
    %72 = vector.extract_strided_slice %67 {offsets = [0, 0], sizes = [2, 32], strides = [1, 1]} : vector<2x96xf32> to vector<2x32xf32>
    %73 = vector.extract_strided_slice %71 {offsets = [0, 0], sizes = [2, 32], strides = [1, 1]} : vector<2x96xf32> to vector<2x32xf32>
    %74 = arith.addf %72, %73 : vector<2x32xf32>
    %75 = arith.negf %74 : vector<2x32xf32>
    %76 = math.exp %75 : vector<2x32xf32>
    %cst_29 = arith.constant 1.000000e+00 : f32
    %77 = vector.broadcast %cst_29 : f32 to vector<2x32xf32>
    %78 = arith.addf %77, %76 : vector<2x32xf32>
    %79 = arith.divf %77, %78 : vector<2x32xf32>
    %80 = vector.extract_strided_slice %67 {offsets = [0, 32], sizes = [2, 32], strides = [1, 1]} : vector<2x96xf32> to vector<2x32xf32>
    %81 = vector.extract_strided_slice %71 {offsets = [0, 32], sizes = [2, 32], strides = [1, 1]} : vector<2x96xf32> to vector<2x32xf32>
    %82 = arith.addf %80, %81 : vector<2x32xf32>
    %83 = arith.negf %82 : vector<2x32xf32>
    %84 = math.exp %83 : vector<2x32xf32>
    %cst_30 = arith.constant 1.000000e+00 : f32
    %85 = vector.broadcast %cst_30 : f32 to vector<2x32xf32>
    %86 = arith.addf %85, %84 : vector<2x32xf32>
    %87 = arith.divf %85, %86 : vector<2x32xf32>
    %88 = vector.extract_strided_slice %67 {offsets = [0, 64], sizes = [2, 32], strides = [1, 1]} : vector<2x96xf32> to vector<2x32xf32>
    %89 = vector.extract_strided_slice %71 {offsets = [0, 64], sizes = [2, 32], strides = [1, 1]} : vector<2x96xf32> to vector<2x32xf32>
    %90 = arith.mulf %79, %89 : vector<2x32xf32>
    %91 = arith.addf %88, %90 : vector<2x32xf32>
    %92 = math.tanh %91 : vector<2x32xf32>
    %cst_31 = arith.constant 1.000000e+00 : f32
    %93 = vector.broadcast %cst_31 : f32 to vector<2x32xf32>
    %94 = arith.subf %93, %87 : vector<2x32xf32>
    %95 = arith.mulf %94, %92 : vector<2x32xf32>
    %96 = arith.mulf %87, %56 : vector<2x32xf32>
    %97 = arith.addf %95, %96 : vector<2x32xf32>
    %98 = vector.broadcast %c1_i32 : i32 to vector<2x1xi32>
    %99 = arith.cmpi slt, %98, %0 : vector<2x1xi32>
    %100 = vector.shape_cast %99 : vector<2x1xi1> to vector<2x1xi1>
    %101 = vector.broadcast %100 : vector<2x1xi1> to vector<2x32xi1>
    %102 = arith.select %101, %97, %56 : vector<2x32xi1>, vector<2x32xf32>
    %cst_32 = arith.constant 0.000000e+00 : f32
    %103 = vector.shape_cast %99 : vector<2x1xi1> to vector<2x1xi1>
    %104 = vector.broadcast %103 : vector<2x1xi1> to vector<2x32xi1>
    %105 = vector.broadcast %cst_32 : f32 to vector<2x32xf32>
    %106 = arith.select %104, %102, %105 : vector<2x32xi1>, vector<2x32xf32>
    %107 = arith.index_cast %c1_i32 : i32 to index
    %c0_33 = arith.constant 0 : index
    %c0_34 = arith.constant 0 : index
    %108 = vector.load %arg14[%107, %c0_33, %c0_34] : memref<8x2x32xf32, #tpu.memory_space<vmem>>, vector<1x2x32xf32>
    %109 = vector.shape_cast %108 : vector<1x2x32xf32> to vector<2x32xf32>
    %110 = vector.shape_cast %106 : vector<2x32xf32> to vector<1x2x32xf32>
    tpu.vector_store %arg14[%107, %c0_33, %c0_34], %110 {strides = array<i32>} : memref<8x2x32xf32, #tpu.memory_space<vmem>>, vector<1x2x32xf32>,
    %c2_i32 = arith.constant 2 : i32
    %111 = arith.index_cast %c2_i32 : i32 to index
    %c0_35 = arith.constant 0 : index
    %c0_36 = arith.constant 0 : index
    %112 = vector.load %arg15[%111, %c0_35, %c0_36] : memref<8x2x96xf32, #tpu.memory_space<vmem>>, vector<1x2x96xf32>
    %113 = vector.shape_cast %112 : vector<1x2x96xf32> to vector<2x96xf32>
    %114 = arith.truncf %102 : vector<2x32xf32> to vector<2x32xbf16>
    %cst_37 = arith.constant dense<0.000000e+00> : vector<2x96xf32>
    %115 = tpu.matmul %114, %2, %cst_37 {dimension_numbers = #tpu.dot_dimension_numbers<[1], [0], [0], [1], [0, 0, 1, 1], [], []>} : vector<2x32xbf16>, vector<32x96xbf16>, vector<2x96xf32> -> vector<2x96xf32>
    %116 = vector.broadcast %8 : vector<1x96xf32> to vector<2x96xf32>
    %117 = arith.addf %115, %116 : vector<2x96xf32>
    %118 = vector.extract_strided_slice %113 {offsets = [0, 0], sizes = [2, 32], strides = [1, 1]} : vector<2x96xf32> to vector<2x32xf32>
    %119 = vector.extract_strided_slice %117 {offsets = [0, 0], sizes = [2, 32], strides = [1, 1]} : vector<2x96xf32> to vector<2x32xf32>
    %120 = arith.addf %118, %119 : vector<2x32xf32>
    %121 = arith.negf %120 : vector<2x32xf32>
    %122 = math.exp %121 : vector<2x32xf32>
    %cst_38 = arith.constant 1.000000e+00 : f32
    %123 = vector.broadcast %cst_38 : f32 to vector<2x32xf32>
    %124 = arith.addf %123, %122 : vector<2x32xf32>
    %125 = arith.divf %123, %124 : vector<2x32xf32>
    %126 = vector.extract_strided_slice %113 {offsets = [0, 32], sizes = [2, 32], strides = [1, 1]} : vector<2x96xf32> to vector<2x32xf32>
    %127 = vector.extract_strided_slice %117 {offsets = [0, 32], sizes = [2, 32], strides = [1, 1]} : vector<2x96xf32> to vector<2x32xf32>
    %128 = arith.addf %126, %127 : vector<2x32xf32>
    %129 = arith.negf %128 : vector<2x32xf32>
    %130 = math.exp %129 : vector<2x32xf32>
    %cst_39 = arith.constant 1.000000e+00 : f32
    %131 = vector.broadcast %cst_39 : f32 to vector<2x32xf32>
    %132 = arith.addf %131, %130 : vector<2x32xf32>
    %133 = arith.divf %131, %132 : vector<2x32xf32>
    %134 = vector.extract_strided_slice %113 {offsets = [0, 64], sizes = [2, 32], strides = [1, 1]} : vector<2x96xf32> to vector<2x32xf32>
    %135 = vector.extract_strided_slice %117 {offsets = [0, 64], sizes = [2, 32], strides = [1, 1]} : vector<2x96xf32> to vector<2x32xf32>
    %136 = arith.mulf %125, %135 : vector<2x32xf32>
    %137 = arith.addf %134, %136 : vector<2x32xf32>
    %138 = math.tanh %137 : vector<2x32xf32>
    %cst_40 = arith.constant 1.000000e+00 : f32
    %139 = vector.broadcast %cst_40 : f32 to vector<2x32xf32>
    %140 = arith.subf %139, %133 : vector<2x32xf32>
    %141 = arith.mulf %140, %138 : vector<2x32xf32>
    %142 = arith.mulf %133, %102 : vector<2x32xf32>
    %143 = arith.addf %141, %142 : vector<2x32xf32>
    %144 = vector.broadcast %c2_i32 : i32 to vector<2x1xi32>
    %145 = arith.cmpi slt, %144, %0 : vector<2x1xi32>
    %146 = vector.shape_cast %145 : vector<2x1xi1> to vector<2x1xi1>
    %147 = vector.broadcast %146 : vector<2x1xi1> to vector<2x32xi1>
    %148 = arith.select %147, %143, %102 : vector<2x32xi1>, vector<2x32xf32>
    %cst_41 = arith.constant 0.000000e+00 : f32
    %149 = vector.shape_cast %145 : vector<2x1xi1> to vector<2x1xi1>
    %150 = vector.broadcast %149 : vector<2x1xi1> to vector<2x32xi1>
    %151 = vector.broadcast %cst_41 : f32 to vector<2x32xf32>
    %152 = arith.select %150, %148, %151 : vector<2x32xi1>, vector<2x32xf32>
    %153 = arith.index_cast %c2_i32 : i32 to index
    %c0_42 = arith.constant 0 : index
    %c0_43 = arith.constant 0 : index
    %154 = vector.load %arg14[%153, %c0_42, %c0_43] : memref<8x2x32xf32, #tpu.memory_space<vmem>>, vector<1x2x32xf32>
    %155 = vector.shape_cast %154 : vector<1x2x32xf32> to vector<2x32xf32>
    %156 = vector.shape_cast %152 : vector<2x32xf32> to vector<1x2x32xf32>
    tpu.vector_store %arg14[%153, %c0_42, %c0_43], %156 {strides = array<i32>} : memref<8x2x32xf32, #tpu.memory_space<vmem>>, vector<1x2x32xf32>,
    %c3_i32 = arith.constant 3 : i32
    %157 = arith.index_cast %c3_i32 : i32 to index
    %c0_44 = arith.constant 0 : index
    %c0_45 = arith.constant 0 : index
    %158 = vector.load %arg15[%157, %c0_44, %c0_45] : memref<8x2x96xf32, #tpu.memory_space<vmem>>, vector<1x2x96xf32>
    %159 = vector.shape_cast %158 : vector<1x2x96xf32> to vector<2x96xf32>
    %160 = arith.truncf %148 : vector<2x32xf32> to vector<2x32xbf16>
    %cst_46 = arith.constant dense<0.000000e+00> : vector<2x96xf32>
    %161 = tpu.matmul %160, %2, %cst_46 {dimension_numbers = #tpu.dot_dimension_numbers<[1], [0], [0], [1], [0, 0, 1, 1], [], []>} : vector<2x32xbf16>, vector<32x96xbf16>, vector<2x96xf32> -> vector<2x96xf32>
    %162 = vector.broadcast %8 : vector<1x96xf32> to vector<2x96xf32>
    %163 = arith.addf %161, %162 : vector<2x96xf32>
    %164 = vector.extract_strided_slice %159 {offsets = [0, 0], sizes = [2, 32], strides = [1, 1]} : vector<2x96xf32> to vector<2x32xf32>
    %165 = vector.extract_strided_slice %163 {offsets = [0, 0], sizes = [2, 32], strides = [1, 1]} : vector<2x96xf32> to vector<2x32xf32>
    %166 = arith.addf %164, %165 : vector<2x32xf32>
    %167 = arith.negf %166 : vector<2x32xf32>
    %168 = math.exp %167 : vector<2x32xf32>
    %cst_47 = arith.constant 1.000000e+00 : f32
    %169 = vector.broadcast %cst_47 : f32 to vector<2x32xf32>
    %170 = arith.addf %169, %168 : vector<2x32xf32>
    %171 = arith.divf %169, %170 : vector<2x32xf32>
    %172 = vector.extract_strided_slice %159 {offsets = [0, 32], sizes = [2, 32], strides = [1, 1]} : vector<2x96xf32> to vector<2x32xf32>
    %173 = vector.extract_strided_slice %163 {offsets = [0, 32], sizes = [2, 32], strides = [1, 1]} : vector<2x96xf32> to vector<2x32xf32>
    %174 = arith.addf %172, %173 : vector<2x32xf32>
    %175 = arith.negf %174 : vector<2x32xf32>
    %176 = math.exp %175 : vector<2x32xf32>
    %cst_48 = arith.constant 1.000000e+00 : f32
    %177 = vector.broadcast %cst_48 : f32 to vector<2x32xf32>
    %178 = arith.addf %177, %176 : vector<2x32xf32>
    %179 = arith.divf %177, %178 : vector<2x32xf32>
    %180 = vector.extract_strided_slice %159 {offsets = [0, 64], sizes = [2, 32], strides = [1, 1]} : vector<2x96xf32> to vector<2x32xf32>
    %181 = vector.extract_strided_slice %163 {offsets = [0, 64], sizes = [2, 32], strides = [1, 1]} : vector<2x96xf32> to vector<2x32xf32>
    %182 = arith.mulf %171, %181 : vector<2x32xf32>
    %183 = arith.addf %180, %182 : vector<2x32xf32>
    %184 = math.tanh %183 : vector<2x32xf32>
    %cst_49 = arith.constant 1.000000e+00 : f32
    %185 = vector.broadcast %cst_49 : f32 to vector<2x32xf32>
    %186 = arith.subf %185, %179 : vector<2x32xf32>
    %187 = arith.mulf %186, %184 : vector<2x32xf32>
    %188 = arith.mulf %179, %148 : vector<2x32xf32>
    %189 = arith.addf %187, %188 : vector<2x32xf32>
    %190 = vector.broadcast %c3_i32 : i32 to vector<2x1xi32>
    %191 = arith.cmpi slt, %190, %0 : vector<2x1xi32>
    %192 = vector.shape_cast %191 : vector<2x1xi1> to vector<2x1xi1>
    %193 = vector.broadcast %192 : vector<2x1xi1> to vector<2x32xi1>
    %194 = arith.select %193, %189, %148 : vector<2x32xi1>, vector<2x32xf32>
    %cst_50 = arith.constant 0.000000e+00 : f32
    %195 = vector.shape_cast %191 : vector<2x1xi1> to vector<2x1xi1>
    %196 = vector.broadcast %195 : vector<2x1xi1> to vector<2x32xi1>
    %197 = vector.broadcast %cst_50 : f32 to vector<2x32xf32>
    %198 = arith.select %196, %194, %197 : vector<2x32xi1>, vector<2x32xf32>
    %199 = arith.index_cast %c3_i32 : i32 to index
    %c0_51 = arith.constant 0 : index
    %c0_52 = arith.constant 0 : index
    %200 = vector.load %arg14[%199, %c0_51, %c0_52] : memref<8x2x32xf32, #tpu.memory_space<vmem>>, vector<1x2x32xf32>
    %201 = vector.shape_cast %200 : vector<1x2x32xf32> to vector<2x32xf32>
    %202 = vector.shape_cast %198 : vector<2x32xf32> to vector<1x2x32xf32>
    tpu.vector_store %arg14[%199, %c0_51, %c0_52], %202 {strides = array<i32>} : memref<8x2x32xf32, #tpu.memory_space<vmem>>, vector<1x2x32xf32>,
    %c4_i32 = arith.constant 4 : i32
    %203 = arith.index_cast %c4_i32 : i32 to index
    %c0_53 = arith.constant 0 : index
    %c0_54 = arith.constant 0 : index
    %204 = vector.load %arg15[%203, %c0_53, %c0_54] : memref<8x2x96xf32, #tpu.memory_space<vmem>>, vector<1x2x96xf32>
    %205 = vector.shape_cast %204 : vector<1x2x96xf32> to vector<2x96xf32>
    %206 = arith.truncf %194 : vector<2x32xf32> to vector<2x32xbf16>
    %cst_55 = arith.constant dense<0.000000e+00> : vector<2x96xf32>
    %207 = tpu.matmul %206, %2, %cst_55 {dimension_numbers = #tpu.dot_dimension_numbers<[1], [0], [0], [1], [0, 0, 1, 1], [], []>} : vector<2x32xbf16>, vector<32x96xbf16>, vector<2x96xf32> -> vector<2x96xf32>
    %208 = vector.broadcast %8 : vector<1x96xf32> to vector<2x96xf32>
    %209 = arith.addf %207, %208 : vector<2x96xf32>
    %210 = vector.extract_strided_slice %205 {offsets = [0, 0], sizes = [2, 32], strides = [1, 1]} : vector<2x96xf32> to vector<2x32xf32>
    %211 = vector.extract_strided_slice %209 {offsets = [0, 0], sizes = [2, 32], strides = [1, 1]} : vector<2x96xf32> to vector<2x32xf32>
    %212 = arith.addf %210, %211 : vector<2x32xf32>
    %213 = arith.negf %212 : vector<2x32xf32>
    %214 = math.exp %213 : vector<2x32xf32>
    %cst_56 = arith.constant 1.000000e+00 : f32
    %215 = vector.broadcast %cst_56 : f32 to vector<2x32xf32>
    %216 = arith.addf %215, %214 : vector<2x32xf32>
    %217 = arith.divf %215, %216 : vector<2x32xf32>
    %218 = vector.extract_strided_slice %205 {offsets = [0, 32], sizes = [2, 32], strides = [1, 1]} : vector<2x96xf32> to vector<2x32xf32>
    %219 = vector.extract_strided_slice %209 {offsets = [0, 32], sizes = [2, 32], strides = [1, 1]} : vector<2x96xf32> to vector<2x32xf32>
    %220 = arith.addf %218, %219 : vector<2x32xf32>
    %221 = arith.negf %220 : vector<2x32xf32>
    %222 = math.exp %221 : vector<2x32xf32>
    %cst_57 = arith.constant 1.000000e+00 : f32
    %223 = vector.broadcast %cst_57 : f32 to vector<2x32xf32>
    %224 = arith.addf %223, %222 : vector<2x32xf32>
    %225 = arith.divf %223, %224 : vector<2x32xf32>
    %226 = vector.extract_strided_slice %205 {offsets = [0, 64], sizes = [2, 32], strides = [1, 1]} : vector<2x96xf32> to vector<2x32xf32>
    %227 = vector.extract_strided_slice %209 {offsets = [0, 64], sizes = [2, 32], strides = [1, 1]} : vector<2x96xf32> to vector<2x32xf32>
    %228 = arith.mulf %217, %227 : vector<2x32xf32>
    %229 = arith.addf %226, %228 : vector<2x32xf32>
    %230 = math.tanh %229 : vector<2x32xf32>
    %cst_58 = arith.constant 1.000000e+00 : f32
    %231 = vector.broadcast %cst_58 : f32 to vector<2x32xf32>
    %232 = arith.subf %231, %225 : vector<2x32xf32>
    %233 = arith.mulf %232, %230 : vector<2x32xf32>
    %234 = arith.mulf %225, %194 : vector<2x32xf32>
    %235 = arith.addf %233, %234 : vector<2x32xf32>
    %236 = vector.broadcast %c4_i32 : i32 to vector<2x1xi32>
    %237 = arith.cmpi slt, %236, %0 : vector<2x1xi32>
    %238 = vector.shape_cast %237 : vector<2x1xi1> to vector<2x1xi1>
    %239 = vector.broadcast %238 : vector<2x1xi1> to vector<2x32xi1>
    %240 = arith.select %239, %235, %194 : vector<2x32xi1>, vector<2x32xf32>
    %cst_59 = arith.constant 0.000000e+00 : f32
    %241 = vector.shape_cast %237 : vector<2x1xi1> to vector<2x1xi1>
    %242 = vector.broadcast %241 : vector<2x1xi1> to vector<2x32xi1>
    %243 = vector.broadcast %cst_59 : f32 to vector<2x32xf32>
    %244 = arith.select %242, %240, %243 : vector<2x32xi1>, vector<2x32xf32>
    %245 = arith.index_cast %c4_i32 : i32 to index
    %c0_60 = arith.constant 0 : index
    %c0_61 = arith.constant 0 : index
    %246 = vector.load %arg14[%245, %c0_60, %c0_61] : memref<8x2x32xf32, #tpu.memory_space<vmem>>, vector<1x2x32xf32>
    %247 = vector.shape_cast %246 : vector<1x2x32xf32> to vector<2x32xf32>
    %248 = vector.shape_cast %244 : vector<2x32xf32> to vector<1x2x32xf32>
    tpu.vector_store %arg14[%245, %c0_60, %c0_61], %248 {strides = array<i32>} : memref<8x2x32xf32, #tpu.memory_space<vmem>>, vector<1x2x32xf32>,
    %c5_i32 = arith.constant 5 : i32
    %249 = arith.index_cast %c5_i32 : i32 to index
    %c0_62 = arith.constant 0 : index
    %c0_63 = arith.constant 0 : index
    %250 = vector.load %arg15[%249, %c0_62, %c0_63] : memref<8x2x96xf32, #tpu.memory_space<vmem>>, vector<1x2x96xf32>
    %251 = vector.shape_cast %250 : vector<1x2x96xf32> to vector<2x96xf32>
    %252 = arith.truncf %240 : vector<2x32xf32> to vector<2x32xbf16>
    %cst_64 = arith.constant dense<0.000000e+00> : vector<2x96xf32>
    %253 = tpu.matmul %252, %2, %cst_64 {dimension_numbers = #tpu.dot_dimension_numbers<[1], [0], [0], [1], [0, 0, 1, 1], [], []>} : vector<2x32xbf16>, vector<32x96xbf16>, vector<2x96xf32> -> vector<2x96xf32>
    %254 = vector.broadcast %8 : vector<1x96xf32> to vector<2x96xf32>
    %255 = arith.addf %253, %254 : vector<2x96xf32>
    %256 = vector.extract_strided_slice %251 {offsets = [0, 0], sizes = [2, 32], strides = [1, 1]} : vector<2x96xf32> to vector<2x32xf32>
    %257 = vector.extract_strided_slice %255 {offsets = [0, 0], sizes = [2, 32], strides = [1, 1]} : vector<2x96xf32> to vector<2x32xf32>
    %258 = arith.addf %256, %257 : vector<2x32xf32>
    %259 = arith.negf %258 : vector<2x32xf32>
    %260 = math.exp %259 : vector<2x32xf32>
    %cst_65 = arith.constant 1.000000e+00 : f32
    %261 = vector.broadcast %cst_65 : f32 to vector<2x32xf32>
    %262 = arith.addf %261, %260 : vector<2x32xf32>
    %263 = arith.divf %261, %262 : vector<2x32xf32>
    %264 = vector.extract_strided_slice %251 {offsets = [0, 32], sizes = [2, 32], strides = [1, 1]} : vector<2x96xf32> to vector<2x32xf32>
    %265 = vector.extract_strided_slice %255 {offsets = [0, 32], sizes = [2, 32], strides = [1, 1]} : vector<2x96xf32> to vector<2x32xf32>
    %266 = arith.addf %264, %265 : vector<2x32xf32>
    %267 = arith.negf %266 : vector<2x32xf32>
    %268 = math.exp %267 : vector<2x32xf32>
    %cst_66 = arith.constant 1.000000e+00 : f32
    %269 = vector.broadcast %cst_66 : f32 to vector<2x32xf32>
    %270 = arith.addf %269, %268 : vector<2x32xf32>
    %271 = arith.divf %269, %270 : vector<2x32xf32>
    %272 = vector.extract_strided_slice %251 {offsets = [0, 64], sizes = [2, 32], strides = [1, 1]} : vector<2x96xf32> to vector<2x32xf32>
    %273 = vector.extract_strided_slice %255 {offsets = [0, 64], sizes = [2, 32], strides = [1, 1]} : vector<2x96xf32> to vector<2x32xf32>
    %274 = arith.mulf %263, %273 : vector<2x32xf32>
    %275 = arith.addf %272, %274 : vector<2x32xf32>
    %276 = math.tanh %275 : vector<2x32xf32>
    %cst_67 = arith.constant 1.000000e+00 : f32
    %277 = vector.broadcast %cst_67 : f32 to vector<2x32xf32>
    %278 = arith.subf %277, %271 : vector<2x32xf32>
    %279 = arith.mulf %278, %276 : vector<2x32xf32>
    %280 = arith.mulf %271, %240 : vector<2x32xf32>
    %281 = arith.addf %279, %280 : vector<2x32xf32>
    %282 = vector.broadcast %c5_i32 : i32 to vector<2x1xi32>
    %283 = arith.cmpi slt, %282, %0 : vector<2x1xi32>
    %284 = vector.shape_cast %283 : vector<2x1xi1> to vector<2x1xi1>
    %285 = vector.broadcast %284 : vector<2x1xi1> to vector<2x32xi1>
    %286 = arith.select %285, %281, %240 : vector<2x32xi1>, vector<2x32xf32>
    %cst_68 = arith.constant 0.000000e+00 : f32
    %287 = vector.shape_cast %283 : vector<2x1xi1> to vector<2x1xi1>
    %288 = vector.broadcast %287 : vector<2x1xi1> to vector<2x32xi1>
    %289 = vector.broadcast %cst_68 : f32 to vector<2x32xf32>
    %290 = arith.select %288, %286, %289 : vector<2x32xi1>, vector<2x32xf32>
    %291 = arith.index_cast %c5_i32 : i32 to index
    %c0_69 = arith.constant 0 : index
    %c0_70 = arith.constant 0 : index
    %292 = vector.load %arg14[%291, %c0_69, %c0_70] : memref<8x2x32xf32, #tpu.memory_space<vmem>>, vector<1x2x32xf32>
    %293 = vector.shape_cast %292 : vector<1x2x32xf32> to vector<2x32xf32>
    %294 = vector.shape_cast %290 : vector<2x32xf32> to vector<1x2x32xf32>
    tpu.vector_store %arg14[%291, %c0_69, %c0_70], %294 {strides = array<i32>} : memref<8x2x32xf32, #tpu.memory_space<vmem>>, vector<1x2x32xf32>,
    %c6_i32 = arith.constant 6 : i32
    %295 = arith.index_cast %c6_i32 : i32 to index
    %c0_71 = arith.constant 0 : index
    %c0_72 = arith.constant 0 : index
    %296 = vector.load %arg15[%295, %c0_71, %c0_72] : memref<8x2x96xf32, #tpu.memory_space<vmem>>, vector<1x2x96xf32>
    %297 = vector.shape_cast %296 : vector<1x2x96xf32> to vector<2x96xf32>
    %298 = arith.truncf %286 : vector<2x32xf32> to vector<2x32xbf16>
    %cst_73 = arith.constant dense<0.000000e+00> : vector<2x96xf32>
    %299 = tpu.matmul %298, %2, %cst_73 {dimension_numbers = #tpu.dot_dimension_numbers<[1], [0], [0], [1], [0, 0, 1, 1], [], []>} : vector<2x32xbf16>, vector<32x96xbf16>, vector<2x96xf32> -> vector<2x96xf32>
    %300 = vector.broadcast %8 : vector<1x96xf32> to vector<2x96xf32>
    %301 = arith.addf %299, %300 : vector<2x96xf32>
    %302 = vector.extract_strided_slice %297 {offsets = [0, 0], sizes = [2, 32], strides = [1, 1]} : vector<2x96xf32> to vector<2x32xf32>
    %303 = vector.extract_strided_slice %301 {offsets = [0, 0], sizes = [2, 32], strides = [1, 1]} : vector<2x96xf32> to vector<2x32xf32>
    %304 = arith.addf %302, %303 : vector<2x32xf32>
    %305 = arith.negf %304 : vector<2x32xf32>
    %306 = math.exp %305 : vector<2x32xf32>
    %cst_74 = arith.constant 1.000000e+00 : f32
    %307 = vector.broadcast %cst_74 : f32 to vector<2x32xf32>
    %308 = arith.addf %307, %306 : vector<2x32xf32>
    %309 = arith.divf %307, %308 : vector<2x32xf32>
    %310 = vector.extract_strided_slice %297 {offsets = [0, 32], sizes = [2, 32], strides = [1, 1]} : vector<2x96xf32> to vector<2x32xf32>
    %311 = vector.extract_strided_slice %301 {offsets = [0, 32], sizes = [2, 32], strides = [1, 1]} : vector<2x96xf32> to vector<2x32xf32>
    %312 = arith.addf %310, %311 : vector<2x32xf32>
    %313 = arith.negf %312 : vector<2x32xf32>
    %314 = math.exp %313 : vector<2x32xf32>
    %cst_75 = arith.constant 1.000000e+00 : f32
    %315 = vector.broadcast %cst_75 : f32 to vector<2x32xf32>
    %316 = arith.addf %315, %314 : vector<2x32xf32>
    %317 = arith.divf %315, %316 : vector<2x32xf32>
    %318 = vector.extract_strided_slice %297 {offsets = [0, 64], sizes = [2, 32], strides = [1, 1]} : vector<2x96xf32> to vector<2x32xf32>
    %319 = vector.extract_strided_slice %301 {offsets = [0, 64], sizes = [2, 32], strides = [1, 1]} : vector<2x96xf32> to vector<2x32xf32>
    %320 = arith.mulf %309, %319 : vector<2x32xf32>
    %321 = arith.addf %318, %320 : vector<2x32xf32>
    %322 = math.tanh %321 : vector<2x32xf32>
    %cst_76 = arith.constant 1.000000e+00 : f32
    %323 = vector.broadcast %cst_76 : f32 to vector<2x32xf32>
    %324 = arith.subf %323, %317 : vector<2x32xf32>
    %325 = arith.mulf %324, %322 : vector<2x32xf32>
    %326 = arith.mulf %317, %286 : vector<2x32xf32>
    %327 = arith.addf %325, %326 : vector<2x32xf32>
    %328 = vector.broadcast %c6_i32 : i32 to vector<2x1xi32>
    %329 = arith.cmpi slt, %328, %0 : vector<2x1xi32>
    %330 = vector.shape_cast %329 : vector<2x1xi1> to vector<2x1xi1>
    %331 = vector.broadcast %330 : vector<2x1xi1> to vector<2x32xi1>
    %332 = arith.select %331, %327, %286 : vector<2x32xi1>, vector<2x32xf32>
    %cst_77 = arith.constant 0.000000e+00 : f32
    %333 = vector.shape_cast %329 : vector<2x1xi1> to vector<2x1xi1>
    %334 = vector.broadcast %333 : vector<2x1xi1> to vector<2x32xi1>
    %335 = vector.broadcast %cst_77 : f32 to vector<2x32xf32>
    %336 = arith.select %334, %332, %335 : vector<2x32xi1>, vector<2x32xf32>
    %337 = arith.index_cast %c6_i32 : i32 to index
    %c0_78 = arith.constant 0 : index
    %c0_79 = arith.constant 0 : index
    %338 = vector.load %arg14[%337, %c0_78, %c0_79] : memref<8x2x32xf32, #tpu.memory_space<vmem>>, vector<1x2x32xf32>
    %339 = vector.shape_cast %338 : vector<1x2x32xf32> to vector<2x32xf32>
    %340 = vector.shape_cast %336 : vector<2x32xf32> to vector<1x2x32xf32>
    tpu.vector_store %arg14[%337, %c0_78, %c0_79], %340 {strides = array<i32>} : memref<8x2x32xf32, #tpu.memory_space<vmem>>, vector<1x2x32xf32>,
    %c7_i32 = arith.constant 7 : i32
    %341 = arith.index_cast %c7_i32 : i32 to index
    %c0_80 = arith.constant 0 : index
    %c0_81 = arith.constant 0 : index
    %342 = vector.load %arg15[%341, %c0_80, %c0_81] : memref<8x2x96xf32, #tpu.memory_space<vmem>>, vector<1x2x96xf32>
    %343 = vector.shape_cast %342 : vector<1x2x96xf32> to vector<2x96xf32>
    %344 = arith.truncf %332 : vector<2x32xf32> to vector<2x32xbf16>
    %cst_82 = arith.constant dense<0.000000e+00> : vector<2x96xf32>
    %345 = tpu.matmul %344, %2, %cst_82 {dimension_numbers = #tpu.dot_dimension_numbers<[1], [0], [0], [1], [0, 0, 1, 1], [], []>} : vector<2x32xbf16>, vector<32x96xbf16>, vector<2x96xf32> -> vector<2x96xf32>
    %346 = vector.broadcast %8 : vector<1x96xf32> to vector<2x96xf32>
    %347 = arith.addf %345, %346 : vector<2x96xf32>
    %348 = vector.extract_strided_slice %343 {offsets = [0, 0], sizes = [2, 32], strides = [1, 1]} : vector<2x96xf32> to vector<2x32xf32>
    %349 = vector.extract_strided_slice %347 {offsets = [0, 0], sizes = [2, 32], strides = [1, 1]} : vector<2x96xf32> to vector<2x32xf32>
    %350 = arith.addf %348, %349 : vector<2x32xf32>
    %351 = arith.negf %350 : vector<2x32xf32>
    %352 = math.exp %351 : vector<2x32xf32>
    %cst_83 = arith.constant 1.000000e+00 : f32
    %353 = vector.broadcast %cst_83 : f32 to vector<2x32xf32>
    %354 = arith.addf %353, %352 : vector<2x32xf32>
    %355 = arith.divf %353, %354 : vector<2x32xf32>
    %356 = vector.extract_strided_slice %343 {offsets = [0, 32], sizes = [2, 32], strides = [1, 1]} : vector<2x96xf32> to vector<2x32xf32>
    %357 = vector.extract_strided_slice %347 {offsets = [0, 32], sizes = [2, 32], strides = [1, 1]} : vector<2x96xf32> to vector<2x32xf32>
    %358 = arith.addf %356, %357 : vector<2x32xf32>
    %359 = arith.negf %358 : vector<2x32xf32>
    %360 = math.exp %359 : vector<2x32xf32>
    %cst_84 = arith.constant 1.000000e+00 : f32
    %361 = vector.broadcast %cst_84 : f32 to vector<2x32xf32>
    %362 = arith.addf %361, %360 : vector<2x32xf32>
    %363 = arith.divf %361, %362 : vector<2x32xf32>
    %364 = vector.extract_strided_slice %343 {offsets = [0, 64], sizes = [2, 32], strides = [1, 1]} : vector<2x96xf32> to vector<2x32xf32>
    %365 = vector.extract_strided_slice %347 {offsets = [0, 64], sizes = [2, 32], strides = [1, 1]} : vector<2x96xf32> to vector<2x32xf32>
    %366 = arith.mulf %355, %365 : vector<2x32xf32>
    %367 = arith.addf %364, %366 : vector<2x32xf32>
    %368 = math.tanh %367 : vector<2x32xf32>
    %cst_85 = arith.constant 1.000000e+00 : f32
    %369 = vector.broadcast %cst_85 : f32 to vector<2x32xf32>
    %370 = arith.subf %369, %363 : vector<2x32xf32>
    %371 = arith.mulf %370, %368 : vector<2x32xf32>
    %372 = arith.mulf %363, %332 : vector<2x32xf32>
    %373 = arith.addf %371, %372 : vector<2x32xf32>
    %374 = vector.broadcast %c7_i32 : i32 to vector<2x1xi32>
    %375 = arith.cmpi slt, %374, %0 : vector<2x1xi32>
    %376 = vector.shape_cast %375 : vector<2x1xi1> to vector<2x1xi1>
    %377 = vector.broadcast %376 : vector<2x1xi1> to vector<2x32xi1>
    %378 = arith.select %377, %373, %332 : vector<2x32xi1>, vector<2x32xf32>
    %cst_86 = arith.constant 0.000000e+00 : f32
    %379 = vector.shape_cast %375 : vector<2x1xi1> to vector<2x1xi1>
    %380 = vector.broadcast %379 : vector<2x1xi1> to vector<2x32xi1>
    %381 = vector.broadcast %cst_86 : f32 to vector<2x32xf32>
    %382 = arith.select %380, %378, %381 : vector<2x32xi1>, vector<2x32xf32>
    %383 = arith.index_cast %c7_i32 : i32 to index
    %c0_87 = arith.constant 0 : index
    %c0_88 = arith.constant 0 : index
    %384 = vector.load %arg14[%383, %c0_87, %c0_88] : memref<8x2x32xf32, #tpu.memory_space<vmem>>, vector<1x2x32xf32>
    %385 = vector.shape_cast %384 : vector<1x2x32xf32> to vector<2x32xf32>
    %386 = vector.shape_cast %382 : vector<2x32xf32> to vector<1x2x32xf32>
    tpu.vector_store %arg14[%383, %c0_87, %c0_88], %386 {strides = array<i32>} : memref<8x2x32xf32, #tpu.memory_space<vmem>>, vector<1x2x32xf32>,
    %c8_i32 = arith.constant 8 : i32
    %c0_89 = arith.constant 0 : index
    %c0_90 = arith.constant 0 : index
    %c0_91 = arith.constant 0 : index
    %387 = vector.load %arg14[%c0_89, %c0_90, %c0_91] : memref<8x2x32xf32, #tpu.memory_space<vmem>>, vector<8x2x32xf32>
    %388 = arith.truncf %387 : vector<8x2x32xf32> to vector<8x2x32xbf16>
    %389 = tpu.iota {dimensions = array<i32: 0>} : vector<8x2x1xi32>
    %390 = vector.shape_cast %0 : vector<2x1xi32> to vector<1x2x1xi32>
    %391 = vector.broadcast %390 : vector<1x2x1xi32> to vector<8x2x1xi32>
    %392 = arith.cmpi slt, %389, %391 : vector<8x2x1xi32>
    %c0_92 = arith.constant 0 : index
    %c0_93 = arith.constant 0 : index
    %393 = vector.load %arg2[%c0_92, %c0_93] : memref<2x32xf32, #tpu.memory_space<vmem>>, vector<2x32xf32>
    %c0_94 = arith.constant 0 : index
    %c0_95 = arith.constant 0 : index
    %394 = vector.load %arg11[%c0_94, %c0_95] : memref<8x64xf32, #tpu.memory_space<vmem>>, vector<1x16xf32>
    %c1_96 = arith.constant 1 : index
    %c0_97 = arith.constant 0 : index
    %395 = vector.load %arg11[%c1_96, %c0_97] : memref<8x64xf32, #tpu.memory_space<vmem>>, vector<1x8xf32>
    %c2_98 = arith.constant 2 : index
    %c0_99 = arith.constant 0 : index
    %396 = vector.load %arg11[%c2_98, %c0_99] : memref<8x64xf32, #tpu.memory_space<vmem>>, vector<1x8xf32>
    %c3 = arith.constant 3 : index
    %c0_100 = arith.constant 0 : index
    %397 = vector.load %arg11[%c3, %c0_100] : memref<8x64xf32, #tpu.memory_space<vmem>>, vector<1x1xf32>
    %c0_101 = arith.constant 0 : index
    %c0_102 = arith.constant 0 : index
    %398 = vector.load %arg7[%c0_101, %c0_102] : memref<96x16xbf16, #tpu.memory_space<vmem>>, vector<32x16xbf16>
    %c32_103 = arith.constant 32 : index
    %c0_104 = arith.constant 0 : index
    %399 = vector.load %arg7[%c32_103, %c0_104] : memref<96x16xbf16, #tpu.memory_space<vmem>>, vector<32x16xbf16>
    %c64_105 = arith.constant 64 : index
    %c0_106 = arith.constant 0 : index
    %400 = vector.load %arg7[%c64_105, %c0_106] : memref<96x16xbf16, #tpu.memory_space<vmem>>, vector<32x16xbf16>
    %401 = arith.truncf %393 : vector<2x32xf32> to vector<2x32xbf16>
    %cst_107 = arith.constant dense<0.000000e+00> : vector<2x16xf32>
    %402 = tpu.matmul %401, %398, %cst_107 {dimension_numbers = #tpu.dot_dimension_numbers<[1], [0], [0], [1], [0, 0, 1, 1], [], []>} : vector<2x32xbf16>, vector<32x16xbf16>, vector<2x16xf32> -> vector<2x16xf32>
    %403 = vector.shape_cast %388 : vector<8x2x32xbf16> to vector<16x32xbf16>
    %cst_108 = arith.constant dense<0.000000e+00> : vector<16x16xf32>
    %404 = tpu.matmul %403, %399, %cst_108 {dimension_numbers = #tpu.dot_dimension_numbers<[1], [0], [0], [1], [0, 0, 1, 1], [], []>} : vector<16x32xbf16>, vector<32x16xbf16>, vector<16x16xf32> -> vector<16x16xf32>
    %405 = vector.shape_cast %404 : vector<16x16xf32> to vector<8x2x16xf32>
    %406 = vector.shape_cast %393 : vector<2x32xf32> to vector<1x2x32xf32>
    %407 = vector.broadcast %406 : vector<1x2x32xf32> to vector<8x2x32xf32>
    %408 = arith.mulf %407, %387 : vector<8x2x32xf32>
    %409 = arith.truncf %408 : vector<8x2x32xf32> to vector<8x2x32xbf16>
    %410 = vector.shape_cast %409 : vector<8x2x32xbf16> to vector<16x32xbf16>
    %cst_109 = arith.constant dense<0.000000e+00> : vector<16x16xf32>
    %411 = tpu.matmul %410, %400, %cst_109 {dimension_numbers = #tpu.dot_dimension_numbers<[1], [0], [0], [1], [0, 0, 1, 1], [], []>} : vector<16x32xbf16>, vector<32x16xbf16>, vector<16x16xf32> -> vector<16x16xf32>
    %412 = vector.shape_cast %411 : vector<16x16xf32> to vector<8x2x16xf32>
    %413 = arith.addf %405, %412 : vector<8x2x16xf32>
    %414 = vector.shape_cast %402 : vector<2x16xf32> to vector<1x2x16xf32>
    %415 = vector.broadcast %414 : vector<1x2x16xf32> to vector<8x2x16xf32>
    %416 = arith.addf %413, %415 : vector<8x2x16xf32>
    %417 = vector.shape_cast %394 : vector<1x16xf32> to vector<1x1x16xf32>
    %418 = vector.broadcast %417 : vector<1x1x16xf32> to vector<8x2x16xf32>
    %419 = arith.addf %416, %418 : vector<8x2x16xf32>
    %cst_110 = arith.constant 0.000000e+00 : f32
    %420 = vector.broadcast %cst_110 : f32 to vector<8x2x16xf32>
    %421 = arith.cmpf oge, %419, %420 : vector<8x2x16xf32>
    %cst_111 = arith.constant 2.500000e-01 : f32
    %422 = vector.broadcast %cst_111 : f32 to vector<8x2x16xf32>
    %423 = arith.mulf %422, %419 : vector<8x2x16xf32>
    %424 = arith.select %421, %419, %423 : vector<8x2x16xi1>, vector<8x2x16xf32>
    %425 = vector.shape_cast %424 : vector<8x2x16xf32> to vector<16x16xf32>
    %426 = arith.truncf %425 : vector<16x16xf32> to vector<16x16xbf16>
    %c0_112 = arith.constant 0 : index
    %c0_113 = arith.constant 0 : index
    %427 = vector.load %arg8[%c0_112, %c0_113] : memref<16x8xbf16, #tpu.memory_space<vmem>>, vector<16x8xbf16>
    %cst_114 = arith.constant dense<0.000000e+00> : vector<16x8xf32>
    %428 = tpu.matmul %426, %427, %cst_114 {dimension_numbers = #tpu.dot_dimension_numbers<[1], [0], [0], [1], [0, 0, 1, 1], [], []>} : vector<16x16xbf16>, vector<16x8xbf16>, vector<16x8xf32> -> vector<16x8xf32>
    %429 = vector.broadcast %395 : vector<1x8xf32> to vector<16x8xf32>
    %430 = arith.addf %428, %429 : vector<16x8xf32>
    %cst_115 = arith.constant 0.000000e+00 : f32
    %431 = vector.broadcast %cst_115 : f32 to vector<16x8xf32>
    %432 = arith.cmpf oge, %430, %431 : vector<16x8xf32>
    %cst_116 = arith.constant 2.500000e-01 : f32
    %433 = vector.broadcast %cst_116 : f32 to vector<16x8xf32>
    %434 = arith.mulf %433, %430 : vector<16x8xf32>
    %435 = arith.select %432, %430, %434 : vector<16x8xi1>, vector<16x8xf32>
    %436 = vector.broadcast %396 : vector<1x8xf32> to vector<16x8xf32>
    %437 = arith.mulf %435, %436 : vector<16x8xf32>
    %cst_117 = arith.constant dense<0.000000e+00> : vector<16xf32>
    %438 = vector.multi_reduction <add>, %437, %cst_117 [1] : vector<16x8xf32> to vector<16xf32>
    %439 = vector.shape_cast %438 : vector<16xf32> to vector<16x1xf32>
    %440 = vector.broadcast %397 : vector<1x1xf32> to vector<16x1xf32>
    %441 = arith.addf %439, %440 : vector<16x1xf32>
    %442 = vector.shape_cast %441 : vector<16x1xf32> to vector<8x2x1xf32>
    %cst_118 = arith.constant -1.000000e+30 : f32
    %443 = vector.broadcast %cst_118 : f32 to vector<8x2x1xf32>
    %444 = arith.select %392, %442, %443 : vector<8x2x1xi1>, vector<8x2x1xf32>
    %cst_119 = arith.constant dense<0xFF800000> : vector<2x1xf32>
    %445 = vector.multi_reduction <maximumf>, %444, %cst_119 [0] : vector<8x2x1xf32> to vector<2x1xf32>
    %446 = vector.shape_cast %445 : vector<2x1xf32> to vector<1x2x1xf32>
    %447 = vector.broadcast %446 : vector<1x2x1xf32> to vector<8x2x1xf32>
    %448 = arith.subf %444, %447 : vector<8x2x1xf32>
    %449 = math.exp %448 : vector<8x2x1xf32>
    %cst_120 = arith.constant dense<0.000000e+00> : vector<2x1xf32>
    %450 = vector.multi_reduction <add>, %449, %cst_120 [0] : vector<8x2x1xf32> to vector<2x1xf32>
    %451 = vector.shape_cast %450 : vector<2x1xf32> to vector<1x2x1xf32>
    %452 = tpu.reciprocal %451 {approx = true} : vector<1x2x1xf32> -> vector<1x2x1xf32>
    %453 = vector.broadcast %452 : vector<1x2x1xf32> to vector<8x2x1xf32>
    %454 = arith.mulf %449, %453 : vector<8x2x1xf32>
    %c0_121 = arith.constant 0 : index
    %c0_122 = arith.constant 0 : index
    %c0_123 = arith.constant 0 : index
    %455 = vector.load %arg17[%c0_121, %c0_122, %c0_123] : memref<8x2x1xf32, #tpu.memory_space<vmem>>, vector<8x2x1xf32>
    tpu.vector_store %arg17[%c0_121, %c0_122, %c0_123], %454 {strides = array<i32>} : memref<8x2x1xf32, #tpu.memory_space<vmem>>, vector<8x2x1xf32>,
    %c4 = arith.constant 4 : index
    %c0_124 = arith.constant 0 : index
    %456 = vector.load %arg11[%c4, %c0_124] : memref<8x64xf32, #tpu.memory_space<vmem>>, vector<1x64xf32>
    %c5 = arith.constant 5 : index
    %c0_125 = arith.constant 0 : index
    %457 = vector.load %arg11[%c5, %c0_125] : memref<8x64xf32, #tpu.memory_space<vmem>>, vector<1x32xf32>
    %c6 = arith.constant 6 : index
    %c0_126 = arith.constant 0 : index
    %458 = vector.load %arg11[%c6, %c0_126] : memref<8x64xf32, #tpu.memory_space<vmem>>, vector<1x32xf32>
    %c7 = arith.constant 7 : index
    %c0_127 = arith.constant 0 : index
    %459 = vector.load %arg11[%c7, %c0_127] : memref<8x64xf32, #tpu.memory_space<vmem>>, vector<1x1xf32>
    %c0_128 = arith.constant 0 : index
    %c0_129 = arith.constant 0 : index
    %460 = vector.load %arg9[%c0_128, %c0_129] : memref<64x64xbf16, #tpu.memory_space<vmem>>, vector<32x64xbf16>
    %c32_130 = arith.constant 32 : index
    %c0_131 = arith.constant 0 : index
    %461 = vector.load %arg9[%c32_130, %c0_131] : memref<64x64xbf16, #tpu.memory_space<vmem>>, vector<32x64xbf16>
    %c0_132 = arith.constant 0 : index
    %c0_133 = arith.constant 0 : index
    %462 = vector.load %arg10[%c0_132, %c0_133] : memref<64x32xbf16, #tpu.memory_space<vmem>>, vector<64x32xbf16>
    %463 = vector.extract_strided_slice %388 {offsets = [0, 0, 0], sizes = [7, 2, 32], strides = [1, 1, 1]} : vector<8x2x32xbf16> to vector<7x2x32xbf16>
    %464 = vector.shape_cast %463 : vector<7x2x32xbf16> to vector<14x32xbf16>
    %465 = vector.extract_strided_slice %11 {offsets = [1, 0, 0], sizes = [7, 2, 32], strides = [1, 1, 1]} : vector<8x2x32xbf16> to vector<7x2x32xbf16>
    %466 = vector.shape_cast %465 : vector<7x2x32xbf16> to vector<14x32xbf16>
    %c0_134 = arith.constant 0 : index
    %c0_135 = arith.constant 0 : index
    %c0_136 = arith.constant 0 : index
    %467 = vector.load %arg4[%c0_134, %c0_135, %c0_136] : memref<8x2x32xf32, #tpu.memory_space<vmem>>, vector<8x2x32xf32>
    %468 = vector.extract_strided_slice %467 {offsets = [1, 0, 0], sizes = [7, 2, 32], strides = [1, 1, 1]} : vector<8x2x32xf32> to vector<7x2x32xf32>
    %469 = arith.truncf %468 : vector<7x2x32xf32> to vector<7x2x32xbf16>
    %470 = vector.shape_cast %469 : vector<7x2x32xbf16> to vector<14x32xbf16>
    %cst_137 = arith.constant dense<0.000000e+00> : vector<14x64xf32>
    %471 = tpu.matmul %464, %460, %cst_137 {dimension_numbers = #tpu.dot_dimension_numbers<[1], [0], [0], [1], [0, 0, 1, 1], [], []>} : vector<14x32xbf16>, vector<32x64xbf16>, vector<14x64xf32> -> vector<14x64xf32>
    %cst_138 = arith.constant dense<0.000000e+00> : vector<14x64xf32>
    %472 = tpu.matmul %466, %461, %cst_138 {dimension_numbers = #tpu.dot_dimension_numbers<[1], [0], [0], [1], [0, 0, 1, 1], [], []>} : vector<14x32xbf16>, vector<32x64xbf16>, vector<14x64xf32> -> vector<14x64xf32>
    %cst_139 = arith.constant dense<0.000000e+00> : vector<14x64xf32>
    %473 = tpu.matmul %470, %461, %cst_139 {dimension_numbers = #tpu.dot_dimension_numbers<[1], [0], [0], [1], [0, 0, 1, 1], [], []>} : vector<14x32xbf16>, vector<32x64xbf16>, vector<14x64xf32> -> vector<14x64xf32>
    %474 = arith.addf %471, %472 : vector<14x64xf32>
    %475 = vector.broadcast %456 : vector<1x64xf32> to vector<14x64xf32>
    %476 = arith.addf %474, %475 : vector<14x64xf32>
    %477 = arith.negf %476 : vector<14x64xf32>
    %478 = math.exp %477 : vector<14x64xf32>
    %cst_140 = arith.constant 1.000000e+00 : f32
    %479 = vector.broadcast %cst_140 : f32 to vector<14x64xf32>
    %480 = arith.addf %479, %478 : vector<14x64xf32>
    %481 = arith.divf %479, %480 : vector<14x64xf32>
    %482 = arith.truncf %481 : vector<14x64xf32> to vector<14x64xbf16>
    %cst_141 = arith.constant dense<0.000000e+00> : vector<14x32xf32>
    %483 = tpu.matmul %482, %462, %cst_141 {dimension_numbers = #tpu.dot_dimension_numbers<[1], [0], [0], [1], [0, 0, 1, 1], [], []>} : vector<14x64xbf16>, vector<64x32xbf16>, vector<14x32xf32> -> vector<14x32xf32>
    %484 = vector.broadcast %457 : vector<1x32xf32> to vector<14x32xf32>
    %485 = arith.addf %483, %484 : vector<14x32xf32>
    %486 = arith.negf %485 : vector<14x32xf32>
    %487 = math.exp %486 : vector<14x32xf32>
    %cst_142 = arith.constant 1.000000e+00 : f32
    %488 = vector.broadcast %cst_142 : f32 to vector<14x32xf32>
    %489 = arith.addf %488, %487 : vector<14x32xf32>
    %490 = arith.divf %488, %489 : vector<14x32xf32>
    %491 = vector.broadcast %458 : vector<1x32xf32> to vector<14x32xf32>
    %492 = arith.mulf %490, %491 : vector<14x32xf32>
    %cst_143 = arith.constant dense<0.000000e+00> : vector<14xf32>
    %493 = vector.multi_reduction <add>, %492, %cst_143 [1] : vector<14x32xf32> to vector<14xf32>
    %494 = vector.shape_cast %493 : vector<14xf32> to vector<14x1xf32>
    %495 = vector.broadcast %459 : vector<1x1xf32> to vector<14x1xf32>
    %496 = arith.addf %494, %495 : vector<14x1xf32>
    %497 = arith.negf %496 : vector<14x1xf32>
    %498 = math.exp %497 : vector<14x1xf32>
    %cst_144 = arith.constant 1.000000e+00 : f32
    %499 = vector.broadcast %cst_144 : f32 to vector<14x1xf32>
    %500 = arith.addf %499, %498 : vector<14x1xf32>
    %501 = arith.divf %499, %500 : vector<14x1xf32>
    %502 = vector.shape_cast %501 : vector<14x1xf32> to vector<7x2x1xf32>
    %503 = arith.addf %471, %473 : vector<14x64xf32>
    %504 = vector.broadcast %456 : vector<1x64xf32> to vector<14x64xf32>
    %505 = arith.addf %503, %504 : vector<14x64xf32>
    %506 = arith.negf %505 : vector<14x64xf32>
    %507 = math.exp %506 : vector<14x64xf32>
    %cst_145 = arith.constant 1.000000e+00 : f32
    %508 = vector.broadcast %cst_145 : f32 to vector<14x64xf32>
    %509 = arith.addf %508, %507 : vector<14x64xf32>
    %510 = arith.divf %508, %509 : vector<14x64xf32>
    %511 = arith.truncf %510 : vector<14x64xf32> to vector<14x64xbf16>
    %cst_146 = arith.constant dense<0.000000e+00> : vector<14x32xf32>
    %512 = tpu.matmul %511, %462, %cst_146 {dimension_numbers = #tpu.dot_dimension_numbers<[1], [0], [0], [1], [0, 0, 1, 1], [], []>} : vector<14x64xbf16>, vector<64x32xbf16>, vector<14x32xf32> -> vector<14x32xf32>
    %513 = vector.broadcast %457 : vector<1x32xf32> to vector<14x32xf32>
    %514 = arith.addf %512, %513 : vector<14x32xf32>
    %515 = arith.negf %514 : vector<14x32xf32>
    %516 = math.exp %515 : vector<14x32xf32>
    %cst_147 = arith.constant 1.000000e+00 : f32
    %517 = vector.broadcast %cst_147 : f32 to vector<14x32xf32>
    %518 = arith.addf %517, %516 : vector<14x32xf32>
    %519 = arith.divf %517, %518 : vector<14x32xf32>
    %520 = vector.broadcast %458 : vector<1x32xf32> to vector<14x32xf32>
    %521 = arith.mulf %519, %520 : vector<14x32xf32>
    %cst_148 = arith.constant dense<0.000000e+00> : vector<14xf32>
    %522 = vector.multi_reduction <add>, %521, %cst_148 [1] : vector<14x32xf32> to vector<14xf32>
    %523 = vector.shape_cast %522 : vector<14xf32> to vector<14x1xf32>
    %524 = vector.broadcast %459 : vector<1x1xf32> to vector<14x1xf32>
    %525 = arith.addf %523, %524 : vector<14x1xf32>
    %526 = arith.negf %525 : vector<14x1xf32>
    %527 = math.exp %526 : vector<14x1xf32>
    %cst_149 = arith.constant 1.000000e+00 : f32
    %528 = vector.broadcast %cst_149 : f32 to vector<14x1xf32>
    %529 = arith.addf %528, %527 : vector<14x1xf32>
    %530 = arith.divf %528, %529 : vector<14x1xf32>
    %531 = vector.shape_cast %530 : vector<14x1xf32> to vector<7x2x1xf32>
    %532 = tpu.iota {dimensions = array<i32: 0>} : vector<7x2x1xi32>
    %c1_i32_150 = arith.constant 1 : i32
    %533 = vector.broadcast %c1_i32_150 : i32 to vector<2x1xi32>
    %534 = arith.subi %0, %533 : vector<2x1xi32>
    %535 = vector.shape_cast %534 : vector<2x1xi32> to vector<1x2x1xi32>
    %536 = vector.broadcast %535 : vector<1x2x1xi32> to vector<7x2x1xi32>
    %537 = arith.cmpi slt, %532, %536 : vector<7x2x1xi32>
    %538 = arith.extui %537 : vector<7x2x1xi1> to vector<7x2x1xi32>
    %539 = arith.sitofp %538 : vector<7x2x1xi32> to vector<7x2x1xf32>
    %540 = math.log %502 : vector<7x2x1xf32>
    %cst_151 = arith.constant -1.000000e+02 : f32
    %541 = vector.broadcast %cst_151 : f32 to vector<7x2x1xf32>
    %542 = arith.maximumf %540, %541 : vector<7x2x1xf32>
    %cst_152 = arith.constant 0.000000e+00 : f32
    %543 = vector.broadcast %cst_152 : f32 to vector<7x2x1xf32>
    %544 = arith.subf %543, %542 : vector<7x2x1xf32>
    %cst_153 = arith.constant 1.000000e+00 : f32
    %545 = vector.broadcast %cst_153 : f32 to vector<7x2x1xf32>
    %546 = arith.subf %545, %531 : vector<7x2x1xf32>
    %547 = math.log %546 : vector<7x2x1xf32>
    %cst_154 = arith.constant -1.000000e+02 : f32
    %548 = vector.broadcast %cst_154 : f32 to vector<7x2x1xf32>
    %549 = arith.maximumf %547, %548 : vector<7x2x1xf32>
    %550 = arith.subf %544, %549 : vector<7x2x1xf32>
    %551 = arith.mulf %550, %539 : vector<7x2x1xf32>
    %552 = vector.shape_cast %551 : vector<7x2x1xf32> to vector<1x7x2x1xf32>
    %cst_155 = arith.constant dense<0.000000e+00> : vector<1xf32>
    %553 = vector.multi_reduction <add>, %552, %cst_155 [1, 2, 3] : vector<1x7x2x1xf32> to vector<1xf32>
    %554 = vector.shape_cast %553 : vector<1xf32> to vector<1x1x1x1xf32>
    %555 = vector.extract %554[0, 0, 0, 0] : f32 from vector<1x1x1x1xf32>
    %556 = vector.shape_cast %539 : vector<7x2x1xf32> to vector<1x7x2x1xf32>
    %cst_156 = arith.constant dense<0.000000e+00> : vector<1xf32>
    %557 = vector.multi_reduction <add>, %556, %cst_156 [1, 2, 3] : vector<1x7x2x1xf32> to vector<1xf32>
    %558 = vector.shape_cast %557 : vector<1xf32> to vector<1x1x1x1xf32>
    %559 = vector.extract %558[0, 0, 0, 0] : f32 from vector<1x1x1x1xf32>
    %560 = tpu.iota {dimensions = array<i32: 1>} : vector<1x128xi32>
    %c0_i32_157 = arith.constant 0 : i32
    %561 = vector.broadcast %c0_i32_157 : i32 to vector<1x128xi32>
    %562 = arith.cmpi eq, %560, %561 : vector<1x128xi32>
    %c1_i32_158 = arith.constant 1 : i32
    %563 = vector.broadcast %c1_i32_158 : i32 to vector<1x128xi32>
    %564 = arith.cmpi eq, %560, %563 : vector<1x128xi32>
    %cst_159 = arith.constant 0.000000e+00 : f32
    %565 = vector.broadcast %559 : f32 to vector<1x128xf32>
    %566 = vector.broadcast %cst_159 : f32 to vector<1x128xf32>
    %567 = arith.select %564, %565, %566 : vector<1x128xi1>, vector<1x128xf32>
    %568 = vector.broadcast %555 : f32 to vector<1x128xf32>
    %569 = arith.select %562, %568, %567 : vector<1x128xi1>, vector<1x128xf32>
    %570 = vector.shape_cast %569 : vector<1x128xf32> to vector<1x1x128xf32>
    %c0_160 = arith.constant 0 : index
    %c0_161 = arith.constant 0 : index
    %c0_162 = arith.constant 0 : index
    %571 = vector.load %arg13[%c0_160, %c0_161, %c0_162] : memref<1x1x128xf32, #tpu.memory_space<vmem>>, vector<1x1x128xf32>
    tpu.vector_store %arg13[%c0_160, %c0_161, %c0_162], %570 {strides = array<i32>} : memref<1x1x128xf32, #tpu.memory_space<vmem>>, vector<1x1x128xf32>,
    %572 = vector.shape_cast %388 : vector<8x2x32xbf16> to vector<16x32xbf16>
    %cst_163 = arith.constant dense<0.000000e+00> : vector<16x96xf32>
    %573 = tpu.matmul %572, %3, %cst_163 {dimension_numbers = #tpu.dot_dimension_numbers<[1], [0], [0], [1], [0, 0, 1, 1], [], []>} : vector<16x32xbf16>, vector<32x96xbf16>, vector<16x96xf32> -> vector<16x96xf32>
    %574 = vector.broadcast %9 : vector<1x96xf32> to vector<16x96xf32>
    %575 = arith.addf %573, %574 : vector<16x96xf32>
    %576 = vector.shape_cast %575 : vector<16x96xf32> to vector<8x2x96xf32>
    %c0_164 = arith.constant 0 : index
    %c0_165 = arith.constant 0 : index
    %c0_166 = arith.constant 0 : index
    %577 = vector.load %arg16[%c0_164, %c0_165, %c0_166] : memref<8x2x96xf32, #tpu.memory_space<vmem>>, vector<8x2x96xf32>
    tpu.vector_store %arg16[%c0_164, %c0_165, %c0_166], %576 {strides = array<i32>} : memref<8x2x96xf32, #tpu.memory_space<vmem>>, vector<8x2x96xf32>,
    %cst_167 = arith.constant 0.000000e+00 : f32
    %578 = vector.broadcast %cst_167 : f32 to vector<2x32xf32>
    %c0_i32_168 = arith.constant 0 : i32
    %579 = arith.index_cast %c0_i32_168 : i32 to index
    %c0_169 = arith.constant 0 : index
    %c0_170 = arith.constant 0 : index
    %580 = vector.load %arg16[%579, %c0_169, %c0_170] : memref<8x2x96xf32, #tpu.memory_space<vmem>>, vector<1x2x96xf32>
    %581 = vector.shape_cast %580 : vector<1x2x96xf32> to vector<2x96xf32>
    %582 = arith.truncf %578 : vector<2x32xf32> to vector<2x32xbf16>
    %cst_171 = arith.constant dense<0.000000e+00> : vector<2x64xf32>
    %583 = tpu.matmul %582, %5, %cst_171 {dimension_numbers = #tpu.dot_dimension_numbers<[1], [0], [0], [1], [0, 0, 1, 1], [], []>} : vector<2x32xbf16>, vector<32x64xbf16>, vector<2x64xf32> -> vector<2x64xf32>
    %584 = vector.extract_strided_slice %581 {offsets = [0, 0], sizes = [2, 32], strides = [1, 1]} : vector<2x96xf32> to vector<2x32xf32>
    %585 = vector.extract_strided_slice %583 {offsets = [0, 0], sizes = [2, 32], strides = [1, 1]} : vector<2x64xf32> to vector<2x32xf32>
    %586 = arith.addf %584, %585 : vector<2x32xf32>
    %587 = arith.negf %586 : vector<2x32xf32>
    %588 = math.exp %587 : vector<2x32xf32>
    %cst_172 = arith.constant 1.000000e+00 : f32
    %589 = vector.broadcast %cst_172 : f32 to vector<2x32xf32>
    %590 = arith.addf %589, %588 : vector<2x32xf32>
    %591 = arith.divf %589, %590 : vector<2x32xf32>
    %592 = vector.extract_strided_slice %581 {offsets = [0, 32], sizes = [2, 32], strides = [1, 1]} : vector<2x96xf32> to vector<2x32xf32>
    %593 = vector.extract_strided_slice %583 {offsets = [0, 32], sizes = [2, 32], strides = [1, 1]} : vector<2x64xf32> to vector<2x32xf32>
    %594 = arith.addf %592, %593 : vector<2x32xf32>
    %595 = arith.negf %594 : vector<2x32xf32>
    %596 = math.exp %595 : vector<2x32xf32>
    %cst_173 = arith.constant 1.000000e+00 : f32
    %597 = vector.broadcast %cst_173 : f32 to vector<2x32xf32>
    %598 = arith.addf %597, %596 : vector<2x32xf32>
    %599 = arith.divf %597, %598 : vector<2x32xf32>
    %600 = vector.extract_strided_slice %581 {offsets = [0, 64], sizes = [2, 32], strides = [1, 1]} : vector<2x96xf32> to vector<2x32xf32>
    %601 = arith.mulf %591, %578 : vector<2x32xf32>
    %602 = arith.truncf %601 : vector<2x32xf32> to vector<2x32xbf16>
    %cst_174 = arith.constant dense<0.000000e+00> : vector<2x32xf32>
    %603 = tpu.matmul %602, %6, %cst_174 {dimension_numbers = #tpu.dot_dimension_numbers<[1], [0], [0], [1], [0, 0, 1, 1], [], []>} : vector<2x32xbf16>, vector<32x32xbf16>, vector<2x32xf32> -> vector<2x32xf32>
    %604 = arith.addf %600, %603 : vector<2x32xf32>
    %605 = math.tanh %604 : vector<2x32xf32>
    %606 = arith.index_cast %c0_i32_168 : i32 to index
    %c0_175 = arith.constant 0 : index
    %c0_176 = arith.constant 0 : index
    %607 = vector.load %arg17[%606, %c0_175, %c0_176] : memref<8x2x1xf32, #tpu.memory_space<vmem>>, vector<1x2x1xf32>
    %608 = vector.shape_cast %607 : vector<1x2x1xf32> to vector<2x1xf32>
    %609 = vector.broadcast %608 : vector<2x1xf32> to vector<2x32xf32>
    %610 = arith.mulf %609, %599 : vector<2x32xf32>
    %cst_177 = arith.constant 1.000000e+00 : f32
    %611 = vector.broadcast %cst_177 : f32 to vector<2x32xf32>
    %612 = arith.subf %611, %610 : vector<2x32xf32>
    %613 = arith.mulf %612, %578 : vector<2x32xf32>
    %614 = arith.mulf %610, %605 : vector<2x32xf32>
    %615 = arith.addf %613, %614 : vector<2x32xf32>
    %616 = vector.broadcast %c0_i32_168 : i32 to vector<2x1xi32>
    %617 = arith.cmpi slt, %616, %0 : vector<2x1xi32>
    %618 = vector.shape_cast %617 : vector<2x1xi1> to vector<2x1xi1>
    %619 = vector.broadcast %618 : vector<2x1xi1> to vector<2x32xi1>
    %620 = arith.select %619, %615, %578 : vector<2x32xi1>, vector<2x32xf32>
    %c1_i32_178 = arith.constant 1 : i32
    %621 = arith.index_cast %c1_i32_178 : i32 to index
    %c0_179 = arith.constant 0 : index
    %c0_180 = arith.constant 0 : index
    %622 = vector.load %arg16[%621, %c0_179, %c0_180] : memref<8x2x96xf32, #tpu.memory_space<vmem>>, vector<1x2x96xf32>
    %623 = vector.shape_cast %622 : vector<1x2x96xf32> to vector<2x96xf32>
    %624 = arith.truncf %620 : vector<2x32xf32> to vector<2x32xbf16>
    %cst_181 = arith.constant dense<0.000000e+00> : vector<2x64xf32>
    %625 = tpu.matmul %624, %5, %cst_181 {dimension_numbers = #tpu.dot_dimension_numbers<[1], [0], [0], [1], [0, 0, 1, 1], [], []>} : vector<2x32xbf16>, vector<32x64xbf16>, vector<2x64xf32> -> vector<2x64xf32>
    %626 = vector.extract_strided_slice %623 {offsets = [0, 0], sizes = [2, 32], strides = [1, 1]} : vector<2x96xf32> to vector<2x32xf32>
    %627 = vector.extract_strided_slice %625 {offsets = [0, 0], sizes = [2, 32], strides = [1, 1]} : vector<2x64xf32> to vector<2x32xf32>
    %628 = arith.addf %626, %627 : vector<2x32xf32>
    %629 = arith.negf %628 : vector<2x32xf32>
    %630 = math.exp %629 : vector<2x32xf32>
    %cst_182 = arith.constant 1.000000e+00 : f32
    %631 = vector.broadcast %cst_182 : f32 to vector<2x32xf32>
    %632 = arith.addf %631, %630 : vector<2x32xf32>
    %633 = arith.divf %631, %632 : vector<2x32xf32>
    %634 = vector.extract_strided_slice %623 {offsets = [0, 32], sizes = [2, 32], strides = [1, 1]} : vector<2x96xf32> to vector<2x32xf32>
    %635 = vector.extract_strided_slice %625 {offsets = [0, 32], sizes = [2, 32], strides = [1, 1]} : vector<2x64xf32> to vector<2x32xf32>
    %636 = arith.addf %634, %635 : vector<2x32xf32>
    %637 = arith.negf %636 : vector<2x32xf32>
    %638 = math.exp %637 : vector<2x32xf32>
    %cst_183 = arith.constant 1.000000e+00 : f32
    %639 = vector.broadcast %cst_183 : f32 to vector<2x32xf32>
    %640 = arith.addf %639, %638 : vector<2x32xf32>
    %641 = arith.divf %639, %640 : vector<2x32xf32>
    %642 = vector.extract_strided_slice %623 {offsets = [0, 64], sizes = [2, 32], strides = [1, 1]} : vector<2x96xf32> to vector<2x32xf32>
    %643 = arith.mulf %633, %620 : vector<2x32xf32>
    %644 = arith.truncf %643 : vector<2x32xf32> to vector<2x32xbf16>
    %cst_184 = arith.constant dense<0.000000e+00> : vector<2x32xf32>
    %645 = tpu.matmul %644, %6, %cst_184 {dimension_numbers = #tpu.dot_dimension_numbers<[1], [0], [0], [1], [0, 0, 1, 1], [], []>} : vector<2x32xbf16>, vector<32x32xbf16>, vector<2x32xf32> -> vector<2x32xf32>
    %646 = arith.addf %642, %645 : vector<2x32xf32>
    %647 = math.tanh %646 : vector<2x32xf32>
    %648 = arith.index_cast %c1_i32_178 : i32 to index
    %c0_185 = arith.constant 0 : index
    %c0_186 = arith.constant 0 : index
    %649 = vector.load %arg17[%648, %c0_185, %c0_186] : memref<8x2x1xf32, #tpu.memory_space<vmem>>, vector<1x2x1xf32>
    %650 = vector.shape_cast %649 : vector<1x2x1xf32> to vector<2x1xf32>
    %651 = vector.broadcast %650 : vector<2x1xf32> to vector<2x32xf32>
    %652 = arith.mulf %651, %641 : vector<2x32xf32>
    %cst_187 = arith.constant 1.000000e+00 : f32
    %653 = vector.broadcast %cst_187 : f32 to vector<2x32xf32>
    %654 = arith.subf %653, %652 : vector<2x32xf32>
    %655 = arith.mulf %654, %620 : vector<2x32xf32>
    %656 = arith.mulf %652, %647 : vector<2x32xf32>
    %657 = arith.addf %655, %656 : vector<2x32xf32>
    %658 = vector.broadcast %c1_i32_178 : i32 to vector<2x1xi32>
    %659 = arith.cmpi slt, %658, %0 : vector<2x1xi32>
    %660 = vector.shape_cast %659 : vector<2x1xi1> to vector<2x1xi1>
    %661 = vector.broadcast %660 : vector<2x1xi1> to vector<2x32xi1>
    %662 = arith.select %661, %657, %620 : vector<2x32xi1>, vector<2x32xf32>
    %c2_i32_188 = arith.constant 2 : i32
    %663 = arith.index_cast %c2_i32_188 : i32 to index
    %c0_189 = arith.constant 0 : index
    %c0_190 = arith.constant 0 : index
    %664 = vector.load %arg16[%663, %c0_189, %c0_190] : memref<8x2x96xf32, #tpu.memory_space<vmem>>, vector<1x2x96xf32>
    %665 = vector.shape_cast %664 : vector<1x2x96xf32> to vector<2x96xf32>
    %666 = arith.truncf %662 : vector<2x32xf32> to vector<2x32xbf16>
    %cst_191 = arith.constant dense<0.000000e+00> : vector<2x64xf32>
    %667 = tpu.matmul %666, %5, %cst_191 {dimension_numbers = #tpu.dot_dimension_numbers<[1], [0], [0], [1], [0, 0, 1, 1], [], []>} : vector<2x32xbf16>, vector<32x64xbf16>, vector<2x64xf32> -> vector<2x64xf32>
    %668 = vector.extract_strided_slice %665 {offsets = [0, 0], sizes = [2, 32], strides = [1, 1]} : vector<2x96xf32> to vector<2x32xf32>
    %669 = vector.extract_strided_slice %667 {offsets = [0, 0], sizes = [2, 32], strides = [1, 1]} : vector<2x64xf32> to vector<2x32xf32>
    %670 = arith.addf %668, %669 : vector<2x32xf32>
    %671 = arith.negf %670 : vector<2x32xf32>
    %672 = math.exp %671 : vector<2x32xf32>
    %cst_192 = arith.constant 1.000000e+00 : f32
    %673 = vector.broadcast %cst_192 : f32 to vector<2x32xf32>
    %674 = arith.addf %673, %672 : vector<2x32xf32>
    %675 = arith.divf %673, %674 : vector<2x32xf32>
    %676 = vector.extract_strided_slice %665 {offsets = [0, 32], sizes = [2, 32], strides = [1, 1]} : vector<2x96xf32> to vector<2x32xf32>
    %677 = vector.extract_strided_slice %667 {offsets = [0, 32], sizes = [2, 32], strides = [1, 1]} : vector<2x64xf32> to vector<2x32xf32>
    %678 = arith.addf %676, %677 : vector<2x32xf32>
    %679 = arith.negf %678 : vector<2x32xf32>
    %680 = math.exp %679 : vector<2x32xf32>
    %cst_193 = arith.constant 1.000000e+00 : f32
    %681 = vector.broadcast %cst_193 : f32 to vector<2x32xf32>
    %682 = arith.addf %681, %680 : vector<2x32xf32>
    %683 = arith.divf %681, %682 : vector<2x32xf32>
    %684 = vector.extract_strided_slice %665 {offsets = [0, 64], sizes = [2, 32], strides = [1, 1]} : vector<2x96xf32> to vector<2x32xf32>
    %685 = arith.mulf %675, %662 : vector<2x32xf32>
    %686 = arith.truncf %685 : vector<2x32xf32> to vector<2x32xbf16>
    %cst_194 = arith.constant dense<0.000000e+00> : vector<2x32xf32>
    %687 = tpu.matmul %686, %6, %cst_194 {dimension_numbers = #tpu.dot_dimension_numbers<[1], [0], [0], [1], [0, 0, 1, 1], [], []>} : vector<2x32xbf16>, vector<32x32xbf16>, vector<2x32xf32> -> vector<2x32xf32>
    %688 = arith.addf %684, %687 : vector<2x32xf32>
    %689 = math.tanh %688 : vector<2x32xf32>
    %690 = arith.index_cast %c2_i32_188 : i32 to index
    %c0_195 = arith.constant 0 : index
    %c0_196 = arith.constant 0 : index
    %691 = vector.load %arg17[%690, %c0_195, %c0_196] : memref<8x2x1xf32, #tpu.memory_space<vmem>>, vector<1x2x1xf32>
    %692 = vector.shape_cast %691 : vector<1x2x1xf32> to vector<2x1xf32>
    %693 = vector.broadcast %692 : vector<2x1xf32> to vector<2x32xf32>
    %694 = arith.mulf %693, %683 : vector<2x32xf32>
    %cst_197 = arith.constant 1.000000e+00 : f32
    %695 = vector.broadcast %cst_197 : f32 to vector<2x32xf32>
    %696 = arith.subf %695, %694 : vector<2x32xf32>
    %697 = arith.mulf %696, %662 : vector<2x32xf32>
    %698 = arith.mulf %694, %689 : vector<2x32xf32>
    %699 = arith.addf %697, %698 : vector<2x32xf32>
    %700 = vector.broadcast %c2_i32_188 : i32 to vector<2x1xi32>
    %701 = arith.cmpi slt, %700, %0 : vector<2x1xi32>
    %702 = vector.shape_cast %701 : vector<2x1xi1> to vector<2x1xi1>
    %703 = vector.broadcast %702 : vector<2x1xi1> to vector<2x32xi1>
    %704 = arith.select %703, %699, %662 : vector<2x32xi1>, vector<2x32xf32>
    %c3_i32_198 = arith.constant 3 : i32
    %705 = arith.index_cast %c3_i32_198 : i32 to index
    %c0_199 = arith.constant 0 : index
    %c0_200 = arith.constant 0 : index
    %706 = vector.load %arg16[%705, %c0_199, %c0_200] : memref<8x2x96xf32, #tpu.memory_space<vmem>>, vector<1x2x96xf32>
    %707 = vector.shape_cast %706 : vector<1x2x96xf32> to vector<2x96xf32>
    %708 = arith.truncf %704 : vector<2x32xf32> to vector<2x32xbf16>
    %cst_201 = arith.constant dense<0.000000e+00> : vector<2x64xf32>
    %709 = tpu.matmul %708, %5, %cst_201 {dimension_numbers = #tpu.dot_dimension_numbers<[1], [0], [0], [1], [0, 0, 1, 1], [], []>} : vector<2x32xbf16>, vector<32x64xbf16>, vector<2x64xf32> -> vector<2x64xf32>
    %710 = vector.extract_strided_slice %707 {offsets = [0, 0], sizes = [2, 32], strides = [1, 1]} : vector<2x96xf32> to vector<2x32xf32>
    %711 = vector.extract_strided_slice %709 {offsets = [0, 0], sizes = [2, 32], strides = [1, 1]} : vector<2x64xf32> to vector<2x32xf32>
    %712 = arith.addf %710, %711 : vector<2x32xf32>
    %713 = arith.negf %712 : vector<2x32xf32>
    %714 = math.exp %713 : vector<2x32xf32>
    %cst_202 = arith.constant 1.000000e+00 : f32
    %715 = vector.broadcast %cst_202 : f32 to vector<2x32xf32>
    %716 = arith.addf %715, %714 : vector<2x32xf32>
    %717 = arith.divf %715, %716 : vector<2x32xf32>
    %718 = vector.extract_strided_slice %707 {offsets = [0, 32], sizes = [2, 32], strides = [1, 1]} : vector<2x96xf32> to vector<2x32xf32>
    %719 = vector.extract_strided_slice %709 {offsets = [0, 32], sizes = [2, 32], strides = [1, 1]} : vector<2x64xf32> to vector<2x32xf32>
    %720 = arith.addf %718, %719 : vector<2x32xf32>
    %721 = arith.negf %720 : vector<2x32xf32>
    %722 = math.exp %721 : vector<2x32xf32>
    %cst_203 = arith.constant 1.000000e+00 : f32
    %723 = vector.broadcast %cst_203 : f32 to vector<2x32xf32>
    %724 = arith.addf %723, %722 : vector<2x32xf32>
    %725 = arith.divf %723, %724 : vector<2x32xf32>
    %726 = vector.extract_strided_slice %707 {offsets = [0, 64], sizes = [2, 32], strides = [1, 1]} : vector<2x96xf32> to vector<2x32xf32>
    %727 = arith.mulf %717, %704 : vector<2x32xf32>
    %728 = arith.truncf %727 : vector<2x32xf32> to vector<2x32xbf16>
    %cst_204 = arith.constant dense<0.000000e+00> : vector<2x32xf32>
    %729 = tpu.matmul %728, %6, %cst_204 {dimension_numbers = #tpu.dot_dimension_numbers<[1], [0], [0], [1], [0, 0, 1, 1], [], []>} : vector<2x32xbf16>, vector<32x32xbf16>, vector<2x32xf32> -> vector<2x32xf32>
    %730 = arith.addf %726, %729 : vector<2x32xf32>
    %731 = math.tanh %730 : vector<2x32xf32>
    %732 = arith.index_cast %c3_i32_198 : i32 to index
    %c0_205 = arith.constant 0 : index
    %c0_206 = arith.constant 0 : index
    %733 = vector.load %arg17[%732, %c0_205, %c0_206] : memref<8x2x1xf32, #tpu.memory_space<vmem>>, vector<1x2x1xf32>
    %734 = vector.shape_cast %733 : vector<1x2x1xf32> to vector<2x1xf32>
    %735 = vector.broadcast %734 : vector<2x1xf32> to vector<2x32xf32>
    %736 = arith.mulf %735, %725 : vector<2x32xf32>
    %cst_207 = arith.constant 1.000000e+00 : f32
    %737 = vector.broadcast %cst_207 : f32 to vector<2x32xf32>
    %738 = arith.subf %737, %736 : vector<2x32xf32>
    %739 = arith.mulf %738, %704 : vector<2x32xf32>
    %740 = arith.mulf %736, %731 : vector<2x32xf32>
    %741 = arith.addf %739, %740 : vector<2x32xf32>
    %742 = vector.broadcast %c3_i32_198 : i32 to vector<2x1xi32>
    %743 = arith.cmpi slt, %742, %0 : vector<2x1xi32>
    %744 = vector.shape_cast %743 : vector<2x1xi1> to vector<2x1xi1>
    %745 = vector.broadcast %744 : vector<2x1xi1> to vector<2x32xi1>
    %746 = arith.select %745, %741, %704 : vector<2x32xi1>, vector<2x32xf32>
    %c4_i32_208 = arith.constant 4 : i32
    %747 = arith.index_cast %c4_i32_208 : i32 to index
    %c0_209 = arith.constant 0 : index
    %c0_210 = arith.constant 0 : index
    %748 = vector.load %arg16[%747, %c0_209, %c0_210] : memref<8x2x96xf32, #tpu.memory_space<vmem>>, vector<1x2x96xf32>
    %749 = vector.shape_cast %748 : vector<1x2x96xf32> to vector<2x96xf32>
    %750 = arith.truncf %746 : vector<2x32xf32> to vector<2x32xbf16>
    %cst_211 = arith.constant dense<0.000000e+00> : vector<2x64xf32>
    %751 = tpu.matmul %750, %5, %cst_211 {dimension_numbers = #tpu.dot_dimension_numbers<[1], [0], [0], [1], [0, 0, 1, 1], [], []>} : vector<2x32xbf16>, vector<32x64xbf16>, vector<2x64xf32> -> vector<2x64xf32>
    %752 = vector.extract_strided_slice %749 {offsets = [0, 0], sizes = [2, 32], strides = [1, 1]} : vector<2x96xf32> to vector<2x32xf32>
    %753 = vector.extract_strided_slice %751 {offsets = [0, 0], sizes = [2, 32], strides = [1, 1]} : vector<2x64xf32> to vector<2x32xf32>
    %754 = arith.addf %752, %753 : vector<2x32xf32>
    %755 = arith.negf %754 : vector<2x32xf32>
    %756 = math.exp %755 : vector<2x32xf32>
    %cst_212 = arith.constant 1.000000e+00 : f32
    %757 = vector.broadcast %cst_212 : f32 to vector<2x32xf32>
    %758 = arith.addf %757, %756 : vector<2x32xf32>
    %759 = arith.divf %757, %758 : vector<2x32xf32>
    %760 = vector.extract_strided_slice %749 {offsets = [0, 32], sizes = [2, 32], strides = [1, 1]} : vector<2x96xf32> to vector<2x32xf32>
    %761 = vector.extract_strided_slice %751 {offsets = [0, 32], sizes = [2, 32], strides = [1, 1]} : vector<2x64xf32> to vector<2x32xf32>
    %762 = arith.addf %760, %761 : vector<2x32xf32>
    %763 = arith.negf %762 : vector<2x32xf32>
    %764 = math.exp %763 : vector<2x32xf32>
    %cst_213 = arith.constant 1.000000e+00 : f32
    %765 = vector.broadcast %cst_213 : f32 to vector<2x32xf32>
    %766 = arith.addf %765, %764 : vector<2x32xf32>
    %767 = arith.divf %765, %766 : vector<2x32xf32>
    %768 = vector.extract_strided_slice %749 {offsets = [0, 64], sizes = [2, 32], strides = [1, 1]} : vector<2x96xf32> to vector<2x32xf32>
    %769 = arith.mulf %759, %746 : vector<2x32xf32>
    %770 = arith.truncf %769 : vector<2x32xf32> to vector<2x32xbf16>
    %cst_214 = arith.constant dense<0.000000e+00> : vector<2x32xf32>
    %771 = tpu.matmul %770, %6, %cst_214 {dimension_numbers = #tpu.dot_dimension_numbers<[1], [0], [0], [1], [0, 0, 1, 1], [], []>} : vector<2x32xbf16>, vector<32x32xbf16>, vector<2x32xf32> -> vector<2x32xf32>
    %772 = arith.addf %768, %771 : vector<2x32xf32>
    %773 = math.tanh %772 : vector<2x32xf32>
    %774 = arith.index_cast %c4_i32_208 : i32 to index
    %c0_215 = arith.constant 0 : index
    %c0_216 = arith.constant 0 : index
    %775 = vector.load %arg17[%774, %c0_215, %c0_216] : memref<8x2x1xf32, #tpu.memory_space<vmem>>, vector<1x2x1xf32>
    %776 = vector.shape_cast %775 : vector<1x2x1xf32> to vector<2x1xf32>
    %777 = vector.broadcast %776 : vector<2x1xf32> to vector<2x32xf32>
    %778 = arith.mulf %777, %767 : vector<2x32xf32>
    %cst_217 = arith.constant 1.000000e+00 : f32
    %779 = vector.broadcast %cst_217 : f32 to vector<2x32xf32>
    %780 = arith.subf %779, %778 : vector<2x32xf32>
    %781 = arith.mulf %780, %746 : vector<2x32xf32>
    %782 = arith.mulf %778, %773 : vector<2x32xf32>
    %783 = arith.addf %781, %782 : vector<2x32xf32>
    %784 = vector.broadcast %c4_i32_208 : i32 to vector<2x1xi32>
    %785 = arith.cmpi slt, %784, %0 : vector<2x1xi32>
    %786 = vector.shape_cast %785 : vector<2x1xi1> to vector<2x1xi1>
    %787 = vector.broadcast %786 : vector<2x1xi1> to vector<2x32xi1>
    %788 = arith.select %787, %783, %746 : vector<2x32xi1>, vector<2x32xf32>
    %c5_i32_218 = arith.constant 5 : i32
    %789 = arith.index_cast %c5_i32_218 : i32 to index
    %c0_219 = arith.constant 0 : index
    %c0_220 = arith.constant 0 : index
    %790 = vector.load %arg16[%789, %c0_219, %c0_220] : memref<8x2x96xf32, #tpu.memory_space<vmem>>, vector<1x2x96xf32>
    %791 = vector.shape_cast %790 : vector<1x2x96xf32> to vector<2x96xf32>
    %792 = arith.truncf %788 : vector<2x32xf32> to vector<2x32xbf16>
    %cst_221 = arith.constant dense<0.000000e+00> : vector<2x64xf32>
    %793 = tpu.matmul %792, %5, %cst_221 {dimension_numbers = #tpu.dot_dimension_numbers<[1], [0], [0], [1], [0, 0, 1, 1], [], []>} : vector<2x32xbf16>, vector<32x64xbf16>, vector<2x64xf32> -> vector<2x64xf32>
    %794 = vector.extract_strided_slice %791 {offsets = [0, 0], sizes = [2, 32], strides = [1, 1]} : vector<2x96xf32> to vector<2x32xf32>
    %795 = vector.extract_strided_slice %793 {offsets = [0, 0], sizes = [2, 32], strides = [1, 1]} : vector<2x64xf32> to vector<2x32xf32>
    %796 = arith.addf %794, %795 : vector<2x32xf32>
    %797 = arith.negf %796 : vector<2x32xf32>
    %798 = math.exp %797 : vector<2x32xf32>
    %cst_222 = arith.constant 1.000000e+00 : f32
    %799 = vector.broadcast %cst_222 : f32 to vector<2x32xf32>
    %800 = arith.addf %799, %798 : vector<2x32xf32>
    %801 = arith.divf %799, %800 : vector<2x32xf32>
    %802 = vector.extract_strided_slice %791 {offsets = [0, 32], sizes = [2, 32], strides = [1, 1]} : vector<2x96xf32> to vector<2x32xf32>
    %803 = vector.extract_strided_slice %793 {offsets = [0, 32], sizes = [2, 32], strides = [1, 1]} : vector<2x64xf32> to vector<2x32xf32>
    %804 = arith.addf %802, %803 : vector<2x32xf32>
    %805 = arith.negf %804 : vector<2x32xf32>
    %806 = math.exp %805 : vector<2x32xf32>
    %cst_223 = arith.constant 1.000000e+00 : f32
    %807 = vector.broadcast %cst_223 : f32 to vector<2x32xf32>
    %808 = arith.addf %807, %806 : vector<2x32xf32>
    %809 = arith.divf %807, %808 : vector<2x32xf32>
    %810 = vector.extract_strided_slice %791 {offsets = [0, 64], sizes = [2, 32], strides = [1, 1]} : vector<2x96xf32> to vector<2x32xf32>
    %811 = arith.mulf %801, %788 : vector<2x32xf32>
    %812 = arith.truncf %811 : vector<2x32xf32> to vector<2x32xbf16>
    %cst_224 = arith.constant dense<0.000000e+00> : vector<2x32xf32>
    %813 = tpu.matmul %812, %6, %cst_224 {dimension_numbers = #tpu.dot_dimension_numbers<[1], [0], [0], [1], [0, 0, 1, 1], [], []>} : vector<2x32xbf16>, vector<32x32xbf16>, vector<2x32xf32> -> vector<2x32xf32>
    %814 = arith.addf %810, %813 : vector<2x32xf32>
    %815 = math.tanh %814 : vector<2x32xf32>
    %816 = arith.index_cast %c5_i32_218 : i32 to index
    %c0_225 = arith.constant 0 : index
    %c0_226 = arith.constant 0 : index
    %817 = vector.load %arg17[%816, %c0_225, %c0_226] : memref<8x2x1xf32, #tpu.memory_space<vmem>>, vector<1x2x1xf32>
    %818 = vector.shape_cast %817 : vector<1x2x1xf32> to vector<2x1xf32>
    %819 = vector.broadcast %818 : vector<2x1xf32> to vector<2x32xf32>
    %820 = arith.mulf %819, %809 : vector<2x32xf32>
    %cst_227 = arith.constant 1.000000e+00 : f32
    %821 = vector.broadcast %cst_227 : f32 to vector<2x32xf32>
    %822 = arith.subf %821, %820 : vector<2x32xf32>
    %823 = arith.mulf %822, %788 : vector<2x32xf32>
    %824 = arith.mulf %820, %815 : vector<2x32xf32>
    %825 = arith.addf %823, %824 : vector<2x32xf32>
    %826 = vector.broadcast %c5_i32_218 : i32 to vector<2x1xi32>
    %827 = arith.cmpi slt, %826, %0 : vector<2x1xi32>
    %828 = vector.shape_cast %827 : vector<2x1xi1> to vector<2x1xi1>
    %829 = vector.broadcast %828 : vector<2x1xi1> to vector<2x32xi1>
    %830 = arith.select %829, %825, %788 : vector<2x32xi1>, vector<2x32xf32>
    %c6_i32_228 = arith.constant 6 : i32
    %831 = arith.index_cast %c6_i32_228 : i32 to index
    %c0_229 = arith.constant 0 : index
    %c0_230 = arith.constant 0 : index
    %832 = vector.load %arg16[%831, %c0_229, %c0_230] : memref<8x2x96xf32, #tpu.memory_space<vmem>>, vector<1x2x96xf32>
    %833 = vector.shape_cast %832 : vector<1x2x96xf32> to vector<2x96xf32>
    %834 = arith.truncf %830 : vector<2x32xf32> to vector<2x32xbf16>
    %cst_231 = arith.constant dense<0.000000e+00> : vector<2x64xf32>
    %835 = tpu.matmul %834, %5, %cst_231 {dimension_numbers = #tpu.dot_dimension_numbers<[1], [0], [0], [1], [0, 0, 1, 1], [], []>} : vector<2x32xbf16>, vector<32x64xbf16>, vector<2x64xf32> -> vector<2x64xf32>
    %836 = vector.extract_strided_slice %833 {offsets = [0, 0], sizes = [2, 32], strides = [1, 1]} : vector<2x96xf32> to vector<2x32xf32>
    %837 = vector.extract_strided_slice %835 {offsets = [0, 0], sizes = [2, 32], strides = [1, 1]} : vector<2x64xf32> to vector<2x32xf32>
    %838 = arith.addf %836, %837 : vector<2x32xf32>
    %839 = arith.negf %838 : vector<2x32xf32>
    %840 = math.exp %839 : vector<2x32xf32>
    %cst_232 = arith.constant 1.000000e+00 : f32
    %841 = vector.broadcast %cst_232 : f32 to vector<2x32xf32>
    %842 = arith.addf %841, %840 : vector<2x32xf32>
    %843 = arith.divf %841, %842 : vector<2x32xf32>
    %844 = vector.extract_strided_slice %833 {offsets = [0, 32], sizes = [2, 32], strides = [1, 1]} : vector<2x96xf32> to vector<2x32xf32>
    %845 = vector.extract_strided_slice %835 {offsets = [0, 32], sizes = [2, 32], strides = [1, 1]} : vector<2x64xf32> to vector<2x32xf32>
    %846 = arith.addf %844, %845 : vector<2x32xf32>
    %847 = arith.negf %846 : vector<2x32xf32>
    %848 = math.exp %847 : vector<2x32xf32>
    %cst_233 = arith.constant 1.000000e+00 : f32
    %849 = vector.broadcast %cst_233 : f32 to vector<2x32xf32>
    %850 = arith.addf %849, %848 : vector<2x32xf32>
    %851 = arith.divf %849, %850 : vector<2x32xf32>
    %852 = vector.extract_strided_slice %833 {offsets = [0, 64], sizes = [2, 32], strides = [1, 1]} : vector<2x96xf32> to vector<2x32xf32>
    %853 = arith.mulf %843, %830 : vector<2x32xf32>
    %854 = arith.truncf %853 : vector<2x32xf32> to vector<2x32xbf16>
    %cst_234 = arith.constant dense<0.000000e+00> : vector<2x32xf32>
    %855 = tpu.matmul %854, %6, %cst_234 {dimension_numbers = #tpu.dot_dimension_numbers<[1], [0], [0], [1], [0, 0, 1, 1], [], []>} : vector<2x32xbf16>, vector<32x32xbf16>, vector<2x32xf32> -> vector<2x32xf32>
    %856 = arith.addf %852, %855 : vector<2x32xf32>
    %857 = math.tanh %856 : vector<2x32xf32>
    %858 = arith.index_cast %c6_i32_228 : i32 to index
    %c0_235 = arith.constant 0 : index
    %c0_236 = arith.constant 0 : index
    %859 = vector.load %arg17[%858, %c0_235, %c0_236] : memref<8x2x1xf32, #tpu.memory_space<vmem>>, vector<1x2x1xf32>
    %860 = vector.shape_cast %859 : vector<1x2x1xf32> to vector<2x1xf32>
    %861 = vector.broadcast %860 : vector<2x1xf32> to vector<2x32xf32>
    %862 = arith.mulf %861, %851 : vector<2x32xf32>
    %cst_237 = arith.constant 1.000000e+00 : f32
    %863 = vector.broadcast %cst_237 : f32 to vector<2x32xf32>
    %864 = arith.subf %863, %862 : vector<2x32xf32>
    %865 = arith.mulf %864, %830 : vector<2x32xf32>
    %866 = arith.mulf %862, %857 : vector<2x32xf32>
    %867 = arith.addf %865, %866 : vector<2x32xf32>
    %868 = vector.broadcast %c6_i32_228 : i32 to vector<2x1xi32>
    %869 = arith.cmpi slt, %868, %0 : vector<2x1xi32>
    %870 = vector.shape_cast %869 : vector<2x1xi1> to vector<2x1xi1>
    %871 = vector.broadcast %870 : vector<2x1xi1> to vector<2x32xi1>
    %872 = arith.select %871, %867, %830 : vector<2x32xi1>, vector<2x32xf32>
    %c7_i32_238 = arith.constant 7 : i32
    %873 = arith.index_cast %c7_i32_238 : i32 to index
    %c0_239 = arith.constant 0 : index
    %c0_240 = arith.constant 0 : index
    %874 = vector.load %arg16[%873, %c0_239, %c0_240] : memref<8x2x96xf32, #tpu.memory_space<vmem>>, vector<1x2x96xf32>
    %875 = vector.shape_cast %874 : vector<1x2x96xf32> to vector<2x96xf32>
    %876 = arith.truncf %872 : vector<2x32xf32> to vector<2x32xbf16>
    %cst_241 = arith.constant dense<0.000000e+00> : vector<2x64xf32>
    %877 = tpu.matmul %876, %5, %cst_241 {dimension_numbers = #tpu.dot_dimension_numbers<[1], [0], [0], [1], [0, 0, 1, 1], [], []>} : vector<2x32xbf16>, vector<32x64xbf16>, vector<2x64xf32> -> vector<2x64xf32>
    %878 = vector.extract_strided_slice %875 {offsets = [0, 0], sizes = [2, 32], strides = [1, 1]} : vector<2x96xf32> to vector<2x32xf32>
    %879 = vector.extract_strided_slice %877 {offsets = [0, 0], sizes = [2, 32], strides = [1, 1]} : vector<2x64xf32> to vector<2x32xf32>
    %880 = arith.addf %878, %879 : vector<2x32xf32>
    %881 = arith.negf %880 : vector<2x32xf32>
    %882 = math.exp %881 : vector<2x32xf32>
    %cst_242 = arith.constant 1.000000e+00 : f32
    %883 = vector.broadcast %cst_242 : f32 to vector<2x32xf32>
    %884 = arith.addf %883, %882 : vector<2x32xf32>
    %885 = arith.divf %883, %884 : vector<2x32xf32>
    %886 = vector.extract_strided_slice %875 {offsets = [0, 32], sizes = [2, 32], strides = [1, 1]} : vector<2x96xf32> to vector<2x32xf32>
    %887 = vector.extract_strided_slice %877 {offsets = [0, 32], sizes = [2, 32], strides = [1, 1]} : vector<2x64xf32> to vector<2x32xf32>
    %888 = arith.addf %886, %887 : vector<2x32xf32>
    %889 = arith.negf %888 : vector<2x32xf32>
    %890 = math.exp %889 : vector<2x32xf32>
    %cst_243 = arith.constant 1.000000e+00 : f32
    %891 = vector.broadcast %cst_243 : f32 to vector<2x32xf32>
    %892 = arith.addf %891, %890 : vector<2x32xf32>
    %893 = arith.divf %891, %892 : vector<2x32xf32>
    %894 = vector.extract_strided_slice %875 {offsets = [0, 64], sizes = [2, 32], strides = [1, 1]} : vector<2x96xf32> to vector<2x32xf32>
    %895 = arith.mulf %885, %872 : vector<2x32xf32>
    %896 = arith.truncf %895 : vector<2x32xf32> to vector<2x32xbf16>
    %cst_244 = arith.constant dense<0.000000e+00> : vector<2x32xf32>
    %897 = tpu.matmul %896, %6, %cst_244 {dimension_numbers = #tpu.dot_dimension_numbers<[1], [0], [0], [1], [0, 0, 1, 1], [], []>} : vector<2x32xbf16>, vector<32x32xbf16>, vector<2x32xf32> -> vector<2x32xf32>
    %898 = arith.addf %894, %897 : vector<2x32xf32>
    %899 = math.tanh %898 : vector<2x32xf32>
    %900 = arith.index_cast %c7_i32_238 : i32 to index
    %c0_245 = arith.constant 0 : index
    %c0_246 = arith.constant 0 : index
    %901 = vector.load %arg17[%900, %c0_245, %c0_246] : memref<8x2x1xf32, #tpu.memory_space<vmem>>, vector<1x2x1xf32>
    %902 = vector.shape_cast %901 : vector<1x2x1xf32> to vector<2x1xf32>
    %903 = vector.broadcast %902 : vector<2x1xf32> to vector<2x32xf32>
    %904 = arith.mulf %903, %893 : vector<2x32xf32>
    %cst_247 = arith.constant 1.000000e+00 : f32
    %905 = vector.broadcast %cst_247 : f32 to vector<2x32xf32>
    %906 = arith.subf %905, %904 : vector<2x32xf32>
    %907 = arith.mulf %906, %872 : vector<2x32xf32>
    %908 = arith.mulf %904, %899 : vector<2x32xf32>
    %909 = arith.addf %907, %908 : vector<2x32xf32>
    %910 = vector.broadcast %c7_i32_238 : i32 to vector<2x1xi32>
    %911 = arith.cmpi slt, %910, %0 : vector<2x1xi32>
    %912 = vector.shape_cast %911 : vector<2x1xi1> to vector<2x1xi1>
    %913 = vector.broadcast %912 : vector<2x1xi1> to vector<2x32xi1>
    %914 = arith.select %913, %909, %872 : vector<2x32xi1>, vector<2x32xf32>
    %c8_i32_248 = arith.constant 8 : i32
    %c0_249 = arith.constant 0 : index
    %c0_250 = arith.constant 0 : index
    %915 = vector.load %arg12[%c0_249, %c0_250] : memref<2x32xf32, #tpu.memory_space<vmem>>, vector<2x32xf32>
    tpu.vector_store %arg12[%c0_249, %c0_250], %914 {strides = array<i32>} : memref<2x32xf32, #tpu.memory_space<vmem>>, vector<2x32xf32>,
    return
  }
  func.func @transform_0(%arg0: i32) -> (i32, i32) {
    %c0_i32 = arith.constant 0 : i32
    %c0_i32_0 = arith.constant 0 : i32
    return %arg0, %c0_i32 : i32, i32
  }
  func.func @transform_1(%arg0: i32) -> (i32, i32) {
    %c0_i32 = arith.constant 0 : i32
    %c0_i32_0 = arith.constant 0 : i32
    return %arg0, %c0_i32 : i32, i32
  }
  func.func @transform_2(%arg0: i32) -> (i32, i32, i32) {
    %c0_i32 = arith.constant 0 : i32
    %c0_i32_0 = arith.constant 0 : i32
    %c0_i32_1 = arith.constant 0 : i32
    return %c0_i32, %arg0, %c0_i32_0 : i32, i32, i32
  }
  func.func @transform_3(%arg0: i32) -> (i32, i32, i32) {
    %c0_i32 = arith.constant 0 : i32
    %c0_i32_0 = arith.constant 0 : i32
    %c0_i32_1 = arith.constant 0 : i32
    return %c0_i32, %arg0, %c0_i32_0 : i32, i32, i32
  }
  func.func @transform_4(%arg0: i32) -> (i32, i32) {
    %c0_i32 = arith.constant 0 : i32
    %c0_i32_0 = arith.constant 0 : i32
    %c0_i32_1 = arith.constant 0 : i32
    return %c0_i32, %c0_i32_0 : i32, i32
  }
  func.func @transform_5(%arg0: i32) -> (i32, i32) {
    %c0_i32 = arith.constant 0 : i32
    %c0_i32_0 = arith.constant 0 : i32
    %c0_i32_1 = arith.constant 0 : i32
    return %c0_i32, %c0_i32_0 : i32, i32
  }
  func.func @transform_6(%arg0: i32) -> (i32, i32) {
    %c0_i32 = arith.constant 0 : i32
    %c0_i32_0 = arith.constant 0 : i32
    %c0_i32_1 = arith.constant 0 : i32
    return %c0_i32, %c0_i32_0 : i32, i32
  }
  func.func @transform_7(%arg0: i32) -> (i32, i32) {
    %c0_i32 = arith.constant 0 : i32
    %c0_i32_0 = arith.constant 0 : i32
    %c0_i32_1 = arith.constant 0 : i32
    return %c0_i32, %c0_i32_0 : i32, i32
  }
  func.func @transform_8(%arg0: i32) -> (i32, i32) {
    %c0_i32 = arith.constant 0 : i32
    %c0_i32_0 = arith.constant 0 : i32
    %c0_i32_1 = arith.constant 0 : i32
    return %c0_i32, %c0_i32_0 : i32, i32
  }
  func.func @transform_9(%arg0: i32) -> (i32, i32) {
    %c0_i32 = arith.constant 0 : i32
    %c0_i32_0 = arith.constant 0 : i32
    %c0_i32_1 = arith.constant 0 : i32
    return %c0_i32, %c0_i32_0 : i32, i32
  }
  func.func @transform_10(%arg0: i32) -> (i32, i32) {
    %c0_i32 = arith.constant 0 : i32
    %c0_i32_0 = arith.constant 0 : i32
    %c0_i32_1 = arith.constant 0 : i32
    return %c0_i32, %c0_i32_0 : i32, i32
  }
  func.func @transform_11(%arg0: i32) -> (i32, i32) {
    %c0_i32 = arith.constant 0 : i32
    %c0_i32_0 = arith.constant 0 : i32
    return %arg0, %c0_i32 : i32, i32
  }
  func.func @transform_12(%arg0: i32) -> (i32, i32, i32) {
    %c0_i32 = arith.constant 0 : i32
    %c0_i32_0 = arith.constant 0 : i32
    %c0_i32_1 = arith.constant 0 : i32
    return %arg0, %c0_i32, %c0_i32_0 : i32, i32, i32
  }
}

</mosaic_0001>

<bundles_post_ra>
// kernel: interest_forward.1
= control target key start
LH: loop header
LB: loop body
LE: loop exit
PB: predicated region body
PF: predicated region fallthrough
CT: control target
= control target key end

     0   :  { %v4393_v1 = vmov 0.0   ;;  %vm4394_vm0 = vmmov 0   ;;  %v97_v5 = vlaneseq  ;;  %v4395_v9 = vmov 0   ;;  %s5407_s0 = inlined_call_operand.vmem [shape: s32[2,1], index: 0, kind: input, shape index: {}]   ;;  %s5408_s1 = inlined_call_operand.vmem [shape: f32[2,32], index: 1, kind: input, shape index: {}]   ;;  %s5409_s2 = inlined_call_operand.vmem [shape: f32[8,2,32], index: 2, kind: input, shape index: {}]   ;;  %s5410_s3 = inlined_call_operand.vmem [shape: f32[8,2,32], index: 3, kind: input, shape index: {}]   ;;  %s5411_s4 = inlined_call_operand.vmem [shape: bf16[128,96], index: 4, kind: input, shape index: {}]   ;;  %s5412_s5 = inlined_call_operand.vmem [shape: f32[3,96], index: 5, kind: input, shape index: {}]   ;;  %s5413_s6 = inlined_call_operand.vmem [shape: bf16[96,16], index: 6, kind: input, shape index: {}]   ;;  %s5414_s7 = inlined_call_operand.vmem [shape: bf16[16,8], index: 7, kind: input, shape index: {}]   ;;  %s5415_s8 = inlined_call_operand.vmem [shape: bf16[64,64], index: 8, kind: input, shape index: {}]   ;;  %s5416_s9 = inlined_call_operand.vmem [shape: bf16[64,32], index: 9, kind: input, shape index: {}]   ;;  %s5417_s10 = inlined_call_operand.vmem [shape: f32[8,64], index: 10, kind: input, shape index: {}]   ;;  %s5418_s11 = inlined_call_operand.hbm [shape: f32[2,32], index: 11, kind: output, shape index: {0}]   ;;  %s5419_s12 = inlined_call_operand.vmem [shape: f32[1,1,128], index: 12, kind: output, shape index: {1}]  }
   0x1   :  { %v4469_v0 = vld [vmem:[%s5411_s4 + $0x10] sm:$0xff]   ;;  %3860 = vmatprep.subr.bf16.mxu1 %v4393_v1  ;;  %3852 = vmatprep.subr.bf16.mxu0 %v4393_v1  ;;  %v4476_v2 = vld [vmem:[%s5411_s4 + $0x18] sm:$0xff]   ;;  %v4154_v3 = vld [vmem:[%s5411_s4] sm:$0xff]   ;;  %v4396_v17 = vmov 1966171168   ;;  %vm151_vm1 = vcmask 261120  }
   0x2   :  { %3861 = vmatpush3.bf16.msra.mxu1 %v4469_v0  ;;  %3864 = vmatprep.mubr.msk.bf16.mxu1 %vm4394_vm0, %v4393_v1  ;;  %v4155_v4 = vld [vmem:[%s5411_s4 + $0x8] sm:$0xff]   ;;  %v62_v6 = vld [vmem:[%s5409_s2] sm:$0x3]  ;;  %v4496_v7 = vld [vmem:[%s5409_s2 + $0x2] sm:$0x3]  ;;  %v95_v18 = vunpack.c.l.s4 %v4396_v17  ;;  %v98_v19 = vshrl.u32 %v97_v5, 7 }
   0x3   :  { %3862 = vmatprep.subr.bf16.mxu1 %v4393_v1  ;;  %3856 = vmatprep.mubr.msk.bf16.mxu0 %vm4394_vm0, %v4393_v1  ;;  %v4501_v8 = vld [vmem:[%s5409_s2 + $0x4] sm:$0x3]  ;;  %v4508_v10 = vld [vmem:[%s5409_s2 + $0x6] sm:$0x3]  ;;  %v4513_v11 = vld [vmem:[%s5409_s2 + $0x8] sm:$0x3]  ;;  %v3624_v20 = vpack.c.bf16 %v4496_v7, %v62_v6 }
   0x4   :  { %3853 = vmatpush3.bf16.msra.mxu0 %v4154_v3  ;;  %4150 = vset.pattern.permute.xlu1 %v4395_v9  ;;  %v4518_v12 = vld [vmem:[%s5409_s2 + $0xa] sm:$0x3]  ;;  %v3675_v13 = vpack.c.bf16 %v4501_v8, %v4496_v7  ;;  %v4527_v14 = vld [vmem:[%s5409_s2 + $0xc] sm:$0x3]  ;;  %v69_v15 = vld [vmem:[%s5409_s2 + $0xe] sm:$0x3]  ;;  %v3676_v16 = vpack.c.bf16 %v4513_v11, %v4508_v10  ;;  %v3625_v22 = vpack.c.bf16 %v4508_v10, %v4501_v8  ;;  %v96_v25 = vunpack.c.0.s8 %v95_v18 }
   0x5   :  { %3854 = vmatprep.subr.bf16.mxu0 %v4393_v1  ;;  %4151 = vset.pattern.permute.xlu0 %v4395_v9  ;;  %v3677_v21 = vpack.c.bf16 %v4527_v14, %v4518_v12  ;;  %v3626_v23 = vpack.c.bf16 %v4518_v12, %v4513_v11  ;;  %v3627_v24 = vpack.c.bf16 %v69_v15, %v4527_v14 }
   0x6   :  { %3863 = vmatpush3.bf16.msra.mxu1 %v4476_v2  ;;  %v4549_v26 = vsub.s32 %v96_v25, %v98_v19 }
   0x7   :  { %3876 = vmatprep.subr.bf16.mxu1 %v4393_v1 }
   0x8   :  { %3855 = vmatpush3.bf16.msra.mxu0 %v4155_v4  ;;  %v100_v27 = vrot.slane %v3624_v20, %v4549_v26  ;;  %v107_v28 = vrot.slane %v3625_v22, %v4549_v26  ;;  %v114_v29 = vrot.slane %v3626_v23, %v4549_v26  ;;  %v121_v30 = vrot.slane %v3627_v24, %v4549_v26 }
   0x9   :  { %3865 = vmatmul.mubr.bf16.vlgmr.msra.gmra.mrb[0].mxu1 %v4395_v9  ;;  %3868 = vmatprep.subr.bf16.mxu0 %v4393_v1 }
   0xa   :  { %3877 = vmatpush3.bf16.msra.mxu1 %v4469_v0  ;;  %3880 = vmatprep.mubr.msk.bf16.mxu1 %vm4394_vm0, %v4393_v1  ;;  %v122_v31 = vcombine.low %v100_v27, %v107_v28  ;;  %v123_v32 = vcombine.low %v114_v29, %v121_v30 }
   0xb   :  { %3878 = vmatprep.subr.bf16.mxu1 %v4393_v1 }
   0xc   :  { %v130_v33 = vrot.slane %v122_v31, %v4549_v26  ;;  %v137_v34 = vrot.slane %v123_v32, %v4549_v26 }
   0xe   :  { %3879 = vmatpush3.bf16.msra.mxu1 %v4476_v2  ;;  %v138_v35 = vcombine.low %v130_v33, %v137_v34 }
   0xf   :  { %3892 = vmatprep.subr.bf16.mxu1 %v4393_v1 }
  0x10   :  { %18 = vsyncpa [#allocation7], 0  ;;  %3857 = vmatmul.mubr.msk.bf16.vlgmr.msra.gmra.mrb[0].mxu0 %vm151_vm1, %v138_v35  ;;  %v4570_v36 = vld [vmem:[%s5407_s0] sm:$0x3]  ;;  %s4397_s13 = smov 64   ;;  %vm5421_vm3 = vcmask 779264  }
  0x11   :  { %3869 = vmatpush3.bf16.msra.mxu0 %v4469_v0  ;;  %3872 = vmatprep.mubr.msk.bf16.mxu0 %vm4394_vm0, %v4393_v1  ;;  %vm335_vm2 = vcmp.gt.s32.totalorder %v4570_v36, 0  ;;  %v4579_v38 = vld [vmem:[%s5412_s5 + $0x1] ss:$0 sm:$0xff]  ;;  %v4398_v44 = vmov 1983009808   ;;  %s4399_s16 = smov 96  }
  0x12   :  { %3870 = vmatprep.subr.bf16.mxu0 %v4393_v1  ;;  %v336_v37 = vsel %vm335_vm2, 1, %v4395_v9  ;;  %v200_v45 = vunpack.c.l.s4 %v4398_v44  ;;  %v3623_v47 = vld [vmem:[%s5412_s5] ss:$0 sm:$0xff]  ;;  %vm423_vm5 = vcmp.gt.s32.totalorder %v4570_v36, 1  ;;  %vm512_vm7 = vcmp.gt.s32.totalorder %v4570_v36, 2  ;;  %v4953_v11 = vld [vmem:[%s5416_s9 + $0x8] sm:$0xff]  }
  0x13   :  { %338 = vperm.xlu1 %4150, %v336_v37   ;;  %vm601_vm9 = vcmp.gt.s32.totalorder %v4570_v36, 3  ;;  %vm690_vm11 = vcmp.gt.s32.totalorder %v4570_v36, 4  ;;  %vm5431_vm13 = vcmp.gt.s32.totalorder %v4570_v36, 5  ;;  %vm868_vm15 = vcmp.gt.s32.totalorder %v4570_v36, 6  ;;  %v4947_v10 = vld [vmem:[%s5416_s9] sm:$0xff]   ;;  %v4960_v12 = vld [vmem:[%s5416_s9 + $0x10] sm:$0xff]  }
  0x14   :  { %v201_v46 = vunpack.c.0.s8 %v200_v45  ;;  %v4973_v14 = vld [vmem:[%s5411_s4 + $0x38] sm:$0xff]  }
  0x15   :  { %3871 = vmatpush3.bf16.msra.mxu0 %v4476_v2 }
  0x16   :  { %3884 = vmatprep.subr.bf16.mxu0 %v4393_v1  ;;  %v4586_v48 = vsub.s32 %v201_v46, %v98_v19 }
  0x92   :  { %v4602_v27 = vpop.permute.xlu1 %338 }
  0x93   :  { %vm5420_vm4 = vcmp.eq.s32.totalorder %v4602_v27, 1 }
  0xdc   :  { %v303_v39 = vpop.f32.mrb[0].mxu1 }
  0xdd   :  { %v304_v40 = vadd.f32 %v4579_v38, %v303_v39  ;;  %v3866_v41 = vpop.f32.mrb[1].mxu1 }
  0xde   :  { %v306_v42 = vpop.f32.mrb[2].mxu1 }
  0xdf   :  { %317 = vrot.lane.b32.xlu0 %v304_v40, %s4397_s13  ;;  %v3867_v43 = vpop.f32.mrb[3].mxu1 }
  0xe0   :  { %v424_v43 = vsel %vm423_vm5, 1, %v4395_v9 }
  0xe3   :  { %v189_v49 = vpop.f32.mrb[0].mxu0 }
  0xe4   :  { %v190_v50 = vadd.f32 %v3623_v47, %v189_v49  ;;  %v3858_v51 = vpop.f32.mrb[1].mxu0 }
  0xe5   :  { %v192_v52 = vpop.f32.mrb[2].mxu0 }
  0xe6   :  { %v198_v53 = vcombine.high %v190_v50, %v190_v50  ;;  %v205_v54 = vrot.slane %v190_v50, %v4586_v48  ;;  %v193_v55 = vadd.f32 %v3623_v47, %v192_v52  ;;  %v3859_v56 = vpop.f32.mrb[3].mxu0 }
  0xe8   :  { %v212_v57 = vrot.slane %v198_v53, %v4586_v48  ;;  %v213_v58 = vcombine.high %v205_v54, %v205_v54  ;;  %241 = vst.msk [vmem:[#allocation3] sm:$0x3] %vm5421_vm3, %v205_v54  ;;  %v215_v59 = vcombine.high %v193_v55, %v193_v55  ;;  %v222_v60 = vrot.slane %v193_v55, %v4586_v48 }
  0xea   :  { %v214_v61 = vcombine.high %v212_v57, %v212_v57  ;;  %242 = vst.msk [vmem:[#allocation3 + $0x2] sm:$0x3] %vm5421_vm3, %v213_v58  ;;  %243 = vst.msk [vmem:[#allocation3 + $0x4] sm:$0x3] %vm5421_vm3, %v212_v57  ;;  %v229_v62 = vrot.slane %v215_v59, %v4586_v48  ;;  %v230_v63 = vcombine.high %v222_v60, %v222_v60 }
  0xeb   :  { %245 = vst.msk [vmem:[#allocation3 + $0x8] sm:$0x3] %vm5421_vm3, %v222_v60 }
  0xec   :  { %244 = vst.msk [vmem:[#allocation3 + $0x6] sm:$0x3] %vm5421_vm3, %v214_v61  ;;  %v231_v3 = vcombine.high %v229_v62, %v229_v62  ;;  %246 = vst.msk [vmem:[#allocation3 + $0xa] sm:$0x3] %vm5421_vm3, %v230_v63 }
  0xed   :  { %247 = vst.msk [vmem:[#allocation3 + $0xc] sm:$0x3] %vm5421_vm3, %v229_v62 }
  0xee   :  { %248 = vst.msk [vmem:[#allocation3 + $0xe] sm:$0x3] %vm5421_vm3, %v231_v3  ;;  %vm5430_vm3 = vcmp.gt.s32.totalorder %v4570_v36, 7 }
  0xef   :  { %v249_v4 = vld [vmem:[#allocation3] sm:$0x3] }
  0xf0   :  { %v309_v6 = vadd.f32 %v304_v40, %v249_v4 }
  0xf1   :  { %v349_v44 = vld [vmem:[#allocation3 + $0x2] sm:$0x3] }
  0xf2   :  { %v3634_v15 = vmul.f32 -1.442695, %v309_v6 }
  0xf4   :  { %4175 = vpow2.f32 %v3634_v15 }
  0xfe   :  { %v4176_v17 = vpop.eup %4175 }
  0xff   :  { %v313_v18 = vadd.f32 1.0, %v4176_v17 }
 0x101   :  { %4177 = vrcp.f32 %v313_v18 }
 0x10b   :  { %v4178_v19 = vpop.eup %4177 }
 0x10c   :  { %v327_v28 = vsub.f32 1.0, %v4178_v19  ;;  %v333_v30 = vmul.f32 0.0, %v4178_v19 }
 0x151   :  { %v318_v20 = vpop.permute.xlu0 %317 }
 0x152   :  { %v320_v22 = vmul.f32 %v4178_v19, %v318_v20  ;;  %v438_v19 = vld [vmem:[#allocation3 + $0x4] sm:$0x3] }
 0x154   :  { %322 = vrot.lane.b32.xlu0 %v320_v22, %s4397_s13 }
 0x1c6   :  { %v323_v23 = vpop.permute.xlu0 %322 }
 0x1c7   :  { %v325_v24 = vadd.f32 %v323_v23, %v249_v4 }
 0x1c9   :  { %4179 = vtanh.f32 %v325_v24 }
 0x1d3   :  { %v4180_v25 = vpop.eup %4179 }
 0x1d4   :  { %329 = vrot.lane.b32.xlu1 %v4180_v25, %s4399_s16  ;;  %v513_v25 = vsel %vm512_vm7, 1, %v4395_v9 }
 0x246   :  { %v330_v29 = vpop.permute.xlu1 %329 }
 0x247   :  { %v332_v31 = vmul.f32 %v330_v29, %v327_v28 }
 0x249   :  { %v334_v32 = vadd.f32 %v333_v30, %v332_v31 }
 0x24b   :  { %v4607_v33 = vsel %vm5420_vm4, %v334_v32, 0.0 }
 0x24c   :  { %v350_v34 = vpack.c.bf16 %v4607_v33, %v4607_v33 }
 0x24e   :  { %352 = vrot.lane.b32.xlu0 %v350_v34, %s4399_s16 }
 0x2c0   :  { %v353_v35 = vpop.permute.xlu0 %352 }
 0x2c1   :  { %3873 = vmatmul.mubr.msk.bf16.vlgmr.msra.gmra.mrb[4].mxu0 %vm151_vm1, %v353_v35 }
 0x2c2   :  { %3885 = vmatpush3.bf16.msra.mxu0 %v4469_v0  ;;  %3888 = vmatprep.mubr.msk.bf16.mxu0 %vm4394_vm0, %v4393_v1 }
 0x2c3   :  { %3886 = vmatprep.subr.bf16.mxu0 %v4393_v1 }
 0x2c6   :  { %3887 = vmatpush3.bf16.msra.mxu0 %v4476_v2 }
 0x2c7   :  { %3900 = vmatprep.subr.bf16.mxu0 %v4393_v1 }
 0x394   :  { %v391_v37 = vpop.f32.mrb[4].mxu0 }
 0x395   :  { %v392_v39 = vadd.f32 %v4579_v38, %v391_v37  ;;  %v3874_v40 = vpop.f32.mrb[5].mxu0 }
 0x396   :  { %v394_v41 = vpop.f32.mrb[6].mxu0 }
 0x397   :  { %405 = vrot.lane.b32.xlu1 %v392_v39, %s4397_s13  ;;  %v3875_v42 = vpop.f32.mrb[7].mxu0  ;;  %v397_v45 = vadd.f32 %v392_v39, %v349_v44 }
 0x399   :  { %v3636_v46 = vmul.f32 -1.442695, %v397_v45 }
 0x39b   :  { %426 = vperm.xlu1 %4150, %v424_v43   ;;  %4181 = vpow2.f32 %v3636_v46 }
 0x3a5   :  { %v4182_v47 = vpop.eup %4181 }
 0x3a6   :  { %v401_v49 = vadd.f32 1.0, %v4182_v47 }
 0x3a8   :  { %4183 = vrcp.f32 %v401_v49 }
 0x3b2   :  { %v4184_v50 = vpop.eup %4183 }
 0x3b3   :  { %v415_v56 = vsub.f32 1.0, %v4184_v50  ;;  %v421_v59 = vmul.f32 %v4184_v50, %v4607_v33 }
 0x409   :  { %v406_v51 = vpop.permute.xlu1 %405 }
 0x40a   :  { %v408_v52 = vmul.f32 %v4184_v50, %v406_v51 }
 0x40c   :  { %410 = vrot.lane.b32.xlu0 %v408_v52, %s4397_s13  ;;  %v602_v52 = vsel %vm601_vm9, 1, %v4395_v9 }
 0x41a   :  { %v4627_v58 = vpop.permute.xlu1 %426 }
 0x41b   :  { %vm5429_vm6 = vcmp.eq.s32.totalorder %v4627_v58, 1 }
 0x47e   :  { %v411_v53 = vpop.permute.xlu0 %410 }
 0x47f   :  { %v413_v54 = vadd.f32 %v411_v53, %v349_v44  ;;  %v527_v53 = vld [vmem:[#allocation3 + $0x6] sm:$0x3] }
 0x481   :  { %4185 = vtanh.f32 %v413_v54 }
 0x48b   :  { %v4186_v55 = vpop.eup %4185 }
 0x48c   :  { %417 = vrot.lane.b32.xlu0 %v4186_v55, %s4399_s16 }
 0x4fe   :  { %v418_v57 = vpop.permute.xlu0 %417 }
 0x4ff   :  { %v420_v60 = vmul.f32 %v418_v57, %v415_v56 }
 0x501   :  { %v4630_v61 = vadd.f32 %v421_v59, %v420_v60 }
 0x503   :  { %v429_v62 = vsel %vm5429_vm6, %v4630_v61, %v4607_v33 }
 0x504   :  { %v439_v63 = vpack.c.bf16 %v429_v62, %v429_v62 }
 0x506   :  { %441 = vrot.lane.b32.xlu1 %v439_v63, %s4399_s16 }
 0x578   :  { %v442_v3 = vpop.permute.xlu1 %441 }
 0x579   :  { %3881 = vmatmul.mubr.msk.bf16.vlgmr.msra.gmra.mrb[4].mxu1 %vm151_vm1, %v442_v3 }
 0x57a   :  { %3893 = vmatpush3.bf16.msra.mxu1 %v4469_v0  ;;  %3896 = vmatprep.mubr.msk.bf16.mxu1 %vm4394_vm0, %v4393_v1 }
 0x57b   :  { %3894 = vmatprep.subr.bf16.mxu1 %v4393_v1 }
 0x57e   :  { %3895 = vmatpush3.bf16.msra.mxu1 %v4476_v2 }
 0x57f   :  { %3908 = vmatprep.subr.bf16.mxu1 %v4393_v1 }
 0x64c   :  { %v480_v4 = vpop.f32.mrb[4].mxu1 }
 0x64d   :  { %v481_v6 = vadd.f32 %v4579_v38, %v480_v4  ;;  %v3882_v15 = vpop.f32.mrb[5].mxu1 }
 0x64e   :  { %v483_v17 = vpop.f32.mrb[6].mxu1 }
 0x64f   :  { %494 = vrot.lane.b32.xlu0 %v481_v6, %s4397_s13  ;;  %v3883_v18 = vpop.f32.mrb[7].mxu1  ;;  %v486_v20 = vadd.f32 %v481_v6, %v438_v19 }
 0x651   :  { %v3638_v22 = vmul.f32 -1.442695, %v486_v20 }
 0x653   :  { %4187 = vpow2.f32 %v3638_v22  ;;  %515 = vperm.xlu0 %4151, %v513_v25  }
 0x65d   :  { %v4188_v23 = vpop.eup %4187 }
 0x65e   :  { %v490_v24 = vadd.f32 1.0, %v4188_v23 }
 0x660   :  { %4189 = vrcp.f32 %v490_v24 }
 0x66a   :  { %v4190_v28 = vpop.eup %4189 }
 0x66b   :  { %v504_v35 = vsub.f32 1.0, %v4190_v28  ;;  %v510_v40 = vmul.f32 %v4190_v28, %v429_v62 }
 0x6c1   :  { %v495_v29 = vpop.permute.xlu0 %494 }
 0x6c2   :  { %v497_v30 = vmul.f32 %v4190_v28, %v495_v29 }
 0x6c4   :  { %499 = vrot.lane.b32.xlu1 %v497_v30, %s4397_s13 }
 0x6d2   :  { %v4653_v37 = vpop.permute.xlu0 %515 }
 0x6d3   :  { %vm5428_vm8 = vcmp.eq.s32.totalorder %v4653_v37, 1 }
 0x736   :  { %v500_v31 = vpop.permute.xlu1 %499 }
 0x737   :  { %v502_v32 = vadd.f32 %v500_v31, %v438_v19 }
 0x739   :  { %4191 = vtanh.f32 %v502_v32  ;;  %v691_v32 = vsel %vm690_vm11, 1, %v4395_v9 }
 0x743   :  { %v4192_v34 = vpop.eup %4191 }
 0x744   :  { %506 = vrot.lane.b32.xlu1 %v4192_v34, %s4399_s16  ;;  %v616_v34 = vld [vmem:[#allocation3 + $0x8] sm:$0x3] }
 0x7b6   :  { %v507_v39 = vpop.permute.xlu1 %506 }
 0x7b7   :  { %v509_v41 = vmul.f32 %v507_v39, %v504_v35 }
 0x7b9   :  { %v4656_v42 = vadd.f32 %v510_v40, %v509_v41 }
 0x7bb   :  { %v518_v43 = vsel %vm5428_vm8, %v4656_v42, %v429_v62 }
 0x7bc   :  { %v528_v44 = vpack.c.bf16 %v518_v43, %v518_v43 }
 0x7be   :  { %530 = vrot.lane.b32.xlu1 %v528_v44, %s4399_s16 }
 0x830   :  { %v531_v45 = vpop.permute.xlu1 %530 }
 0x831   :  { %3889 = vmatmul.mubr.msk.bf16.vlgmr.msra.gmra.mrb[8].mxu0 %vm151_vm1, %v531_v45 }
 0x832   :  { %3901 = vmatpush3.bf16.msra.mxu0 %v4469_v0  ;;  %3904 = vmatprep.mubr.msk.bf16.mxu0 %vm4394_vm0, %v4393_v1 }
 0x833   :  { %3902 = vmatprep.subr.bf16.mxu0 %v4393_v1 }
 0x836   :  { %3903 = vmatpush3.bf16.msra.mxu0 %v4476_v2 }
 0x837   :  { %3916 = vmatprep.subr.bf16.mxu0 %v4393_v1 }
 0x904   :  { %v569_v46 = vpop.f32.mrb[8].mxu0 }
 0x905   :  { %v570_v47 = vadd.f32 %v4579_v38, %v569_v46  ;;  %v3890_v49 = vpop.f32.mrb[9].mxu0 }
 0x906   :  { %v572_v50 = vpop.f32.mrb[10].mxu0 }
 0x907   :  { %583 = vrot.lane.b32.xlu0 %v570_v47, %s4397_s13  ;;  %v3891_v51 = vpop.f32.mrb[11].mxu0  ;;  %v575_v54 = vadd.f32 %v570_v47, %v527_v53 }
 0x909   :  { %v3640_v55 = vmul.f32 -1.442695, %v575_v54 }
 0x90b   :  { %604 = vperm.xlu0 %4151, %v602_v52   ;;  %4193 = vpow2.f32 %v3640_v55 }
 0x915   :  { %v4194_v56 = vpop.eup %4193 }
 0x916   :  { %v579_v57 = vadd.f32 1.0, %v4194_v56 }
 0x918   :  { %4195 = vrcp.f32 %v579_v57 }
 0x922   :  { %v4196_v59 = vpop.eup %4195 }
 0x923   :  { %v593_v6 = vsub.f32 1.0, %v4196_v59  ;;  %v599_v18 = vmul.f32 %v4196_v59, %v518_v43 }
 0x979   :  { %v584_v60 = vpop.permute.xlu0 %583 }
 0x97a   :  { %v586_v62 = vmul.f32 %v4196_v59, %v584_v60 }
 0x97c   :  { %588 = vrot.lane.b32.xlu1 %v586_v62, %s4397_s13 }
 0x98a   :  { %v4677_v17 = vpop.permute.xlu0 %604 }
 0x98b   :  { %vm5427_vm10 = vcmp.eq.s32.totalorder %v4677_v17, 1 }
 0x9ee   :  { %v589_v63 = vpop.permute.xlu1 %588 }
 0x9ef   :  { %v591_v3 = vadd.f32 %v589_v63, %v527_v53 }
 0x9f1   :  { %4197 = vtanh.f32 %v591_v3 }
 0x9fb   :  { %v4198_v4 = vpop.eup %4197 }
 0x9fc   :  { %595 = vrot.lane.b32.xlu1 %v4198_v4, %s4399_s16 }
 0xa6e   :  { %v596_v15 = vpop.permute.xlu1 %595 }
 0xa6f   :  { %v598_v19 = vmul.f32 %v596_v15, %v593_v6  ;;  %v705_v6 = vld [vmem:[#allocation3 + $0xa] sm:$0x3] }
 0xa71   :  { %v4679_v20 = vadd.f32 %v599_v18, %v598_v19 }
 0xa73   :  { %v607_v22 = vsel %vm5427_vm10, %v4679_v20, %v518_v43 }
 0xa74   :  { %v617_v23 = vpack.c.bf16 %v607_v22, %v607_v22 }
 0xa76   :  { %619 = vrot.lane.b32.xlu0 %v617_v23, %s4399_s16 }
 0xae8   :  { %v620_v24 = vpop.permute.xlu0 %619 }
 0xae9   :  { %3897 = vmatmul.mubr.msk.bf16.vlgmr.msra.gmra.mrb[8].mxu1 %vm151_vm1, %v620_v24 }
 0xaea   :  { %3909 = vmatpush3.bf16.msra.mxu1 %v4469_v0  ;;  %3912 = vmatprep.mubr.msk.bf16.mxu1 %vm4394_vm0, %v4393_v1 }
 0xaeb   :  { %3910 = vmatprep.subr.bf16.mxu1 %v4393_v1 }
 0xaee   :  { %3911 = vmatpush3.bf16.msra.mxu1 %v4476_v2 }
 0xaef   :  { %3924 = vmatprep.subr.bf16.mxu1 %v4393_v1 }
 0xbbc   :  { %v658_v25 = vpop.f32.mrb[8].mxu1 }
 0xbbd   :  { %v659_v28 = vadd.f32 %v4579_v38, %v658_v25  ;;  %v3898_v29 = vpop.f32.mrb[9].mxu1 }
 0xbbe   :  { %v661_v30 = vpop.f32.mrb[10].mxu1 }
 0xbbf   :  { %672 = vrot.lane.b32.xlu1 %v659_v28, %s4397_s13  ;;  %v3899_v31 = vpop.f32.mrb[11].mxu1  ;;  %v664_v35 = vadd.f32 %v659_v28, %v616_v34 }
 0xbc1   :  { %v3642_v39 = vmul.f32 -1.442695, %v664_v35 }
 0xbc3   :  { %693 = vperm.xlu1 %4150, %v691_v32   ;;  %4199 = vpow2.f32 %v3642_v39 }
 0xbcd   :  { %v4200_v40 = vpop.eup %4199 }
 0xbce   :  { %v668_v41 = vadd.f32 1.0, %v4200_v40 }
 0xbd0   :  { %4201 = vrcp.f32 %v668_v41 }
 0xbda   :  { %v4202_v43 = vpop.eup %4201 }
 0xbdb   :  { %v682_v50 = vsub.f32 1.0, %v4202_v43  ;;  %v688_v53 = vmul.f32 %v4202_v43, %v607_v22 }
 0xc31   :  { %v673_v44 = vpop.permute.xlu1 %672 }
 0xc32   :  { %v675_v45 = vmul.f32 %v4202_v43, %v673_v44 }
 0xc34   :  { %677 = vrot.lane.b32.xlu0 %v675_v45, %s4397_s13 }
 0xc42   :  { %v4701_v52 = vpop.permute.xlu1 %693 }
 0xc43   :  { %vm5422_vm12 = vcmp.eq.s32.totalorder %v4701_v52, 1 }
 0xca6   :  { %v678_v46 = vpop.permute.xlu0 %677 }
 0xca7   :  { %v680_v47 = vadd.f32 %v678_v46, %v616_v34 }
 0xca9   :  { %4203 = vtanh.f32 %v680_v47 }
 0xcb3   :  { %v4204_v49 = vpop.eup %4203 }
 0xcb4   :  { %684 = vrot.lane.b32.xlu0 %v4204_v49, %s4399_s16 }
 0xd26   :  { %v685_v51 = vpop.permute.xlu0 %684 }
 0xd27   :  { %v687_v54 = vmul.f32 %v685_v51, %v682_v50  ;;  %v869_v50 = vsel %vm868_vm15, 1, %v4395_v9  ;;  %v794_v51 = vld [vmem:[#allocation3 + $0xc] sm:$0x3] }
 0xd29   :  { %v4703_v55 = vadd.f32 %v688_v53, %v687_v54 }
 0xd2b   :  { %v696_v56 = vsel %vm5422_vm12, %v4703_v55, %v607_v22 }
 0xd2c   :  { %v706_v57 = vpack.c.bf16 %v696_v56, %v696_v56 }
 0xd2e   :  { %708 = vrot.lane.b32.xlu1 %v706_v57, %s4399_s16 }
 0xda0   :  { %v709_v59 = vpop.permute.xlu1 %708 }
 0xda1   :  { %3905 = vmatmul.mubr.msk.bf16.vlgmr.msra.gmra.mrb[12].mxu0 %vm151_vm1, %v709_v59 }
 0xda2   :  { %3917 = vmatpush3.bf16.msra.mxu0 %v4469_v0  ;;  %3920 = vmatprep.mubr.msk.bf16.mxu0 %vm4394_vm0, %v4393_v1  ;;  %v780_v0 = vsel %vm5431_vm13, 1, %v4395_v9 }
 0xda3   :  { %3918 = vmatprep.subr.bf16.mxu0 %v4393_v1 }
 0xda6   :  { %3919 = vmatpush3.bf16.msra.mxu0 %v4476_v2 }
 0xda7   :  { %3932 = vmatprep.subr.bf16.mxu0 %v4393_v1 }
 0xe74   :  { %v747_v60 = vpop.f32.mrb[12].mxu0 }
 0xe75   :  { %v748_v62 = vadd.f32 %v4579_v38, %v747_v60  ;;  %v3906_v63 = vpop.f32.mrb[13].mxu0 }
 0xe76   :  { %v750_v3 = vpop.f32.mrb[14].mxu0 }
 0xe77   :  { %761 = vrot.lane.b32.xlu0 %v748_v62, %s4397_s13  ;;  %v3907_v4 = vpop.f32.mrb[15].mxu0  ;;  %v753_v15 = vadd.f32 %v748_v62, %v705_v6 }
 0xe79   :  { %v3644_v2 = vmul.f32 -1.442695, %v753_v15 }
 0xe7b   :  { %782 = vperm.xlu0 %4151, %v780_v0   ;;  %4205 = vpow2.f32 %v3644_v2 }
 0xe85   :  { %v4206_v18 = vpop.eup %4205 }
 0xe86   :  { %v757_v19 = vadd.f32 1.0, %v4206_v18 }
 0xe88   :  { %4207 = vrcp.f32 %v757_v19 }
 0xe92   :  { %v4208_v22 = vpop.eup %4207 }
 0xe93   :  { %v771_v30 = vsub.f32 1.0, %v4208_v22  ;;  %v777_v34 = vmul.f32 %v4208_v22, %v696_v56 }
 0xee9   :  { %v762_v23 = vpop.permute.xlu0 %761 }
 0xeea   :  { %v764_v24 = vmul.f32 %v4208_v22, %v762_v23 }
 0xeec   :  { %766 = vrot.lane.b32.xlu1 %v764_v24, %s4397_s13 }
 0xefa   :  { %v4725_v32 = vpop.permute.xlu0 %782 }
 0xefb   :  { %vm5426_vm14 = vcmp.eq.s32.totalorder %v4725_v32, 1 }
 0xf5e   :  { %v767_v25 = vpop.permute.xlu1 %766 }
 0xf5f   :  { %v769_v28 = vadd.f32 %v767_v25, %v705_v6 }
 0xf61   :  { %4209 = vtanh.f32 %v769_v28 }
 0xf6b   :  { %v4210_v29 = vpop.eup %4209 }
 0xf6c   :  { %773 = vrot.lane.b32.xlu1 %v4210_v29, %s4399_s16 }
 0xfde   :  { %v774_v31 = vpop.permute.xlu1 %773 }
 0xfdf   :  { %v776_v35 = vmul.f32 %v774_v31, %v771_v30 }
 0xfe1   :  { %v4727_v39 = vadd.f32 %v777_v34, %v776_v35  ;;  %v958_v34 = vsel %vm5430_vm3, 1, %v4395_v9  ;;  %v519_v35 = vsel %vm5428_vm8, %v4656_v42, 0.0 }
 0xfe3   :  { %v785_v40 = vsel %vm5426_vm14, %v4727_v39, %v696_v56 }
 0xfe4   :  { %v795_v41 = vpack.c.bf16 %v785_v40, %v785_v40 }
 0xfe6   :  { %797 = vrot.lane.b32.xlu0 %v795_v41, %s4399_s16  ;;  %v883_v41 = vld [vmem:[#allocation3 + $0xe] sm:$0x3] }
0x1058   :  { %v798_v43 = vpop.permute.xlu0 %797 }
0x1059   :  { %3913 = vmatmul.mubr.msk.bf16.vlgmr.msra.gmra.mrb[12].mxu1 %vm151_vm1, %v798_v43 }
0x105a   :  { %3928 = vmatprep.mubr.msk.bf16.mxu1 %vm4394_vm0, %v4393_v1 }
0x112c   :  { %v836_v44 = vpop.f32.mrb[12].mxu1 }
0x112d   :  { %v837_v45 = vadd.f32 %v4579_v38, %v836_v44  ;;  %v3914_v46 = vpop.f32.mrb[13].mxu1 }
0x112e   :  { %v839_v47 = vpop.f32.mrb[14].mxu1 }
0x112f   :  { %850 = vrot.lane.b32.xlu1 %v837_v45, %s4397_s13  ;;  %v3915_v49 = vpop.f32.mrb[15].mxu1  ;;  %v842_v53 = vadd.f32 %v837_v45, %v794_v51 }
0x1131   :  { %v3646_v54 = vmul.f32 -1.442695, %v842_v53 }
0x1133   :  { %871 = vperm.xlu1 %4150, %v869_v50   ;;  %4211 = vpow2.f32 %v3646_v54 }
0x113d   :  { %v4212_v56 = vpop.eup %4211 }
0x113e   :  { %v846_v57 = vadd.f32 1.0, %v4212_v56 }
0x1140   :  { %4213 = vrcp.f32 %v846_v57 }
0x114a   :  { %v4214_v59 = vpop.eup %4213 }
0x114b   :  { %v860_v0 = vsub.f32 1.0, %v4214_v59  ;;  %v866_v2 = vmul.f32 %v4214_v59, %v785_v40 }
0x11a1   :  { %v851_v60 = vpop.permute.xlu1 %850 }
0x11a2   :  { %v853_v62 = vmul.f32 %v4214_v59, %v851_v60  ;;  %v430_v59 = vsel %vm5429_vm6, %v4630_v61, 0.0  ;;  %v608_v60 = vsel %vm5427_vm10, %v4679_v20, 0.0  ;;  %v4158_v61 = vld [vmem:[%s5413_s6 + $0x10] sm:$0xff]   ;;  %v4157_v20 = vld [vmem:[%s5413_s6 + $0x8] sm:$0xff]  }
0x11a4   :  { %855 = vrot.lane.b32.xlu0 %v853_v62, %s4397_s13  ;;  %v786_v62 = vsel %vm5426_vm14, %v4727_v39, 0.0  ;;  %v4160_v39 = vld [vmem:[%s5413_s6 + $0x18] sm:$0xff]  }
0x11b2   :  { %v4745_v15 = vpop.permute.xlu1 %871 }
0x11b3   :  { %vm5423_vm4 = vcmp.eq.s32.totalorder %v4745_v15, 1 }
0x1216   :  { %v856_v63 = vpop.permute.xlu0 %855 }
0x1217   :  { %v858_v3 = vadd.f32 %v856_v63, %v794_v51  ;;  %v4156_v63 = vld [vmem:[%s5413_s6] sm:$0xff]  }
0x1218   :  { %3925 = vmatpush3.bf16.msra.mxu1 %v4156_v63 }
0x1219   :  { %4215 = vtanh.f32 %v858_v3  ;;  %3926 = vmatprep.subr.bf16.mxu1 %v4393_v1  ;;  %v986_v3 = vld [vmem:[%s5408_s1] sm:$0x3] }
0x121c   :  { %3927 = vmatpush3.bf16.msra.mxu1 %v4157_v20 }
0x121d   :  { %3940 = vmatprep.subr.bf16.mxu1 %v4393_v1 }
0x1223   :  { %v4216_v4 = vpop.eup %4215 }
0x1224   :  { %862 = vrot.lane.b32.xlu0 %v4216_v4, %s4399_s16  ;;  %v1003_v4 = vpack.c.bf16 %v986_v3, %v986_v3 }
0x1226   :  { %3929 = vmatmul.mubr.msk.bf16.vlgmr.msra.gmra.mrb[16].mxu1 %vm151_vm1, %v1003_v4 }
0x1227   :  { %3944 = vmatprep.mubr.msk.bf16.mxu1 %vm4394_vm0, %v4393_v1 }
0x1296   :  { %v863_v6 = vpop.permute.xlu0 %862 }
0x1297   :  { %v865_v18 = vmul.f32 %v863_v6, %v860_v0  ;;  %v4159_v6 = vld [vmem:[%s5413_s6 + $0x20] sm:$0xff]  }
0x1298   :  { %3941 = vmatpush3.bf16.msra.mxu1 %v4159_v6 }
0x1299   :  { %v867_v19 = vadd.f32 %v866_v2, %v865_v18  ;;  %3942 = vmatprep.subr.bf16.mxu1 %v4393_v1 }
0x129b   :  { %v4750_v22 = vsel %vm5423_vm4, %v867_v19, %v785_v40  ;;  %v875_v40 = vsel %vm5423_vm4, %v867_v19, 0.0 }
0x129c   :  { %v884_v23 = vpack.c.bf16 %v4750_v22, %v4750_v22 }
0x129e   :  { %886 = vrot.lane.b32.xlu1 %v884_v23, %s4399_s16 }
0x1310   :  { %v887_v24 = vpop.permute.xlu1 %886 }
0x1311   :  { %3921 = vmatmul.mubr.msk.bf16.vlgmr.msra.gmra.mrb[16].mxu0 %vm151_vm1, %v887_v24  ;;  %v4161_v24 = vld [vmem:[%s5413_s6 + $0x28] sm:$0xff]  }
0x1312   :  { %3936 = vmatprep.mubr.msk.bf16.mxu0 %vm4394_vm0, %v4393_v1  ;;  %3933 = vmatpush3.bf16.msra.mxu0 %v4158_v61 }
0x1313   :  { %3934 = vmatprep.subr.bf16.mxu0 %v4393_v1  ;;  %3943 = vmatpush3.bf16.msra.mxu1 %v4161_v24 }
0x1314   :  { %3954 = vmatprep.subr.bf16.mxu1 %v4393_v1 }
0x1316   :  { %3935 = vmatpush3.bf16.msra.mxu0 %v4160_v39 }
0x1317   :  { %3948 = vmatprep.subr.bf16.mxu0 %v4393_v1 }
0x13e4   :  { %v925_v25 = vpop.f32.mrb[16].mxu0 }
0x13e5   :  { %v926_v28 = vadd.f32 %v4579_v38, %v925_v25  ;;  %v3922_v29 = vpop.f32.mrb[17].mxu0  ;;  %v697_v38 = vsel %vm5422_vm12, %v4703_v55, 0.0  ;;  %vm5424_vm12 = vcmask 254976  }
0x13e6   :  { %v928_v30 = vpop.f32.mrb[18].mxu0 }
0x13e7   :  { %939 = vrot.lane.b32.xlu0 %v926_v28, %s4397_s13  ;;  %v3923_v31 = vpop.f32.mrb[19].mxu0  ;;  %v931_v43 = vadd.f32 %v926_v28, %v883_v41 }
0x13eb   :  { %960 = vperm.xlu0 %4151, %v958_v34  }
0x13ef   :  { %343 = vrot.lane.b32.xlu0 %v4607_v33, %s4399_s16  ;;  %v3648_v33 = vmul.f32 -1.442695, %v931_v43 }
0x13f1   :  { %4217 = vpow2.f32 %v3648_v33 }
0x13f3   :  { %521 = vrot.lane.b32.xlu0 %v519_v35, %s4399_s16 }
0x13f7   :  { %699 = vrot.lane.b32.xlu0 %v697_v38, %s4399_s16 }
0x13fb   :  { %877 = vrot.lane.b32.xlu0 %v875_v40, %s4399_s16  ;;  %v4218_v44 = vpop.eup %4217 }
0x13fc   :  { %v935_v45 = vadd.f32 1.0, %v4218_v44 }
0x13fe   :  { %4219 = vrcp.f32 %v935_v45 }
0x1408   :  { %v4220_v42 = vpop.eup %4219 }
0x1409   :  { %v949_v0 = vsub.f32 1.0, %v4220_v42  ;;  %v955_v18 = vmul.f32 %v4220_v42, %v4750_v22 }
0x1459   :  { %v940_v46 = vpop.permute.xlu0 %939 }
0x145a   :  { %v942_v47 = vmul.f32 %v4220_v42, %v940_v46 }
0x145c   :  { %944 = vrot.lane.b32.xlu1 %v942_v47, %s4397_s13 }
0x146a   :  { %v4778_v55 = vpop.permute.xlu0 %960 }
0x146b   :  { %vm5425_vm4 = vcmp.eq.s32.totalorder %v4778_v55, 1 }
0x146e   :  { %v344_v49 = vpop.permute.xlu0 %343 }
0x146f   :  { %347 = vst.msk [vmem:[#allocation2] sm:$0x3] %vm5424_vm12, %v344_v49 }
0x1472   :  { %v522_v50 = vpop.permute.xlu0 %521 }
0x1473   :  { %525 = vst.msk [vmem:[#allocation2 + $0x4] sm:$0x3] %vm5424_vm12, %v522_v50 }
0x1476   :  { %v700_v51 = vpop.permute.xlu0 %699  ;;  %v970_v40 = vld [vmem:[#allocation2] sm:$0x3] }
0x1477   :  { %703 = vst.msk [vmem:[#allocation2 + $0x8] sm:$0x3] %vm5424_vm12, %v700_v51  ;;  %v1216_v42 = vmul.f32 %v986_v3, %v970_v40 }
0x147a   :  { %v878_v53 = vpop.permute.xlu0 %877  ;;  %v972_v34 = vld [vmem:[#allocation2 + $0x4] sm:$0x3] }
0x147b   :  { %881 = vst.msk [vmem:[#allocation2 + $0xc] sm:$0x3] %vm5424_vm12, %v878_v53  ;;  %v1218_v33 = vmul.f32 %v986_v3, %v972_v34 }
0x147e   :  { %v974_v45 = vld [vmem:[#allocation2 + $0x8] sm:$0x3] }
0x1482   :  { %v976_v47 = vld [vmem:[#allocation2 + $0xc] sm:$0x3] }
0x14ce   :  { %v945_v54 = vpop.permute.xlu1 %944 }
0x14cf   :  { %v947_v56 = vadd.f32 %v945_v54, %v883_v41 }
0x14d1   :  { %4221 = vtanh.f32 %v947_v56  ;;  %v1220_v56 = vmul.f32 %v986_v3, %v974_v45 }
0x14db   :  { %v4222_v57 = vpop.eup %4221 }
0x14dc   :  { %951 = vrot.lane.b32.xlu1 %v4222_v57, %s4399_s16 }
0x14e0   :  { %432 = vrot.lane.b32.xlu1 %v430_v59, %s4399_s16  ;;  %v1222_v59 = vmul.f32 %v986_v3, %v976_v47 }
0x14e4   :  { %610 = vrot.lane.b32.xlu1 %v608_v60, %s4399_s16 }
0x14e8   :  { %788 = vrot.lane.b32.xlu1 %v786_v62, %s4399_s16 }
0x154e   :  { %v952_v2 = vpop.permute.xlu1 %951 }
0x154f   :  { %v954_v19 = vmul.f32 %v952_v2, %v949_v0 }
0x1551   :  { %v956_v23 = vadd.f32 %v955_v18, %v954_v19  ;;  %v984_v19 = vpack.c.bf16 %v976_v47, %v976_v47 }
0x1552   :  { %v433_v25 = vpop.permute.xlu1 %432 }
0x1553   :  { %436 = vst.msk [vmem:[#allocation2 + $0x2] sm:$0x3] %vm5424_vm12, %v433_v25  ;;  %v963_v22 = vsel %vm5425_vm4, %v956_v23, 0.0  ;;  %v1712_v23 = vld [vmem:[%s5410_s3 + $0x2] sm:$0x3] }
0x1554   :  { %965 = vrot.lane.b32.xlu1 %v963_v22, %s4399_s16  ;;  %v1713_v22 = vld [vmem:[%s5410_s3 + $0x4] sm:$0x3] }
0x1556   :  { %v611_v28 = vpop.permute.xlu1 %610 }
0x1557   :  { %614 = vst.msk [vmem:[#allocation2 + $0x6] sm:$0x3] %vm5424_vm12, %v611_v28  ;;  %v1714_v28 = vld [vmem:[%s5410_s3 + $0x6] sm:$0x3] }
0x1558   :  { %2635 = vrot.lane.b32.xlu1 %v4973_v14, %s4397_s13 }
0x155a   :  { %v789_v29 = vpop.permute.xlu1 %788  ;;  %v971_v31 = vld [vmem:[#allocation2 + $0x2] sm:$0x3] }
0x155b   :  { %792 = vst.msk [vmem:[#allocation2 + $0xa] sm:$0x3] %vm5424_vm12, %v789_v29  ;;  %v1217_v43 = vmul.f32 %v986_v3, %v971_v31  ;;  %v3652_v49 = vpack.c.bf16 %v971_v31, %v970_v40  ;;  %v1715_v29 = vld [vmem:[%s5410_s3 + $0x8] sm:$0x3]  ;;  %v1717_v31 = vld [vmem:[%s5410_s3 + $0xc] sm:$0x3] }
0x155d   :  { %v3659_v51 = vpack.c.bf16 %v1217_v43, %v1216_v42  ;;  %v1077_v63 = vrot.slane %v3652_v49, %v4549_v26  ;;  %v1732_v43 = vrot.slane %v984_v19, %v4549_v26  ;;  %v4162_v49 = vld [vmem:[%s5415_s8] sm:$0xff]  }
0x155e   :  { %v973_v30 = vld [vmem:[#allocation2 + $0x6] sm:$0x3] }
0x155f   :  { %v1219_v38 = vmul.f32 %v986_v3, %v973_v30  ;;  %v3653_v44 = vpack.c.bf16 %v973_v30, %v972_v34  ;;  %v1250_v39 = vrot.slane %v3659_v51, %v4549_v26  ;;  %v1716_v30 = vld [vmem:[%s5410_s3 + $0xa] sm:$0x3]  ;;  %v1718_v34 = vld [vmem:[%s5410_s3 + $0xe] sm:$0x3] }
0x1561   :  { %v3660_v46 = vpack.c.bf16 %v1219_v38, %v1218_v33  ;;  %v1084_v54 = vrot.slane %v3653_v44, %v4549_v26  ;;  %v3681_v33 = vpack.c.bf16 %v1713_v22, %v1712_v23  ;;  %v3682_v44 = vpack.c.bf16 %v1715_v29, %v1714_v28 }
0x1562   :  { %v975_v41 = vld [vmem:[#allocation2 + $0xa] sm:$0x3]  ;;  %v1807_v22 = vrot.slane %v3675_v13, %v4549_v26  ;;  %v1814_v28 = vrot.slane %v3676_v16, %v4549_v26  ;;  %v1821_v29 = vrot.slane %v3677_v21, %v4549_v26  ;;  %v4967_v13 = vld [vmem:[%s5416_s9 + $0x18] sm:$0xff]   ;;  %v4978_v16 = vld [vmem:[%s5411_s4 + $0x30] sm:$0xff]  }
0x1563   :  { %v1221_v50 = vmul.f32 %v986_v3, %v975_v41  ;;  %v3654_v53 = vpack.c.bf16 %v975_v41, %v974_v45  ;;  %v1257_v60 = vrot.slane %v3660_v46, %v4549_v26  ;;  %v1099_v6 = vcombine.low %v1077_v63, %v1084_v54  ;;  %2633 = vrot.lane.b32.xlu0 %v4978_v16, %s4397_s13 }
0x1564   :  { %v1725_v46 = vpack.c.bf16 %v1718_v34, %v1718_v34  ;;  %v1925_v54 = vrot.slane %v3682_v44, %v4549_v26 }
0x1565   :  { %v3661_v20 = vpack.c.bf16 %v1221_v50, %v1220_v56  ;;  %v1091_v4 = vrot.slane %v3654_v53, %v4549_v26  ;;  %v1272_v18 = vcombine.low %v1250_v39, %v1257_v60  ;;  %v1918_v53 = vrot.slane %v3681_v33, %v4549_v26 }
0x1567   :  { %v1264_v25 = vrot.slane %v3661_v20, %v4549_v26  ;;  %v1280_v41 = vrot.slane %v1272_v18, %v4549_v26  ;;  %v1733_v51 = vcombine.low %v1091_v4, %v1732_v43 }
0x1569   :  { %v1740_v60 = vrot.slane %v1733_v51, %v4549_v26 }
0x15c6   :  { %v966_v35 = vpop.permute.xlu1 %965 }
0x15c7   :  { %969 = vst.msk [vmem:[#allocation2 + $0xe] sm:$0x3] %vm5424_vm12, %v966_v35  ;;  %v1107_v35 = vrot.slane %v1099_v6, %v4549_v26 }
0x15c9   :  { %v1741_v20 = vcombine.low %v1107_v35, %v1740_v60 }
0x15ce   :  { %v977_v57 = vld [vmem:[#allocation2 + $0xe] sm:$0x3] }
0x15cf   :  { %v3655_v62 = vpack.c.bf16 %v977_v57, %v976_v47  ;;  %v1223_v61 = vmul.f32 %v986_v3, %v977_v57  ;;  %v3683_v47 = vpack.c.bf16 %v1717_v31, %v1716_v30  ;;  %v1939_v57 = vrot.slane %v1725_v46, %v4549_v26 }
0x15d0   :  { %v1829_v31 = vcombine.low %v1807_v22, %v1814_v28 }
0x15d1   :  { %v1098_v0 = vrot.slane %v3655_v62, %v4549_v26  ;;  %v3662_v2 = vpack.c.bf16 %v1223_v61, %v1222_v59  ;;  %v1932_v56 = vrot.slane %v3683_v47, %v4549_v26  ;;  %v4163_v59 = vld [vmem:[%s5415_s8 + $0x8] sm:$0xff]   ;;  %v1940_v62 = vcombine.low %v1918_v53, %v1925_v54  ;;  %v4894_v61 = vld [vmem:[%s5415_s8 + $0x10] sm:$0xff]  }
0x15d3   :  { %v1100_v24 = vcombine.low %v1091_v4, %v1098_v0  ;;  %v1271_v3 = vrot.slane %v3662_v2, %v4549_v26  ;;  %v1941_v63 = vcombine.low %v1932_v56, %v1939_v57  ;;  %v1948_v39 = vrot.slane %v1940_v62, %v4549_v26  ;;  %v4904_v0 = vld [vmem:[%s5415_s8 + $0x18] sm:$0xff]   ;;  %v4914_v2 = vpop.f32.mrb[16].mxu1 }
0x15d4   :  { %v3930_v18 = vpop.f32.mrb[17].mxu1 }
0x15d5   :  { %v1114_v38 = vrot.slane %v1100_v24, %v4549_v26  ;;  %v1273_v40 = vcombine.low %v1264_v25, %v1271_v3  ;;  %v1955_v4 = vrot.slane %v1941_v63, %v4549_v26  ;;  %v1056_v19 = vpop.f32.mrb[18].mxu1  ;;  %v4166_v24 = vld [vmem:[%s5414_s7] sm:$0xff]   ;;  %v4365_v25 = vld [vmem:[%s5409_s2 + $0xe] sm:$0x3] }
0x15d6   :  { %v3931_v23 = vpop.f32.mrb[19].mxu1  ;;  %v77_v3 = vpack.c.bf16 %v4365_v25, %v4365_v25 }
0x15d7   :  { %v4869_v45 = vcombine.low %v1107_v35, %v1114_v38  ;;  %v1287_v42 = vrot.slane %v1273_v40, %v4549_v26  ;;  %v1956_v6 = vcombine.low %v1948_v39, %v1955_v4  ;;  %v4937_v35 = vrot.slane %v1829_v31, %v4549_v26 }
0x15d8   :  { %v1828_v30 = vrot.slane %v77_v3, %v4549_v26 }
0x15d9   :  { %3937 = vmatmul.mubr.msk.bf16.vlgmr.msra.gmra.mrb[20].mxu0 %vm151_vm1, %v4869_v45  ;;  %v1288_v50 = vcombine.low %v1280_v41, %v1287_v42 }
0x15da   :  { %3950 = vmatprep.mubr.msk.bf16.mxu0 %vm4394_vm0, %v4393_v1  ;;  %3949 = vmatpush3.bf16.msra.mxu0 %v4166_v24  ;;  %v1830_v34 = vcombine.low %v1821_v29, %v1828_v30 }
0x15db   :  { %3945 = vmatmul.mubr.msk.bf16.vlgmr.msra.gmra.mrb[20].mxu1 %vm151_vm1, %v1288_v50  ;;  %3962 = vmatprep.subr.bf16.mxu0 %v4393_v1 }
0x15dc   :  { %3955 = vmatpush3.bf16.msra.mxu1 %v4162_v49  ;;  %3958 = vmatprep.mubr.msk.bf16.mxu1 %vm4394_vm0, %v4393_v1  ;;  %v4940_v7 = vrot.slane %v1830_v34, %v4549_v26 }
0x15dd   :  { %3956 = vmatprep.subr.bf16.mxu1 %v4393_v1 }
0x15de   :  { %v1845_v8 = vcombine.low %v4937_v35, %v4940_v7  ;;  %v3667_v7 = vld [vmem:[%s5417_s10 + $0x1] ss:$0 sm:$0xff] }
0x15e0   :  { %3957 = vmatpush3.bf16.msra.mxu1 %v4163_v59 }
0x15e1   :  { %3970 = vmatprep.subr.bf16.mxu1 %v4393_v1 }
0x15e3   :  { %3959 = vmatmul.mubr.msk.bf16.vlgmr.msra.gmra.mrb[24].mxu1 %vm151_vm1, %v1741_v20 }
0x15e4   :  { %3971 = vmatpush3.bf16.msra.mxu1 %v4894_v61  ;;  %3974 = vmatprep.mubr.msk.bf16.mxu1 %vm4394_vm0, %v4393_v1 }
0x15e5   :  { %3972 = vmatprep.subr.bf16.mxu1 %v4393_v1 }
0x15e8   :  { %3973 = vmatpush3.bf16.msra.mxu1 %v4904_v0 }
0x15e9   :  { %3990 = vmatprep.subr.bf16.mxu1 %v4393_v1 }
0x15eb   :  { %3975 = vmatmul.mubr.msk.bf16.vlgmr.msra.gmra.mrb[28].mxu1 %vm151_vm1, %v1956_v6  ;;  %v3666_v6 = vld [vmem:[%s5417_s10] ss:$0 sm:$0xff] }
0x15ec   :  { %3998 = vmatprep.mubr.msk.bf16.mxu1 %vm4394_vm0, %v4393_v1  ;;  %3991 = vmatpush3.bf16.msra.mxu1 %v4947_v10 }
0x15ed   :  { %3992 = vmatprep.subr.bf16.mxu1 %v4393_v1 }
0x15f0   :  { %3993 = vmatpush3.bf16.msra.mxu1 %v4953_v11 }
0x15f1   :  { %3994 = vmatprep.subr.bf16.mxu1 %v4393_v1 }
0x15f4   :  { %3995 = vmatpush3.bf16.msra.mxu1 %v4960_v12 }
0x15f5   :  { %3996 = vmatprep.subr.bf16.mxu1 %v4393_v1 }
0x15f8   :  { %3997 = vmatpush3.bf16.msra.mxu1 %v4967_v13 }
0x15f9   :  { %4010 = vmatprep.subr.bf16.mxu1 %v4393_v1 }
0x16ac   :  { %v1165_v21 = vpop.f32.mrb[20].mxu0 }
0x16ad   :  { %v1174_v26 = vcombine.high %v1165_v21, %v1165_v21  ;;  %v1181_v38 = vrot.slane %v1165_v21, %v4586_v48  ;;  %v3938_v40 = vpop.f32.mrb[21].mxu0 }
0x16ae   :  { %v1168_v41 = vpop.f32.mrb[22].mxu0  ;;  %v1338_v43 = vpop.f32.mrb[20].mxu1 }
0x16af   :  { %v1188_v33 = vrot.slane %v1174_v26, %v4586_v48  ;;  %v1191_v44 = vcombine.high %v1168_v41, %v1168_v41  ;;  %v1198_v42 = vrot.slane %v1168_v41, %v4586_v48  ;;  %v3939_v46 = vpop.f32.mrb[23].mxu0  ;;  %v3946_v47 = vpop.f32.mrb[21].mxu1  ;;  %v1347_v49 = vcombine.high %v1338_v43, %v1338_v43 }
0x16b0   :  { %v1354_v50 = vrot.slane %v1338_v43, %v4586_v48  ;;  %v1341_v51 = vpop.f32.mrb[22].mxu1  ;;  %v1189_v53 = vcombine.high %v1181_v38, %v1181_v38 }
0x16b1   :  { %v1205_v54 = vrot.slane %v1191_v44, %v4586_v48  ;;  %v1364_v56 = vcombine.high %v1341_v51, %v1341_v51  ;;  %v3947_v57 = vpop.f32.mrb[23].mxu1  ;;  %v1361_v59 = vrot.slane %v1347_v49, %v4586_v48  ;;  %v1371_v63 = vrot.slane %v1341_v51, %v4586_v48 }
0x16b2   :  { %v1362_v60 = vcombine.high %v1354_v50, %v1354_v50  ;;  %v1389_v62 = vadd.f32 %v1354_v50, %v1181_v38  ;;  %v1190_v20 = vcombine.high %v1188_v33, %v1188_v33  ;;  %v1206_v39 = vcombine.high %v1198_v42, %v1198_v42 }
0x16b3   :  { %v1207_v4 = vcombine.high %v1205_v54, %v1205_v54  ;;  %v1378_v18 = vrot.slane %v1364_v56, %v4586_v48  ;;  %v1363_v19 = vcombine.high %v1361_v59, %v1361_v59  ;;  %v1391_v24 = vadd.f32 %v1361_v59, %v1188_v33 }
0x16b4   :  { %v1390_v23 = vadd.f32 %v1362_v60, %v1189_v53  ;;  %v1397_v25 = vadd.f32 %v1389_v62, %v4914_v2  ;;  %v1379_v3 = vcombine.high %v1371_v63, %v1371_v63  ;;  %v1393_v28 = vadd.f32 %v1371_v63, %v1198_v42 }
0x16b5   :  { %v1380_v22 = vcombine.high %v1378_v18, %v1378_v18  ;;  %v1395_v29 = vadd.f32 %v1378_v18, %v1205_v54  ;;  %v1392_v30 = vadd.f32 %v1363_v19, %v1190_v20  ;;  %v1399_v34 = vadd.f32 %v1391_v24, %v4914_v2 }
0x16b6   :  { %v1398_v31 = vadd.f32 %v1390_v23, %v4914_v2  ;;  %v1409_v21 = vadd.f32 %v3666_v6, %v1397_v25  ;;  %v5000_v26 = vpop.f32.mrb[24].mxu1  ;;  %v1394_v38 = vadd.f32 %v1379_v3, %v1206_v39  ;;  %v1401_v41 = vadd.f32 %v1393_v28, %v4914_v2  ;;  %v5012_v28 = vld [vmem:[%s5417_s10 + $0x4] ss:$0 sm:$0xff] }
0x16b7   :  { %v1396_v40 = vadd.f32 %v1380_v22, %v1207_v4  ;;  %v1403_v43 = vadd.f32 %v1395_v29, %v4914_v2  ;;  %v3960_v33 = vpop.f32.mrb[25].mxu1  ;;  %v1400_v44 = vadd.f32 %v1392_v30, %v4914_v2  ;;  %v1411_v42 = vadd.f32 %v3666_v6, %v1399_v34 }
0x16b8   :  { %v1410_v46 = vadd.f32 %v3666_v6, %v1398_v31  ;;  %vm1417_vm12 = vcmp.ge.f32.partialorder %v1409_v21, 0.0  ;;  %v5005_v47 = vpop.f32.mrb[26].mxu1  ;;  %v1425_v49 = vmul.f32 0.25, %v1409_v21  ;;  %v1402_v50 = vadd.f32 %v1394_v38, %v4914_v2 }
0x16b9   :  { %v1404_v51 = vadd.f32 %v1396_v40, %v4914_v2  ;;  %v1413_v53 = vadd.f32 %v3666_v6, %v1401_v41  ;;  %v3961_v54 = vpop.f32.mrb[27].mxu1  ;;  %v1412_v56 = vadd.f32 %v3666_v6, %v1400_v44  ;;  %vm1419_vm14 = vcmp.ge.f32.partialorder %v1411_v42, 0.0 }
0x16ba   :  { %vm1418_vm4 = vcmp.ge.f32.partialorder %v1410_v46, 0.0  ;;  %v1426_v57 = vmul.f32 0.25, %v1410_v46  ;;  %v1427_v59 = vmul.f32 0.25, %v1411_v42  ;;  %v1433_v60 = vsel %vm1417_vm12, %v1409_v21, %v1425_v49 }
0x16bb   :  { %v1414_v62 = vadd.f32 %v3666_v6, %v1402_v50  ;;  %v1415_v63 = vadd.f32 %v3666_v6, %v1403_v43  ;;  %vm1420_vm10 = vcmp.ge.f32.partialorder %v1412_v56, 0.0  ;;  %v1428_v20 = vmul.f32 0.25, %v1412_v56 }
0x16bc   :  { %v1434_v39 = vsel %vm1418_vm4, %v1410_v46, %v1426_v57  ;;  %v1416_v4 = vadd.f32 %v3666_v6, %v1404_v51  ;;  %v1435_v18 = vsel %vm1419_vm14, %v1411_v42, %v1427_v59  ;;  %vm1421_vm8 = vcmp.ge.f32.partialorder %v1413_v53, 0.0 }
0x16bd   :  { %v1449_v19 = vcombine.low %v1433_v60, %v1434_v39  ;;  %v1436_v23 = vsel %vm1420_vm10, %v1412_v56, %v1428_v20  ;;  %vm1422_vm6 = vcmp.ge.f32.partialorder %v1414_v62, 0.0  ;;  %vm1423_vm3 = vcmp.ge.f32.partialorder %v1415_v63, 0.0 }
0x16be   :  { %v1429_v2 = vmul.f32 0.25, %v1413_v53  ;;  %v1994_v24 = vpop.f32.mrb[28].mxu1  ;;  %v1450_v25 = vcombine.low %v1435_v18, %v1436_v23  ;;  %vm1424_vm13 = vcmp.ge.f32.partialorder %v1416_v4, 0.0  ;;  %v1430_v3 = vmul.f32 0.25, %v1414_v62  ;;  %v3670_v18 = vld [vmem:[%s5417_s10 + $0x2] ss:$0 sm:$0xff] }
0x16bf   :  { %v1431_v22 = vmul.f32 0.25, %v1415_v63  ;;  %v3976_v29 = vpop.f32.mrb[29].mxu1  ;;  %v1457_v6 = vrot.slane %v1449_v19, %v4586_v48  ;;  %v1432_v30 = vmul.f32 0.25, %v1416_v4  ;;  %v2180_v31 = vadd.f32 %v1994_v24, %v5000_v26 }
0x16c0   :  { %v1997_v34 = vpop.f32.mrb[30].mxu1  ;;  %v1437_v21 = vsel %vm1421_vm8, %v1413_v53, %v1429_v2  ;;  %v1438_v38 = vsel %vm1422_vm6, %v1414_v62, %v1430_v3  ;;  %v1464_v41 = vrot.slane %v1450_v25, %v4586_v48  ;;  %vm1498_vm4 = vcmask 130048  }
0x16c1   :  { %v2181_v40 = vadd.f32 %v1997_v34, %v5005_v47  ;;  %v3977_v43 = vpop.f32.mrb[31].mxu1  ;;  %v1439_v33 = vsel %vm1423_vm3, %v1415_v63, %v1431_v22  ;;  %v1440_v44 = vsel %vm1424_vm13, %v1416_v4, %v1432_v30  ;;  %v1466_v46 = vcombine.low %v1437_v21, %v1438_v38 }
0x16c2   :  { %v2182_v42 = vadd.f32 %v5012_v28, %v2180_v31  ;;  %v1467_v49 = vcombine.low %v1439_v33, %v1440_v44  ;;  %v1465_v51 = vcombine.low %v1457_v6, %v1464_v41  ;;  %vm2050_vm3 = vcmask 523264  }
0x16c3   :  { %v2183_v50 = vadd.f32 %v5012_v28, %v2181_v40  ;;  %v1474_v56 = vrot.slane %v1466_v46, %v4586_v48  ;;  %vm1555_vm10 = vcmask 64512   ;;  %vm1620_vm12 = vcmask 1024  }
0x16c4   :  { %v3700_v54 = vmul.f32 -1.442695, %v2182_v42  ;;  %v1481_v57 = vrot.slane %v1467_v49, %v4586_v48  ;;  %vm5432_vm13 = vcmp.gt.s32.totalorder %v4570_v36, 5 }
0x16c5   :  { %v3701_v53 = vmul.f32 -1.442695, %v2183_v50 }
0x16c6   :  { %4223 = vpow2.f32 %v3700_v54  ;;  %v1482_v59 = vcombine.low %v1474_v56, %v1481_v57  ;;  %v5085_v57 = vpop.permute.xlu0 %2633 }
0x16c7   :  { %4225 = vpow2.f32 %v3701_v53  ;;  %v4174_v53 = vld [vmem:[%s5411_s4 + $0x28] sm:$0xff]  }
0x16c8   :  { %v1485_v60 = vpack.c.bf16 %v1482_v59, %v1465_v51  ;;  %v5091_v59 = vpop.permute.xlu1 %2635 }
0x16ca   :  { %3951 = vmatmul.mubr.msk.bf16.vlgmr.msra.gmra.mrb[24].mxu0 %vm1498_vm4, %v1485_v60 }
0x16cb   :  { %3963 = vmatpush3.bf16.msra.mxu0 %v4894_v61  ;;  %3966 = vmatprep.mubr.msk.bf16.mxu0 %vm4394_vm0, %v4393_v1 }
0x16cc   :  { %3964 = vmatprep.subr.bf16.mxu0 %v4393_v1 }
0x16cf   :  { %3965 = vmatpush3.bf16.msra.mxu0 %v4904_v0 }
0x16d0   :  { %v4224_v62 = vpop.eup %4223  ;;  %3978 = vmatprep.subr.bf16.mxu0 %v4393_v1 }
0x16d1   :  { %v4226_v63 = vpop.eup %4225  ;;  %v2190_v20 = vadd.f32 1.0, %v4224_v62 }
0x16d2   :  { %v2191_v39 = vadd.f32 1.0, %v4226_v63  ;;  %3967 = vmatmul.mubr.msk.bf16.vlgmr.msra.gmra.mrb[28].mxu0 %vm151_vm1, %v1845_v8 }
0x16d3   :  { %4227 = vrcp.f32 %v2190_v20  ;;  %3979 = vmatpush3.bf16.msra.mxu0 %v4947_v10  ;;  %3986 = vmatprep.mubr.msk.bf16.mxu0 %vm4394_vm0, %v4393_v1 }
0x16d4   :  { %4229 = vrcp.f32 %v2191_v39  ;;  %3980 = vmatprep.subr.bf16.mxu0 %v4393_v1 }
0x16d7   :  { %3981 = vmatpush3.bf16.msra.mxu0 %v4953_v11 }
0x16d8   :  { %3982 = vmatprep.subr.bf16.mxu0 %v4393_v1 }
0x16db   :  { %3983 = vmatpush3.bf16.msra.mxu0 %v4960_v12 }
0x16dc   :  { %3984 = vmatprep.subr.bf16.mxu0 %v4393_v1 }
0x16dd   :  { %v4228_v61 = vpop.eup %4227 }
0x16de   :  { %v4230_v0 = vpop.eup %4229 }
0x16df   :  { %v2196_v35 = vpack.c.bf16 %v4230_v0, %v4228_v61  ;;  %3985 = vmatpush3.bf16.msra.mxu0 %v4967_v13 }
0x16e0   :  { %4002 = vmatprep.subr.bf16.mxu0 %v4393_v1 }
0x16e1   :  { %3999 = vmatmul.mubr.msk.bf16.vlgmr.msra.gmra.mrb[32].mxu1 %vm2050_vm3, %v2196_v35 }
0x16e2   :  { %4011 = vmatpush3.bf16.msra.mxu1 %v4978_v16  ;;  %4014 = vmatprep.mubr.msk.bf16.mxu1 %vm4394_vm0, %v4393_v1 }
0x16e3   :  { %4012 = vmatprep.subr.bf16.mxu1 %v4393_v1 }
0x16e6   :  { %4013 = vmatpush3.bf16.msra.mxu1 %v4973_v14 }
0x16e7   :  { %4026 = vmatprep.subr.bf16.mxu1 %v4393_v1 }
0x16e9   :  { %4015 = vmatmul.mubr.bf16.vlgmr.msra.gmra.mrb[36].mxu1 %v4395_v9 }
0x16ea   :  { %4027 = vmatpush3.bf16.msra.mxu1 %v4978_v16  ;;  %4030 = vmatprep.mubr.msk.bf16.mxu1 %vm4394_vm0, %v4393_v1 }
0x16eb   :  { %4028 = vmatprep.subr.bf16.mxu1 %v4393_v1 }
0x16ee   :  { %4029 = vmatpush3.bf16.msra.mxu1 %v4973_v14 }
0x16ef   :  { %4042 = vmatprep.subr.bf16.mxu1 %v4393_v1 }
0x179d   :  { %v1536_v8 = vpop.f32.mrb[24].mxu0 }
0x179e   :  { %v1537_v10 = vadd.f32 %v3667_v7, %v1536_v8  ;;  %v3952_v11 = vpop.f32.mrb[25].mxu0 }
0x179f   :  { %v1539_v12 = vpop.f32.mrb[26].mxu0 }
0x17a0   :  { %vm1543_vm6 = vcmp.ge.f32.partialorder %v1537_v10, 0.0  ;;  %v1545_v9 = vmul.f32 0.25, %v1537_v10  ;;  %v1540_v13 = vadd.f32 %v3667_v7, %v1539_v12  ;;  %v3953_v4 = vpop.f32.mrb[27].mxu0 }
0x17a2   :  { %vm1544_vm8 = vcmp.ge.f32.partialorder %v1540_v13, 0.0  ;;  %v1546_v19 = vmul.f32 0.25, %v1540_v13  ;;  %v1547_v23 = vsel %vm1543_vm6, %v1537_v10, %v1545_v9  ;;  %vm5442_vm6 = vcmp.eq.s32.totalorder %v4602_v27, 1 }
0x17a3   :  { %v1553_v2 = vmul.f32 %v3670_v18, %v1547_v23 }
0x17a4   :  { %v1548_v24 = vsel %vm1544_vm8, %v1540_v13, %v1546_v19  ;;  %vm5443_vm8 = vcmp.eq.s32.totalorder %v4627_v58, 1 }
0x17a5   :  { %v1895_v25 = vpop.f32.mrb[28].mxu0  ;;  %v1556_v3 = vsel %vm1555_vm10, %v1553_v2, 0.0  ;;  %v1554_v22 = vmul.f32 %v3670_v18, %v1548_v24 }
0x17a6   :  { %v2001_v29 = vadd.f32 %v1895_v25, %v5000_v26  ;;  %1557 = vadd.xlane.f32.xlu0 %v1556_v3  ;;  %v3968_v6 = vpop.f32.mrb[29].mxu0 }
0x17a7   :  { %v1898_v30 = vpop.f32.mrb[30].mxu0  ;;  %v1559_v31 = vsel %vm1555_vm10, %v1554_v22, 0.0  ;;  %vm5444_vm10 = vcmp.eq.s32.totalorder %v4653_v37, 1 }
0x17a8   :  { %v2007_v34 = vadd.f32 %v5012_v28, %v2001_v29  ;;  %v2002_v21 = vadd.f32 %v1898_v30, %v5005_v47  ;;  %1560 = vadd.xlane.f32.xlu1 %v1559_v31  ;;  %v3969_v38 = vpop.f32.mrb[31].mxu0 }
0x17aa   :  { %v3686_v40 = vmul.f32 -1.442695, %v2007_v34  ;;  %v2008_v41 = vadd.f32 %v5012_v28, %v2002_v21  ;;  %v4173_v28 = vld [vmem:[%s5411_s4 + $0x20] sm:$0xff]  }
0x17ac   :  { %4231 = vpow2.f32 %v3686_v40  ;;  %v3687_v43 = vmul.f32 -1.442695, %v2008_v41 }
0x17ae   :  { %4233 = vpow2.f32 %v3687_v43 }
0x17b4   :  { %v5068_v33 = vpop.f32.mrb[32].mxu1 }
0x17b5   :  { %v4000_v44 = vpop.f32.mrb[33].mxu1 }
0x17b6   :  { %v5070_v26 = vpop.f32.mrb[34].mxu1  ;;  %v4232_v46 = vpop.eup %4231 }
0x17b7   :  { %v4001_v42 = vpop.f32.mrb[35].mxu1  ;;  %v2015_v49 = vadd.f32 1.0, %v4232_v46 }
0x17b8   :  { %v4234_v50 = vpop.eup %4233 }
0x17b9   :  { %v2016_v51 = vadd.f32 1.0, %v4234_v50  ;;  %4235 = vrcp.f32 %v2015_v49 }
0x17bb   :  { %4237 = vrcp.f32 %v2016_v51 }
0x17bc   :  { %v5095_v60 = vpop.f32.mrb[36].mxu1 }
0x17bd   :  { %v4016_v62 = vpop.f32.mrb[37].mxu1 }
0x17be   :  { %v2621_v63 = vpop.f32.mrb[38].mxu1 }
0x17bf   :  { %v4017_v20 = vpop.f32.mrb[39].mxu1 }
0x17c3   :  { %v4236_v47 = vpop.eup %4235 }
0x17c5   :  { %v4238_v54 = vpop.eup %4237 }
0x17c6   :  { %v2021_v56 = vpack.c.bf16 %v4238_v54, %v4236_v47 }
0x17c8   :  { %3987 = vmatmul.mubr.msk.bf16.vlgmr.msra.gmra.mrb[32].mxu0 %vm2050_vm3, %v2021_v56 }
0x17c9   :  { %4003 = vmatpush3.bf16.msra.mxu0 %v4173_v28  ;;  %4006 = vmatprep.mubr.msk.bf16.mxu0 %vm4394_vm0, %v4393_v1 }
0x17ca   :  { %4004 = vmatprep.subr.bf16.mxu0 %v4393_v1 }
0x17cd   :  { %4005 = vmatpush3.bf16.msra.mxu0 %v4174_v53 }
0x17ce   :  { %4018 = vmatprep.subr.bf16.mxu0 %v4393_v1 }
0x17d0   :  { %4007 = vmatmul.mubr.msk.bf16.vlgmr.msra.gmra.mrb[36].mxu0 %vm151_vm1, %v4869_v45  ;;  %v3671_v45 = vld [vmem:[%s5417_s10 + $0x3] ss:$0 sm:$0xff] }
0x17d1   :  { %4019 = vmatpush3.bf16.msra.mxu0 %v5085_v57  ;;  %4022 = vmatprep.mubr.msk.bf16.mxu0 %vm4394_vm0, %v4393_v1 }
0x17d2   :  { %4020 = vmatprep.subr.bf16.mxu0 %v4393_v1 }
0x17d5   :  { %4021 = vmatpush3.bf16.msra.mxu0 %v5091_v59 }
0x17d6   :  { %4034 = vmatprep.subr.bf16.mxu0 %v4393_v1 }
0x1833   :  { %v1558_v39 = vpop.xlane.xlu0 %1557 }
0x1834   :  { %v1566_v61 = vadd.f32 %v3671_v45, %v1558_v39 }
0x1835   :  { %v1561_v0 = vpop.xlane.xlu1 %1560 }
0x1836   :  { %v1570_v35 = vcombine.high %v1566_v61, %v1566_v61  ;;  %v1577_v7 = vrot.slane %v1566_v61, %v4586_v48  ;;  %v1567_v8 = vadd.f32 %v3671_v45, %v1561_v0 }
0x1838   :  { %v1584_v10 = vrot.slane %v1570_v35, %v4586_v48  ;;  %v1585_v11 = vcombine.high %v1577_v7, %v1577_v7  ;;  %v1587_v12 = vcombine.high %v1567_v8, %v1567_v8  ;;  %v1594_v9 = vrot.slane %v1567_v8, %v4586_v48 }
0x1839   :  { %v1612_v18 = vsel %vm335_vm2, %v1577_v7, -1e+30  ;;  %vm5433_vm2 = vcmp.gt.s32.totalorder %v4570_v36, 7 }
0x183a   :  { %v1586_v13 = vcombine.high %v1584_v10, %v1584_v10  ;;  %v1601_v4 = vrot.slane %v1587_v12, %v4586_v48  ;;  %v1613_v19 = vsel %vm423_vm5, %v1585_v11, -1e+30  ;;  %v1602_v23 = vcombine.high %v1594_v9, %v1594_v9 }
0x183b   :  { %v1616_v2 = vsel %vm690_vm11, %v1594_v9, -1e+30  ;;  %v1614_v24 = vsel %vm512_vm7, %v1584_v10, -1e+30  ;;  %v1621_v31 = vsel %vm1620_vm12, %v1612_v18, -inf  ;;  %v1622_v34 = vsel %vm1620_vm12, %v1613_v19, -inf }
0x183c   :  { %v1615_v25 = vsel %vm601_vm9, %v1586_v13, -1e+30  ;;  %v1603_v3 = vcombine.high %v1601_v4, %v1601_v4  ;;  %v1618_v22 = vsel %vm868_vm15, %v1601_v4, -1e+30  ;;  %v1617_v29 = vsel %vm5432_vm13, %v1602_v23, -1e+30 }
0x183d   :  { %v1625_v6 = vsel %vm1620_vm12, %v1616_v2, -inf  ;;  %v1629_v30 = vsel %vm1620_vm12, %v1618_v22, -inf  ;;  %v1627_v38 = vsel %vm1620_vm12, %v1617_v29, -inf  ;;  %v1623_v40 = vsel %vm1620_vm12, %v1614_v24, -inf }
0x183e   :  { %v1619_v21 = vsel %vm5433_vm2, %v1603_v3, -1e+30  ;;  %v1624_v41 = vsel %vm1620_vm12, %v1615_v25, -inf  ;;  %v1628_v43 = vmax.f32 %v1622_v34, %v1627_v38  ;;  %v1626_v46 = vmax.f32 %v1621_v31, %v1625_v6 }
0x183f   :  { %v1631_v44 = vsel %vm1620_vm12, %v1619_v21, -inf  ;;  %v1630_v42 = vmax.f32 %v1623_v40, %v1629_v30  ;;  %vm5434_vm5 = vcmask 779264   ;;  %vm5445_vm13 = vcmp.eq.s32.totalorder %v4677_v17, 1  ;;  %v5250_v17 = vld [vmem:[%s5411_s4 + $0x38] sm:$0xff]  }
0x1840   :  { %v1632_v49 = vmax.f32 %v1624_v41, %v1631_v44  ;;  %v1633_v50 = vmax.f32 %v1626_v46, %v1628_v43  ;;  %vm5435_vm7 = vmmov %vm5434_vm5  ;;  %vm5446_vm2 = vcmp.eq.s32.totalorder %v4701_v52, 1 }
0x1841   :  { %vm5436_vm9 = vmmov %vm5434_vm5 }
0x1842   :  { %v1634_v51 = vmax.f32 %v1630_v42, %v1632_v49  ;;  %vm5437_vm11 = vmmov %vm5434_vm5 }
0x1843   :  { %vm5438_vm14 = vmmov %vm5434_vm5 }
0x1844   :  { %v1635_v47 = vmax.f32 %v1633_v50, %v1634_v51  ;;  %vm5439_vm15 = vmmov %vm5434_vm5 }
0x1845   :  { %vm5440_vm4 = vmmov %vm5434_vm5 }
0x1846   :  { %v1636_v54 = vsub.f32 %v1612_v18, %v1635_v47  ;;  %v1637_v28 = vsub.f32 %v1613_v19, %v1635_v47  ;;  %v1638_v56 = vsub.f32 %v1614_v24, %v1635_v47  ;;  %v1639_v36 = vsub.f32 %v1615_v25, %v1635_v47  ;;  %vm5441_vm3 = vmmov %vm5440_vm4 }
0x1847   :  { %v1640_v53 = vsub.f32 %v1616_v2, %v1635_v47  ;;  %v1641_v20 = vsub.f32 %v1617_v29, %v1635_v47  ;;  %v1642_v61 = vsub.f32 %v1618_v22, %v1635_v47  ;;  %v1643_v35 = vsub.f32 %v1619_v21, %v1635_v47 }
0x1848   :  { %v1644_v62 = vmul.f32 1.442695, %v1636_v54  ;;  %v1646_v45 = vmul.f32 1.442695, %v1637_v28  ;;  %v1648_v63 = vmul.f32 1.442695, %v1638_v56 }
0x1849   :  { %v1650_v39 = vmul.f32 1.442695, %v1639_v36  ;;  %v1652_v0 = vmul.f32 1.442695, %v1640_v53  ;;  %v1654_v7 = vmul.f32 1.442695, %v1641_v20 }
0x184a   :  { %4239 = vpow2.f32 %v1644_v62  ;;  %v1656_v8 = vmul.f32 1.442695, %v1642_v61  ;;  %v1658_v10 = vmul.f32 1.442695, %v1643_v35 }
0x184b   :  { %4241 = vpow2.f32 %v1646_v45 }
0x184c   :  { %4243 = vpow2.f32 %v1648_v63  ;;  %v3715_v63 = vld [vmem:[%s5412_s5 + $0x2] ss:$0 sm:$0xff] }
0x184d   :  { %4245 = vpow2.f32 %v1650_v39 }
0x184e   :  { %4247 = vpow2.f32 %v1652_v0 }
0x184f   :  { %4249 = vpow2.f32 %v1654_v7 }
0x1850   :  { %4251 = vpow2.f32 %v1656_v8 }
0x1851   :  { %4253 = vpow2.f32 %v1658_v10 }
0x1854   :  { %v4240_v11 = vpop.eup %4239 }
0x1855   :  { %v4242_v12 = vpop.eup %4241  ;;  %v1660_v9 = vsel %vm1620_vm12, %v4240_v11, 0.0 }
0x1856   :  { %v4244_v13 = vpop.eup %4243  ;;  %v1661_v4 = vsel %vm1620_vm12, %v4242_v12, 0.0 }
0x1857   :  { %v4246_v18 = vpop.eup %4245  ;;  %v1662_v19 = vadd.f32 %v1661_v4, %v1660_v9  ;;  %v1663_v23 = vsel %vm1620_vm12, %v4244_v13, 0.0 }
0x1858   :  { %v4248_v2 = vpop.eup %4247  ;;  %v1665_v25 = vsel %vm1620_vm12, %v4246_v18, 0.0 }
0x1859   :  { %v1664_v24 = vadd.f32 %v1663_v23, %v1662_v19  ;;  %v4250_v3 = vpop.eup %4249  ;;  %v1667_v29 = vsel %vm1620_vm12, %v4248_v2, 0.0 }
0x185a   :  { %v4252_v6 = vpop.eup %4251  ;;  %v1669_v31 = vsel %vm1620_vm12, %v4250_v3, 0.0 }
0x185b   :  { %v1666_v22 = vadd.f32 %v1665_v25, %v1664_v24  ;;  %v4254_v34 = vpop.eup %4253  ;;  %v1671_v38 = vsel %vm1620_vm12, %v4252_v6, 0.0 }
0x185c   :  { %v1673_v41 = vsel %vm1620_vm12, %v4254_v34, 0.0 }
0x185d   :  { %v1668_v30 = vadd.f32 %v1667_v29, %v1666_v22 }
0x185f   :  { %v1670_v21 = vadd.f32 %v1669_v31, %v1668_v30 }
0x1861   :  { %v1672_v40 = vadd.f32 %v1671_v38, %v1670_v21 }
0x1863   :  { %v1674_v43 = vadd.f32 %v1673_v41, %v1672_v40 }
0x1865   :  { %4255 = vrcp.f32 %v1674_v43 }
0x186f   :  { %v4256_v44 = vpop.eup %4255 }
0x1870   :  { %v1680_v46 = vmul.f32 %v4256_v44, %v4248_v2  ;;  %v1681_v42 = vmul.f32 %v4256_v44, %v4250_v3  ;;  %v1682_v49 = vmul.f32 %v4256_v44, %v4252_v6  ;;  %v1683_v50 = vmul.f32 %v4256_v44, %v4254_v34 }
0x1871   :  { %v1676_v51 = vmul.f32 %v4256_v44, %v4240_v11  ;;  %v1677_v47 = vmul.f32 %v4256_v44, %v4242_v12  ;;  %v1678_v54 = vmul.f32 %v4256_v44, %v4244_v13  ;;  %v1679_v28 = vmul.f32 %v4256_v44, %v4246_v18 }
0x1872   :  { %1688 = vst.msk [vmem:[#allocation5 + $0x8] sm:$0x3] %vm1620_vm12, %v1680_v46  ;;  %1689 = vst.msk [vmem:[#allocation5 + $0xa] sm:$0x3] %vm1620_vm12, %v1681_v42 }
0x1873   :  { %1690 = vst.msk [vmem:[#allocation5 + $0xc] sm:$0x3] %vm1620_vm12, %v1682_v49  ;;  %1691 = vst.msk [vmem:[#allocation5 + $0xe] sm:$0x3] %vm1620_vm12, %v1683_v50 }
0x1874   :  { %1684 = vst.msk [vmem:[#allocation5] sm:$0x3] %vm1620_vm12, %v1676_v51  ;;  %1685 = vst.msk [vmem:[#allocation5 + $0x2] sm:$0x3] %vm1620_vm12, %v1677_v47 }
0x1875   :  { %1686 = vst.msk [vmem:[#allocation5 + $0x4] sm:$0x3] %vm1620_vm12, %v1678_v54  ;;  %1687 = vst.msk [vmem:[#allocation5 + $0x6] sm:$0x3] %vm1620_vm12, %v1679_v28 }
0x187b   :  { %v2688_v56 = vld [vmem:[#allocation5] sm:$0x3]  ;;  %v2816_v28 = vld [vmem:[#allocation5 + $0x2] sm:$0x3] }
0x187c   :  { %2691 = vperm.xlu1 %4150, %v2688_v56  }
0x189b   :  { %v5144_v36 = vpop.f32.mrb[32].mxu0 }
0x189c   :  { %v3988_v53 = vpop.f32.mrb[33].mxu0 }
0x189d   :  { %v5146_v62 = vpop.f32.mrb[34].mxu0 }
0x189e   :  { %v3989_v45 = vpop.f32.mrb[35].mxu0 }
0x18a3   :  { %v2512_v20 = vpop.f32.mrb[36].mxu0 }
0x18a4   :  { %v2513_v39 = vadd.f32 %v3715_v63, %v2512_v20  ;;  %v4008_v61 = vpop.f32.mrb[37].mxu0 }
0x18a5   :  { %v2515_v0 = vpop.f32.mrb[38].mxu0 }
0x18a6   :  { %v2521_v35 = vcombine.high %v2513_v39, %v2513_v39  ;;  %v2528_v7 = vrot.slane %v2513_v39, %v4586_v48  ;;  %v2516_v8 = vadd.f32 %v3715_v63, %v2515_v0  ;;  %v4009_v10 = vpop.f32.mrb[39].mxu0 }
0x18a8   :  { %v2535_v11 = vrot.slane %v2521_v35, %v4586_v48  ;;  %v2536_v12 = vcombine.high %v2528_v7, %v2528_v7  ;;  %2563 = vst.msk [vmem:[#allocation4] sm:$0x3] %vm5434_vm5, %v2528_v7  ;;  %v2538_v9 = vcombine.high %v2516_v8, %v2516_v8  ;;  %v2545_v13 = vrot.slane %v2516_v8, %v4586_v48 }
0x18a9   :  { %vm5447_vm5 = vcmp.eq.s32.totalorder %v4725_v32, 1 }
0x18aa   :  { %v2537_v4 = vcombine.high %v2535_v11, %v2535_v11  ;;  %2564 = vst.msk [vmem:[#allocation4 + $0x2] sm:$0x3] %vm5435_vm7, %v2536_v12  ;;  %v2552_v18 = vrot.slane %v2538_v9, %v4586_v48  ;;  %v2553_v19 = vcombine.high %v2545_v13, %v2545_v13  ;;  %vm2116_vm7 = vcmask 259072  }
0x18ab   :  { %2565 = vst.msk [vmem:[#allocation4 + $0x4] sm:$0x3] %vm5436_vm9, %v2535_v11 }
0x18ac   :  { %2567 = vst.msk [vmem:[#allocation4 + $0x8] sm:$0x3] %vm5437_vm11, %v2545_v13  ;;  %v2554_v23 = vcombine.high %v2552_v18, %v2552_v18 }
0x18ad   :  { %2566 = vst.msk [vmem:[#allocation4 + $0x6] sm:$0x3] %vm5438_vm14, %v2537_v4 }
0x18ae   :  { %2568 = vst.msk [vmem:[#allocation4 + $0xa] sm:$0x3] %vm5439_vm15, %v2553_v19 }
0x18af   :  { %2569 = vst.msk [vmem:[#allocation4 + $0xc] sm:$0x3] %vm5440_vm4, %v2552_v18  ;;  %v2571_v2 = vld [vmem:[#allocation4] sm:$0x3] }
0x18b0   :  { %2570 = vst.msk [vmem:[#allocation4 + $0xe] sm:$0x3] %vm5441_vm3, %v2554_v23  ;;  %v2624_v24 = vadd.f32 %v5095_v60, %v2571_v2 }
0x18b1   :  { %v2705_v27 = vld [vmem:[#allocation4 + $0x2] sm:$0x3] }
0x18b2   :  { %v3721_v25 = vmul.f32 -1.442695, %v2624_v24  ;;  %v2833_v58 = vld [vmem:[#allocation4 + $0x4] sm:$0x3] }
0x18b4   :  { %4257 = vpow2.f32 %v3721_v25  ;;  %v2961_v37 = vld [vmem:[#allocation4 + $0x6] sm:$0x3] }
0x18b5   :  { %v3217_v52 = vld [vmem:[#allocation4 + $0xa] sm:$0x3] }
0x18b6   :  { %v3345_v32 = vld [vmem:[#allocation4 + $0xc] sm:$0x3] }
0x18be   :  { %v4258_v3 = vpop.eup %4257 }
0x18bf   :  { %v2628_v22 = vadd.f32 1.0, %v4258_v3 }
0x18c1   :  { %4259 = vrcp.f32 %v2628_v22 }
0x18cb   :  { %v4260_v29 = vpop.eup %4259 }
0x18cc   :  { %v2631_v6 = vmul.f32 0.0, %v4260_v29 }
0x18ce   :  { %v2632_v30 = vpack.c.bf16 %v2631_v6, %v2631_v6 }
0x18d0   :  { %4023 = vmatmul.mubr.msk.bf16.vlgmr.msra.gmra.mrb[40].mxu0 %vm151_vm1, %v2632_v30 }
0x18d1   :  { %4035 = vmatpush3.bf16.msra.mxu0 %v5085_v57  ;;  %4038 = vmatprep.mubr.msk.bf16.mxu0 %vm4394_vm0, %v4393_v1 }
0x18d2   :  { %4036 = vmatprep.subr.bf16.mxu0 %v4393_v1 }
0x18d5   :  { %4037 = vmatpush3.bf16.msra.mxu0 %v5091_v59 }
0x18d6   :  { %4050 = vmatprep.subr.bf16.mxu0 %v4393_v1 }
0x18fb   :  { %v2692_v43 = vpop.permute.xlu1 %2691 }
0x18fc   :  { %v2694_v44 = vmul.f32 %v4260_v29, %v2692_v43 }
0x18fe   :  { %v2695_v46 = vsub.f32 1.0, %v2694_v44 }
0x1900   :  { %v2696_v49 = vmul.f32 0.0, %v2695_v46 }
0x19a3   :  { %v2676_v60 = vpop.f32.mrb[40].mxu0 }
0x19a4   :  { %2683 = vrot.lane.b32.xlu0 %v2676_v60, %s4397_s13  ;;  %v4024_v31 = vpop.f32.mrb[41].mxu0 }
0x19a5   :  { %v2679_v34 = vpop.f32.mrb[42].mxu0  ;;  %v2944_v31 = vld [vmem:[#allocation5 + $0x4] sm:$0x3] }
0x19a6   :  { %v4025_v21 = vpop.f32.mrb[43].mxu0 }
0x1a16   :  { %v2684_v38 = vpop.permute.xlu0 %2683 }
0x1a17   :  { %v2686_v40 = vadd.f32 %v2684_v38, %v2571_v2 }
0x1a19   :  { %4261 = vtanh.f32 %v2686_v40 }
0x1a23   :  { %v4262_v41 = vpop.eup %4261 }
0x1a24   :  { %2698 = vrot.lane.b32.xlu0 %v4262_v41, %s4399_s16 }
0x1a96   :  { %v2699_v42 = vpop.permute.xlu0 %2698 }
0x1a97   :  { %v2701_v50 = vmul.f32 %v2699_v42, %v2694_v44 }
0x1a99   :  { %v2702_v51 = vadd.f32 %v2701_v50, %v2696_v49 }
0x1a9b   :  { %v2703_v47 = vsel %vm5442_vm6, %v2702_v51, 0.0 }
0x1a9c   :  { %2761 = vrot.lane.b32.xlu0 %v2703_v47, %s4399_s16  ;;  %v2706_v54 = vpack.c.bf16 %v2703_v47, %v2703_v47 }
0x1a9e   :  { %2708 = vrot.lane.b32.xlu1 %v2706_v54, %s4399_s16 }
0x1aa0   :  { %2819 = vperm.xlu0 %4151, %v2816_v28  }
0x1b0e   :  { %v2762_v8 = vpop.permute.xlu0 %2761 }
0x1b10   :  { %v2709_v56 = vpop.permute.xlu1 %2708 }
0x1b11   :  { %4031 = vmatmul.mubr.msk.bf16.vlgmr.msra.gmra.mrb[40].mxu1 %vm151_vm1, %v2709_v56 }
0x1b12   :  { %4043 = vmatpush3.bf16.msra.mxu1 %v4978_v16  ;;  %4046 = vmatprep.mubr.msk.bf16.mxu1 %vm4394_vm0, %v4393_v1 }
0x1b13   :  { %4044 = vmatprep.subr.bf16.mxu1 %v4393_v1 }
0x1b16   :  { %4045 = vmatpush3.bf16.msra.mxu1 %v4973_v14 }
0x1b17   :  { %4058 = vmatprep.subr.bf16.mxu1 %v4393_v1 }
0x1b1f   :  { %v2820_v2 = vpop.permute.xlu0 %2819 }
0x1be4   :  { %v2747_v53 = vpop.f32.mrb[40].mxu1 }
0x1be5   :  { %v2753_v45 = vadd.f32 %v2747_v53, %v2705_v27  ;;  %v4032_v63 = vpop.f32.mrb[41].mxu1 }
0x1be6   :  { %v2750_v20 = vpop.f32.mrb[42].mxu1 }
0x1be7   :  { %v3724_v39 = vmul.f32 -1.442695, %v2753_v45  ;;  %v4033_v61 = vpop.f32.mrb[43].mxu1 }
0x1be9   :  { %4263 = vpow2.f32 %v3724_v39 }
0x1bf3   :  { %v4264_v0 = vpop.eup %4263 }
0x1bf4   :  { %v2757_v35 = vadd.f32 1.0, %v4264_v0 }
0x1bf6   :  { %4265 = vrcp.f32 %v2757_v35 }
0x1c00   :  { %v4266_v7 = vpop.eup %4265 }
0x1c01   :  { %v2764_v10 = vmul.f32 %v4266_v7, %v2762_v8  ;;  %v2822_v24 = vmul.f32 %v4266_v7, %v2820_v2 }
0x1c03   :  { %v2765_v11 = vpack.c.bf16 %v2764_v10, %v2764_v10  ;;  %v2823_v25 = vsub.f32 1.0, %v2822_v24 }
0x1c05   :  { %4039 = vmatmul.mubr.msk.bf16.vlgmr.msra.gmra.mrb[44].mxu0 %vm151_vm1, %v2765_v11  ;;  %v2824_v22 = vmul.f32 %v2823_v25, %v2703_v47 }
0x1c06   :  { %4051 = vmatpush3.bf16.msra.mxu0 %v5085_v57  ;;  %4054 = vmatprep.mubr.msk.bf16.mxu0 %vm4394_vm0, %v4393_v1 }
0x1c07   :  { %4052 = vmatprep.subr.bf16.mxu0 %v4393_v1 }
0x1c0a   :  { %4053 = vmatpush3.bf16.msra.mxu0 %v5091_v59 }
0x1c0b   :  { %4066 = vmatprep.subr.bf16.mxu0 %v4393_v1 }
0x1cd8   :  { %v2803_v12 = vpop.f32.mrb[44].mxu0 }
0x1cd9   :  { %2810 = vrot.lane.b32.xlu1 %v2803_v12, %s4397_s13  ;;  %v4040_v9 = vpop.f32.mrb[45].mxu0  ;;  %v3072_v12 = vld [vmem:[#allocation5 + $0x6] sm:$0x3] }
0x1cda   :  { %v2806_v13 = vpop.f32.mrb[46].mxu0 }
0x1cdb   :  { %v4041_v4 = vpop.f32.mrb[47].mxu0 }
0x1d4b   :  { %v2811_v18 = vpop.permute.xlu1 %2810 }
0x1d4c   :  { %v2813_v19 = vadd.f32 %v2811_v18, %v2705_v27 }
0x1d4e   :  { %4267 = vtanh.f32 %v2813_v19 }
0x1d58   :  { %v4268_v23 = vpop.eup %4267 }
0x1d59   :  { %2826 = vrot.lane.b32.xlu1 %v4268_v23, %s4399_s16 }
0x1dcb   :  { %v2827_v3 = vpop.permute.xlu1 %2826 }
0x1dcc   :  { %v2829_v29 = vmul.f32 %v2827_v3, %v2822_v24 }
0x1dce   :  { %v2830_v6 = vadd.f32 %v2829_v29, %v2824_v22 }
0x1dd0   :  { %v2831_v30 = vsel %vm5443_vm8, %v2830_v6, %v2703_v47  ;;  %vm5449_vm8 = vcmp.eq.s32.totalorder %v4778_v55, 1 }
0x1dd1   :  { %2889 = vrot.lane.b32.xlu1 %v2831_v30, %s4399_s16  ;;  %v2834_v60 = vpack.c.bf16 %v2831_v30, %v2831_v30 }
0x1dd3   :  { %2836 = vrot.lane.b32.xlu0 %v2834_v60, %s4399_s16 }
0x1dd5   :  { %2947 = vperm.xlu1 %4150, %v2944_v31  }
0x1e43   :  { %v2890_v50 = vpop.permute.xlu1 %2889 }
0x1e45   :  { %v2837_v34 = vpop.permute.xlu0 %2836 }
0x1e46   :  { %4047 = vmatmul.mubr.msk.bf16.vlgmr.msra.gmra.mrb[44].mxu1 %vm151_vm1, %v2837_v34 }
0x1e47   :  { %4059 = vmatpush3.bf16.msra.mxu1 %v4978_v16  ;;  %4062 = vmatprep.mubr.msk.bf16.mxu1 %vm4394_vm0, %v4393_v1 }
0x1e48   :  { %4060 = vmatprep.subr.bf16.mxu1 %v4393_v1 }
0x1e4b   :  { %4061 = vmatpush3.bf16.msra.mxu1 %v4973_v14 }
0x1e4c   :  { %4074 = vmatprep.subr.bf16.mxu1 %v4393_v1 }
0x1e54   :  { %v2948_v20 = vpop.permute.xlu1 %2947 }
0x1f19   :  { %v2875_v21 = vpop.f32.mrb[44].mxu1 }
0x1f1a   :  { %v2881_v38 = vadd.f32 %v2875_v21, %v2833_v58  ;;  %v4048_v40 = vpop.f32.mrb[45].mxu1 }
0x1f1b   :  { %v2878_v41 = vpop.f32.mrb[46].mxu1 }
0x1f1c   :  { %v3727_v43 = vmul.f32 -1.442695, %v2881_v38  ;;  %v4049_v44 = vpop.f32.mrb[47].mxu1 }
0x1f1e   :  { %4269 = vpow2.f32 %v3727_v43 }
0x1f28   :  { %v4270_v46 = vpop.eup %4269 }
0x1f29   :  { %v2885_v42 = vadd.f32 1.0, %v4270_v46 }
0x1f2b   :  { %4271 = vrcp.f32 %v2885_v42 }
0x1f35   :  { %v4272_v49 = vpop.eup %4271 }
0x1f36   :  { %v2892_v51 = vmul.f32 %v4272_v49, %v2890_v50  ;;  %v2950_v39 = vmul.f32 %v4272_v49, %v2948_v20  ;;  %v3200_v50 = vld [vmem:[#allocation5 + $0x8] sm:$0x3] }
0x1f38   :  { %v2893_v47 = vpack.c.bf16 %v2892_v51, %v2892_v51  ;;  %v2951_v61 = vsub.f32 1.0, %v2950_v39 }
0x1f3a   :  { %4055 = vmatmul.mubr.msk.bf16.vlgmr.msra.gmra.mrb[48].mxu0 %vm151_vm1, %v2893_v47  ;;  %v2952_v35 = vmul.f32 %v2951_v61, %v2831_v30  ;;  %v5241_v47 = vld [vmem:[%s5411_s4 + $0x30] sm:$0xff]  }
0x1f3b   :  { %4067 = vmatpush3.bf16.msra.mxu0 %v5085_v57  ;;  %4070 = vmatprep.mubr.msk.bf16.mxu0 %vm4394_vm0, %v4393_v1 }
0x1f3c   :  { %4068 = vmatprep.subr.bf16.mxu0 %v4393_v1 }
0x1f3f   :  { %4069 = vmatpush3.bf16.msra.mxu0 %v5091_v59 }
0x1f40   :  { %4082 = vmatprep.subr.bf16.mxu0 %v4393_v1 }
0x200d   :  { %v2931_v54 = vpop.f32.mrb[48].mxu0 }
0x200e   :  { %2938 = vrot.lane.b32.xlu0 %v2931_v54, %s4397_s13  ;;  %v4056_v28 = vpop.f32.mrb[49].mxu0  ;;  %v3089_v54 = vld [vmem:[#allocation4 + $0x8] sm:$0x3] }
0x200f   :  { %v2934_v56 = vpop.f32.mrb[50].mxu0 }
0x2010   :  { %v4057_v27 = vpop.f32.mrb[51].mxu0 }
0x2080   :  { %v2939_v53 = vpop.permute.xlu0 %2938 }
0x2081   :  { %v2941_v45 = vadd.f32 %v2939_v53, %v2833_v58 }
0x2083   :  { %4273 = vtanh.f32 %v2941_v45 }
0x208d   :  { %v4274_v63 = vpop.eup %4273 }
0x208e   :  { %2954 = vrot.lane.b32.xlu0 %v4274_v63, %s4399_s16 }
0x2100   :  { %v2955_v0 = vpop.permute.xlu0 %2954 }
0x2101   :  { %v2957_v7 = vmul.f32 %v2955_v0, %v2950_v39 }
0x2103   :  { %v2958_v8 = vadd.f32 %v2957_v7, %v2952_v35 }
0x2105   :  { %v2959_v10 = vsel %vm5444_vm10, %v2958_v8, %v2831_v30  ;;  %vm5450_vm10 = vcmask 254976  }
0x2106   :  { %3017 = vrot.lane.b32.xlu0 %v2959_v10, %s4399_s16  ;;  %v2962_v11 = vpack.c.bf16 %v2959_v10, %v2959_v10 }
0x2108   :  { %2964 = vrot.lane.b32.xlu1 %v2962_v11, %s4399_s16 }
0x210a   :  { %3075 = vperm.xlu0 %4151, %v3072_v12  }
0x2178   :  { %v3018_v3 = vpop.permute.xlu0 %3017 }
0x217a   :  { %v2965_v9 = vpop.permute.xlu1 %2964 }
0x217b   :  { %4063 = vmatmul.mubr.msk.bf16.vlgmr.msra.gmra.mrb[48].mxu1 %vm151_vm1, %v2965_v9 }
0x217c   :  { %4075 = vmatpush3.bf16.msra.mxu1 %v4978_v16  ;;  %4078 = vmatprep.mubr.msk.bf16.mxu1 %vm4394_vm0, %v4393_v1 }
0x217d   :  { %4076 = vmatprep.subr.bf16.mxu1 %v4393_v1 }
0x2180   :  { %4077 = vmatpush3.bf16.msra.mxu1 %v4973_v14 }
0x2181   :  { %4090 = vmatprep.subr.bf16.mxu1 %v4393_v1 }
0x2189   :  { %v3076_v21 = vpop.permute.xlu0 %3075 }
0x224e   :  { %v3003_v13 = vpop.f32.mrb[48].mxu1 }
0x224f   :  { %v3009_v4 = vadd.f32 %v3003_v13, %v2961_v37  ;;  %v4064_v18 = vpop.f32.mrb[49].mxu1 }
0x2250   :  { %v3006_v19 = vpop.f32.mrb[50].mxu1 }
0x2251   :  { %v3730_v23 = vmul.f32 -1.442695, %v3009_v4  ;;  %v4065_v2 = vpop.f32.mrb[51].mxu1 }
0x2253   :  { %4275 = vpow2.f32 %v3730_v23 }
0x225d   :  { %v4276_v24 = vpop.eup %4275 }
0x225e   :  { %v3013_v25 = vadd.f32 1.0, %v4276_v24 }
0x2260   :  { %4277 = vrcp.f32 %v3013_v25 }
0x226a   :  { %v4278_v16 = vpop.eup %4277 }
0x226b   :  { %v3020_v22 = vmul.f32 %v4278_v16, %v3018_v3  ;;  %v3078_v38 = vmul.f32 %v4278_v16, %v3076_v21 }
0x226d   :  { %v3021_v29 = vpack.c.bf16 %v3020_v22, %v3020_v22  ;;  %v3079_v40 = vsub.f32 1.0, %v3078_v38  ;;  %v3328_v22 = vld [vmem:[#allocation5 + $0xa] sm:$0x3] }
0x226f   :  { %4071 = vmatmul.mubr.msk.bf16.vlgmr.msra.gmra.mrb[52].mxu0 %vm151_vm1, %v3021_v29  ;;  %v3080_v43 = vmul.f32 %v3079_v40, %v2959_v10 }
0x2270   :  { %4083 = vmatpush3.bf16.msra.mxu0 %v5085_v57  ;;  %4086 = vmatprep.mubr.msk.bf16.mxu0 %vm4394_vm0, %v4393_v1 }
0x2271   :  { %4084 = vmatprep.subr.bf16.mxu0 %v4393_v1 }
0x2274   :  { %4085 = vmatpush3.bf16.msra.mxu0 %v5091_v59 }
0x2275   :  { %4098 = vmatprep.subr.bf16.mxu0 %v4393_v1 }
0x2342   :  { %v3059_v14 = vpop.f32.mrb[52].mxu0 }
0x2343   :  { %3066 = vrot.lane.b32.xlu1 %v3059_v14, %s4397_s13  ;;  %v4072_v6 = vpop.f32.mrb[53].mxu0 }
0x2344   :  { %v3062_v30 = vpop.f32.mrb[54].mxu0 }
0x2345   :  { %v4073_v60 = vpop.f32.mrb[55].mxu0 }
0x23b5   :  { %v3067_v31 = vpop.permute.xlu1 %3066 }
0x23b6   :  { %v3069_v34 = vadd.f32 %v3067_v31, %v2961_v37 }
0x23b8   :  { %4279 = vtanh.f32 %v3069_v34 }
0x23c2   :  { %v4280_v58 = vpop.eup %4279 }
0x23c3   :  { %3082 = vrot.lane.b32.xlu1 %v4280_v58, %s4399_s16 }
0x2435   :  { %v3083_v41 = vpop.permute.xlu1 %3082 }
0x2436   :  { %v3085_v44 = vmul.f32 %v3083_v41, %v3078_v38 }
0x2438   :  { %v3086_v46 = vadd.f32 %v3085_v44, %v3080_v43 }
0x243a   :  { %v3087_v42 = vsel %vm5445_vm13, %v3086_v46, %v2959_v10 }
0x243b   :  { %3145 = vrot.lane.b32.xlu1 %v3087_v42, %s4399_s16  ;;  %v3090_v49 = vpack.c.bf16 %v3087_v42, %v3087_v42 }
0x243d   :  { %3092 = vrot.lane.b32.xlu0 %v3090_v49, %s4399_s16 }
0x243f   :  { %3203 = vperm.xlu1 %4150, %v3200_v50  }
0x24ad   :  { %v3146_v0 = vpop.permute.xlu1 %3145 }
0x24af   :  { %v3093_v51 = vpop.permute.xlu0 %3092 }
0x24b0   :  { %4079 = vmatmul.mubr.msk.bf16.vlgmr.msra.gmra.mrb[52].mxu1 %vm151_vm1, %v3093_v51 }
0x24b1   :  { %4091 = vmatpush3.bf16.msra.mxu1 %v5241_v47  ;;  %4094 = vmatprep.mubr.msk.bf16.mxu1 %vm4394_vm0, %v4393_v1 }
0x24b2   :  { %4092 = vmatprep.subr.bf16.mxu1 %v4393_v1 }
0x24b5   :  { %4093 = vmatpush3.bf16.msra.mxu1 %v5250_v17 }
0x24b6   :  { %4106 = vmatprep.subr.bf16.mxu1 %v4393_v1 }
0x24be   :  { %v3204_v4 = vpop.permute.xlu1 %3203 }
0x2583   :  { %v3131_v28 = vpop.f32.mrb[52].mxu1 }
0x2584   :  { %v3137_v56 = vadd.f32 %v3131_v28, %v3089_v54  ;;  %v4080_v27 = vpop.f32.mrb[53].mxu1 }
0x2585   :  { %v3134_v53 = vpop.f32.mrb[54].mxu1 }
0x2586   :  { %v3733_v45 = vmul.f32 -1.442695, %v3137_v56  ;;  %v4081_v63 = vpop.f32.mrb[55].mxu1 }
0x2588   :  { %4281 = vpow2.f32 %v3733_v45 }
0x2592   :  { %v4282_v20 = vpop.eup %4281 }
0x2593   :  { %v3141_v39 = vadd.f32 1.0, %v4282_v20 }
0x2595   :  { %4283 = vrcp.f32 %v3141_v39 }
0x259f   :  { %v4284_v61 = vpop.eup %4283 }
0x25a0   :  { %v3148_v35 = vmul.f32 %v4284_v61, %v3146_v0  ;;  %v3206_v18 = vmul.f32 %v4284_v61, %v3204_v4  ;;  %v3456_v0 = vld [vmem:[#allocation5 + $0xc] sm:$0x3] }
0x25a2   :  { %v3149_v7 = vpack.c.bf16 %v3148_v35, %v3148_v35  ;;  %v3207_v19 = vsub.f32 1.0, %v3206_v18 }
0x25a4   :  { %4087 = vmatmul.mubr.msk.bf16.vlgmr.msra.gmra.mrb[56].mxu0 %vm151_vm1, %v3149_v7  ;;  %v3208_v2 = vmul.f32 %v3207_v19, %v3087_v42 }
0x25a5   :  { %4099 = vmatpush3.bf16.msra.mxu0 %v5085_v57  ;;  %4102 = vmatprep.mubr.msk.bf16.mxu0 %vm4394_vm0, %v4393_v1 }
0x25a6   :  { %4100 = vmatprep.subr.bf16.mxu0 %v4393_v1 }
0x25a9   :  { %4101 = vmatpush3.bf16.msra.mxu0 %v5091_v59 }
0x25aa   :  { %4114 = vmatprep.subr.bf16.mxu0 %v4393_v1 }
0x2677   :  { %v3187_v8 = vpop.f32.mrb[56].mxu0 }
0x2678   :  { %3194 = vrot.lane.b32.xlu0 %v3187_v8, %s4397_s13  ;;  %v4088_v10 = vpop.f32.mrb[57].mxu0 }
0x2679   :  { %v3190_v11 = vpop.f32.mrb[58].mxu0 }
0x267a   :  { %v4089_v12 = vpop.f32.mrb[59].mxu0 }
0x26ea   :  { %v3195_v9 = vpop.permute.xlu0 %3194 }
0x26eb   :  { %v3197_v37 = vadd.f32 %v3195_v9, %v3089_v54 }
0x26ed   :  { %4285 = vtanh.f32 %v3197_v37 }
0x26f7   :  { %v4286_v13 = vpop.eup %4285 }
0x26f8   :  { %3210 = vrot.lane.b32.xlu0 %v4286_v13, %s4399_s16 }
0x276a   :  { %v3211_v23 = vpop.permute.xlu0 %3210 }
0x276b   :  { %v3213_v24 = vmul.f32 %v3211_v23, %v3206_v18 }
0x276d   :  { %v3214_v25 = vadd.f32 %v3213_v24, %v3208_v2 }
0x276f   :  { %v3215_v16 = vsel %vm5446_vm2, %v3214_v25, %v3087_v42 }
0x2770   :  { %3273 = vrot.lane.b32.xlu0 %v3215_v16, %s4399_s16  ;;  %v3218_v3 = vpack.c.bf16 %v3215_v16, %v3215_v16 }
0x2772   :  { %3220 = vrot.lane.b32.xlu1 %v3218_v3, %s4399_s16 }
0x2774   :  { %3331 = vperm.xlu0 %4151, %v3328_v22  }
0x27e2   :  { %v3274_v40 = vpop.permute.xlu0 %3273 }
0x27e4   :  { %v3221_v29 = vpop.permute.xlu1 %3220 }
0x27e5   :  { %4095 = vmatmul.mubr.msk.bf16.vlgmr.msra.gmra.mrb[56].mxu1 %vm151_vm1, %v3221_v29 }
0x27e6   :  { %4107 = vmatpush3.bf16.msra.mxu1 %v5241_v47  ;;  %4110 = vmatprep.mubr.msk.bf16.mxu1 %vm4394_vm0, %v4393_v1 }
0x27e7   :  { %4108 = vmatprep.subr.bf16.mxu1 %v4393_v1 }
0x27ea   :  { %4109 = vmatpush3.bf16.msra.mxu1 %v5250_v17 }
0x27eb   :  { %4122 = vmatprep.subr.bf16.mxu1 %v4393_v1 }
0x27f3   :  { %v3332_v28 = vpop.permute.xlu0 %3331 }
0x28b8   :  { %v3259_v14 = vpop.f32.mrb[56].mxu1 }
0x28b9   :  { %v3265_v6 = vadd.f32 %v3259_v14, %v3217_v52  ;;  %v4096_v30 = vpop.f32.mrb[57].mxu1 }
0x28ba   :  { %v3262_v60 = vpop.f32.mrb[58].mxu1 }
0x28bb   :  { %v3736_v31 = vmul.f32 -1.442695, %v3265_v6  ;;  %v4097_v34 = vpop.f32.mrb[59].mxu1 }
0x28bd   :  { %4287 = vpow2.f32 %v3736_v31 }
0x28c7   :  { %v4288_v58 = vpop.eup %4287 }
0x28c8   :  { %v3269_v21 = vadd.f32 1.0, %v4288_v58 }
0x28ca   :  { %4289 = vrcp.f32 %v3269_v21 }
0x28d4   :  { %v4290_v38 = vpop.eup %4289 }
0x28d5   :  { %v3276_v41 = vmul.f32 %v4290_v38, %v3274_v40  ;;  %v3334_v56 = vmul.f32 %v4290_v38, %v3332_v28 }
0x28d7   :  { %v3277_v43 = vpack.c.bf16 %v3276_v41, %v3276_v41  ;;  %v3335_v27 = vsub.f32 1.0, %v3334_v56 }
0x28d9   :  { %4103 = vmatmul.mubr.msk.bf16.vlgmr.msra.gmra.mrb[60].mxu0 %vm151_vm1, %v3277_v43  ;;  %v3336_v45 = vmul.f32 %v3335_v27, %v3215_v16 }
0x28da   :  { %4115 = vmatpush3.bf16.msra.mxu0 %v5085_v57  ;;  %4118 = vmatprep.mubr.msk.bf16.mxu0 %vm4394_vm0, %v4393_v1 }
0x28db   :  { %4116 = vmatprep.subr.bf16.mxu0 %v4393_v1 }
0x28de   :  { %4117 = vmatpush3.bf16.msra.mxu0 %v5091_v59 }
0x28df   :  { %4130 = vmatprep.subr.bf16.mxu0 %v4393_v1 }
0x29ac   :  { %v3315_v44 = vpop.f32.mrb[60].mxu0 }
0x29ad   :  { %3322 = vrot.lane.b32.xlu1 %v3315_v44, %s4397_s13  ;;  %v4104_v46 = vpop.f32.mrb[61].mxu0 }
0x29ae   :  { %v3318_v42 = vpop.f32.mrb[62].mxu0 }
0x29af   :  { %v4105_v49 = vpop.f32.mrb[63].mxu0 }
0x2a1f   :  { %v3323_v50 = vpop.permute.xlu1 %3322 }
0x2a20   :  { %v3325_v51 = vadd.f32 %v3323_v50, %v3217_v52 }
0x2a22   :  { %4291 = vtanh.f32 %v3325_v51  ;;  %v3696_v51 = vld [vmem:[%s5417_s10 + $0x6] ss:$0 sm:$0xff] }
0x2a2c   :  { %v4292_v54 = vpop.eup %4291 }
0x2a2d   :  { %3338 = vrot.lane.b32.xlu1 %v4292_v54, %s4399_s16 }
0x2a9f   :  { %v3339_v53 = vpop.permute.xlu1 %3338 }
0x2aa0   :  { %v3341_v63 = vmul.f32 %v3339_v53, %v3334_v56 }
0x2aa2   :  { %v3342_v20 = vadd.f32 %v3341_v63, %v3336_v45 }
0x2aa4   :  { %v3343_v39 = vsel %vm5447_vm5, %v3342_v20, %v3215_v16 }
0x2aa5   :  { %3401 = vrot.lane.b32.xlu1 %v3343_v39, %s4399_s16  ;;  %v3346_v61 = vpack.c.bf16 %v3343_v39, %v3343_v39 }
0x2aa7   :  { %3348 = vrot.lane.b32.xlu0 %v3346_v61, %s4399_s16 }
0x2aa9   :  { %3459 = vperm.xlu1 %4150, %v3456_v0  }
0x2b19   :  { %v3349_v35 = vpop.permute.xlu0 %3348 }
0x2b1a   :  { %4111 = vmatmul.mubr.msk.bf16.vlgmr.msra.gmra.mrb[60].mxu1 %vm151_vm1, %v3349_v35 }
0x2b1b   :  { %4123 = vmatpush3.bf16.msra.mxu1 %v5241_v47  ;;  %4126 = vmatprep.mubr.msk.bf16.mxu1 %vm4394_vm0, %v4393_v1  ;;  %v3402_v47 = vpop.permute.xlu1 %3401 }
0x2b1c   :  { %4124 = vmatprep.subr.bf16.mxu1 %v4393_v1 }
0x2b1f   :  { %4125 = vmatpush3.bf16.msra.mxu1 %v5250_v17 }
0x2b28   :  { %v3460_v22 = vpop.permute.xlu1 %3459 }
0x2bed   :  { %v3387_v7 = vpop.f32.mrb[60].mxu1 }
0x2bee   :  { %v3393_v8 = vadd.f32 %v3387_v7, %v3345_v32  ;;  %v4112_v10 = vpop.f32.mrb[61].mxu1  ;;  %v3697_v7 = vld [vmem:[%s5417_s10 + $0x7] ss:$0 sm:$0xff] }
0x2bef   :  { %v3390_v11 = vpop.f32.mrb[62].mxu1 }
0x2bf0   :  { %v3739_v12 = vmul.f32 -1.442695, %v3393_v8  ;;  %v4113_v9 = vpop.f32.mrb[63].mxu1 }
0x2bf2   :  { %4293 = vpow2.f32 %v3739_v12 }
0x2bfc   :  { %v4294_v37 = vpop.eup %4293 }
0x2bfd   :  { %v3397_v13 = vadd.f32 1.0, %v4294_v37 }
0x2bff   :  { %4295 = vrcp.f32 %v3397_v13 }
0x2c09   :  { %v4296_v4 = vpop.eup %4295 }
0x2c0a   :  { %v3404_v18 = vmul.f32 %v4296_v4, %v3402_v47  ;;  %v3462_v29 = vmul.f32 %v4296_v4, %v3460_v22 }
0x2c0c   :  { %v3405_v19 = vpack.c.bf16 %v3404_v18, %v3404_v18  ;;  %v3463_v52 = vsub.f32 1.0, %v3462_v29 }
0x2c0e   :  { %4119 = vmatmul.mubr.msk.bf16.vlgmr.msra.gmra.mrb[64].mxu0 %vm151_vm1, %v3405_v19  ;;  %v3464_v31 = vmul.f32 %v3463_v52, %v3343_v39 }
0x2c0f   :  { %4131 = vmatpush3.bf16.msra.mxu0 %v5085_v57  ;;  %4134 = vmatprep.mubr.msk.bf16.mxu0 %vm4394_vm0, %v4393_v1  ;;  %v3688_v57 = vld [vmem:[%s5417_s10 + $0x5] ss:$0 sm:$0xff]  ;;  %vm5448_vm0 = vcmp.eq.s32.totalorder %v4745_v15, 1 }
0x2c10   :  { %4132 = vmatprep.subr.bf16.mxu0 %v4393_v1  ;;  %v2092_v6 = vadd.f32 %v3688_v57, %v5146_v62  ;;  %v2089_v60 = vadd.f32 %v3688_v57, %v5144_v36  ;;  %v2238_v38 = vadd.f32 %v3688_v57, %v5070_v26 }
0x2c12   :  { %v3695_v58 = vmul.f32 -1.442695, %v2092_v6  ;;  %v3694_v40 = vmul.f32 -1.442695, %v2089_v60  ;;  %v3704_v36 = vmul.f32 -1.442695, %v2238_v38 }
0x2c13   :  { %4133 = vmatpush3.bf16.msra.mxu0 %v5091_v59  ;;  %v2235_v59 = vadd.f32 %v3688_v57, %v5068_v33 }
0x2c15   :  { %v3703_v14 = vmul.f32 -1.442695, %v2235_v59 }
0x2ce1   :  { %v3443_v17 = vpop.f32.mrb[64].mxu0 }
0x2ce2   :  { %3450 = vrot.lane.b32.xlu0 %v3443_v17, %s4397_s13  ;;  %v4120_v23 = vpop.f32.mrb[65].mxu0 }
0x2ce3   :  { %v3446_v2 = vpop.f32.mrb[66].mxu0 }
0x2ce4   :  { %v4121_v24 = vpop.f32.mrb[67].mxu0 }
0x2d54   :  { %v3451_v25 = vpop.permute.xlu0 %3450 }
0x2d55   :  { %v3453_v16 = vadd.f32 %v3451_v25, %v3345_v32 }
0x2d57   :  { %4297 = vtanh.f32 %v3453_v16 }
0x2d58   :  { %4299 = vpow2.f32 %v3703_v14 }
0x2d59   :  { %4301 = vpow2.f32 %v3695_v58 }
0x2d5a   :  { %4303 = vpow2.f32 %v3694_v40 }
0x2d5b   :  { %4305 = vpow2.f32 %v3704_v36 }
0x2d61   :  { %v4298_v3 = vpop.eup %4297 }
0x2d62   :  { %3466 = vrot.lane.b32.xlu0 %v4298_v3, %s4399_s16  ;;  %v4300_v62 = vpop.eup %4299 }
0x2d63   :  { %v2247_v43 = vadd.f32 1.0, %v4300_v62  ;;  %v4302_v26 = vpop.eup %4301 }
0x2d64   :  { %v4304_v44 = vpop.eup %4303  ;;  %v2102_v15 = vadd.f32 1.0, %v4302_v26 }
0x2d65   :  { %4307 = vrcp.f32 %v2247_v43  ;;  %v2101_v46 = vadd.f32 1.0, %v4304_v44  ;;  %v4306_v42 = vpop.eup %4305 }
0x2d66   :  { %4309 = vrcp.f32 %v2102_v15  ;;  %v2248_v49 = vadd.f32 1.0, %v4306_v42 }
0x2d67   :  { %4311 = vrcp.f32 %v2101_v46 }
0x2d68   :  { %4313 = vrcp.f32 %v2248_v49 }
0x2d6f   :  { %v4308_v50 = vpop.eup %4307 }
0x2d70   :  { %v2253_v54 = vmul.f32 %v4308_v50, %v3696_v51  ;;  %v4310_v28 = vpop.eup %4309 }
0x2d71   :  { %v4312_v56 = vpop.eup %4311  ;;  %v2112_v53 = vmul.f32 %v4310_v28, %v3696_v51 }
0x2d72   :  { %v2255_v27 = vsel %vm151_vm1, %v2253_v54, 0.0  ;;  %v2111_v45 = vmul.f32 %v4312_v56, %v3696_v51  ;;  %v4314_v63 = vpop.eup %4313 }
0x2d73   :  { %v2117_v20 = vsel %vm2116_vm7, %v2112_v53, 0.0  ;;  %v2254_v61 = vmul.f32 %v4314_v63, %v3696_v51 }
0x2d75   :  { %v2258_v0 = vsel %vm2116_vm7, %v2254_v61, 0.0 }
0x2dd4   :  { %v3467_v30 = vpop.permute.xlu0 %3466 }
0x2dd5   :  { %v3469_v34 = vmul.f32 %v3467_v30, %v3462_v29 }
0x2dd7   :  { %v3470_v21 = vadd.f32 %v3469_v34, %v3464_v31 }
0x2dd9   :  { %v5310_v41 = vsel %vm5448_vm0, %v3470_v21, %v3343_v39  ;;  %v2113_v39 = vsel %vm151_vm1, %v2111_v45, 0.0 }
0x2dda   :  { %3529 = vrot.lane.b32.xlu0 %v5310_v41, %s4399_s16  ;;  %v3474_v33 = vpack.c.bf16 %v5310_v41, %v5310_v41 }
0x2ddc   :  { %3476 = vrot.lane.b32.xlu1 %v3474_v33, %s4399_s16  ;;  %v4368_v33 = vld [vmem:[%s5407_s0] sm:$0x3] }
0x2ddd   :  { %v5334_v36 = vadd.s32 4294967295, %v4368_v33 }
0x2ddf   :  { %vm2318_vm9 = vcmp.gt.s32.totalorder %v5334_v36, 0  ;;  %vm2319_vm11 = vcmp.gt.s32.totalorder %v5334_v36, 1  ;;  %vm2320_vm14 = vcmp.gt.s32.totalorder %v5334_v36, 2  ;;  %vm2321_vm15 = vcmp.gt.s32.totalorder %v5334_v36, 3 }
0x2de0   :  { %v5344_v53 = vsel %vm2318_vm9, 1.0, %v4393_v1  ;;  %v5347_v63 = vsel %vm2319_vm11, 1.0, %v4393_v1  ;;  %vm2322_vm4 = vcmp.gt.s32.totalorder %v5334_v36, 4  ;;  %vm2323_vm3 = vcmp.gt.s32.totalorder %v5334_v36, 5 }
0x2de1   :  { %vm2324_vm6 = vcmp.gt.s32.totalorder %v5334_v36, 6 }
0x2df9   :  { %2256 = vadd.xlane.f32.xlu0 %v2255_v27 }
0x2dfd   :  { %2118 = vadd.xlane.f32.xlu0 %v2117_v20 }
0x2e00   :  { %2114 = vadd.xlane.f32.xlu1 %v2113_v39 }
0x2e04   :  { %2259 = vadd.xlane.f32.xlu1 %v2258_v0  ;;  %v2432_v0 = vsel %vm1620_vm12, %v5347_v63, 0.0 }
0x2e4c   :  { %v5323_v32 = vpop.permute.xlu0 %3529 }
0x2e4e   :  { %v3477_v35 = vpop.permute.xlu1 %3476 }
0x2e4f   :  { %4127 = vmatmul.mubr.msk.bf16.vlgmr.msra.gmra.mrb[64].mxu1 %vm151_vm1, %v3477_v35 }
0x2e86   :  { %v2257_v8 = vpop.xlane.xlu0 %2256 }
0x2e87   :  { %v2261_v10 = vadd.f32 %v3697_v7, %v2257_v8 }
0x2e89   :  { %v3705_v11 = vmul.f32 -1.442695, %v2261_v10 }
0x2e8a   :  { %v2119_v12 = vpop.xlane.xlu0 %2118 }
0x2e8b   :  { %4315 = vpow2.f32 %v3705_v11  ;;  %v2125_v9 = vadd.f32 %v3697_v7, %v2119_v12  ;;  %v3710_v11 = vsel %vm2320_vm14, 1.0, %v4393_v1 }
0x2e8d   :  { %v3699_v37 = vmul.f32 -1.442695, %v2125_v9  ;;  %v2115_v13 = vpop.xlane.xlu1 %2114 }
0x2e8e   :  { %v2124_v4 = vadd.f32 %v3697_v7, %v2115_v13 }
0x2e8f   :  { %4317 = vpow2.f32 %v3699_v37 }
0x2e90   :  { %v3698_v47 = vmul.f32 -1.442695, %v2124_v4 }
0x2e91   :  { %v2260_v18 = vpop.xlane.xlu1 %2259 }
0x2e92   :  { %4319 = vpow2.f32 %v3698_v47  ;;  %v2262_v19 = vadd.f32 %v3697_v7, %v2260_v18  ;;  %v2434_v47 = vsel %vm1620_vm12, %v3710_v11, 0.0 }
0x2e94   :  { %v3706_v17 = vmul.f32 -1.442695, %v2262_v19  ;;  %v3711_v19 = vsel %vm2321_vm15, 1.0, %v4393_v1 }
0x2e95   :  { %v4316_v23 = vpop.eup %4315 }
0x2e96   :  { %v2269_v2 = vadd.f32 1.0, %v4316_v23  ;;  %4321 = vpow2.f32 %v3706_v17 }
0x2e98   :  { %4323 = vrcp.f32 %v2269_v2 }
0x2e99   :  { %v4318_v24 = vpop.eup %4317 }
0x2e9a   :  { %v2133_v25 = vadd.f32 1.0, %v4318_v24  ;;  %v3712_v24 = vsel %vm2322_vm4, 1.0, %v4393_v1 }
0x2e9c   :  { %v4320_v16 = vpop.eup %4319  ;;  %4325 = vrcp.f32 %v2133_v25 }
0x2e9d   :  { %v2132_v3 = vadd.f32 1.0, %v4320_v16 }
0x2e9f   :  { %4327 = vrcp.f32 %v2132_v3  ;;  %v2436_v3 = vsel %vm1620_vm12, %v3711_v19, 0.0 }
0x2ea0   :  { %v4322_v57 = vpop.eup %4321 }
0x2ea1   :  { %v2270_v22 = vadd.f32 1.0, %v4322_v57 }
0x2ea2   :  { %v4324_v29 = vpop.eup %4323 }
0x2ea3   :  { %v2277_v59 = vcombine.high %v4324_v29, %v4324_v29  ;;  %v2284_v52 = vrot.slane %v4324_v29, %v4586_v48  ;;  %4329 = vrcp.f32 %v2270_v22 }
0x2ea5   :  { %v2291_v14 = vrot.slane %v2277_v59, %v4586_v48  ;;  %v2292_v6 = vcombine.high %v2284_v52, %v2284_v52  ;;  %v2367_v30 = vsub.f32 1.0, %v2284_v52 }
0x2ea6   :  { %v4326_v60 = vpop.eup %4325 }
0x2ea7   :  { %v2368_v31 = vsub.f32 1.0, %v2292_v6  ;;  %v2164_v34 = vrot.slane %v4326_v60, %v4586_v48  ;;  %4331 = vlog2.f32 %v2367_v30  ;;  %v2157_v58 = vcombine.high %v4326_v60, %v4326_v60 }
0x2ea8   :  { %v2293_v40 = vcombine.high %v2291_v14, %v2291_v14  ;;  %v2369_v42 = vsub.f32 1.0, %v2291_v14 }
0x2ea9   :  { %v4328_v21 = vpop.eup %4327  ;;  %4333 = vlog2.f32 %v2368_v31  ;;  %v2172_v38 = vcombine.high %v2164_v34, %v2164_v34  ;;  %v2171_v26 = vrot.slane %v2157_v58, %v4586_v48 }
0x2eaa   :  { %v2140_v62 = vcombine.high %v4328_v21, %v4328_v21  ;;  %v2147_v43 = vrot.slane %v4328_v21, %v4586_v48  ;;  %4335 = vlog2.f32 %v2164_v34  ;;  %v2370_v49 = vsub.f32 1.0, %v2293_v40 }
0x2eab   :  { %4337 = vlog2.f32 %v2172_v38 }
0x2eac   :  { %v2154_v44 = vrot.slane %v2140_v62, %v4586_v48  ;;  %v2155_v15 = vcombine.high %v2147_v43, %v2147_v43  ;;  %4339 = vlog2.f32 %v2147_v43 }
0x2ead   :  { %v4330_v46 = vpop.eup %4329  ;;  %4341 = vlog2.f32 %v2171_v26 }
0x2eae   :  { %4343 = vlog2.f32 %v2155_v15  ;;  %v2301_v50 = vrot.slane %v4330_v46, %v4586_v48  ;;  %v2156_v51 = vcombine.high %v2154_v44, %v2154_v44  ;;  %v2294_v54 = vcombine.high %v4330_v46, %v4330_v46 }
0x2eaf   :  { %4345 = vlog2.f32 %v2154_v44 }
0x2eb0   :  { %v2308_v28 = vrot.slane %v2294_v54, %v4586_v48  ;;  %v2309_v56 = vcombine.high %v2301_v50, %v2301_v50  ;;  %4347 = vlog2.f32 %v2156_v51  ;;  %v2371_v27 = vsub.f32 1.0, %v2301_v50 }
0x2eb1   :  { %4349 = vlog2.f32 %v2369_v42  ;;  %v4332_v45 = vpop.eup %4331  ;;  %v2431_v48 = vsel %vm1620_vm12, %v5344_v53, 0.0 }
0x2eb2   :  { %v2372_v20 = vsub.f32 1.0, %v2309_v56  ;;  %v2373_v39 = vsub.f32 1.0, %v2308_v28  ;;  %4351 = vlog2.f32 %v2370_v49  ;;  %v2375_v12 = vmul.f32 0.6931472, %v4332_v45 }
0x2eb3   :  { %v4334_v61 = vpop.eup %4333  ;;  %4353 = vlog2.f32 %v2371_v27  ;;  %v2433_v9 = vadd.f32 %v2432_v0, %v2431_v48 }
0x2eb4   :  { %v4336_v35 = vpop.eup %4335  ;;  %4355 = vlog2.f32 %v2372_v20  ;;  %v2377_v4 = vmul.f32 0.6931472, %v4334_v61  ;;  %v2388_v59 = vmax.f32 %v2375_v12, -100.0 }
0x2eb5   :  { %v4338_v7 = vpop.eup %4337  ;;  %v2348_v8 = vmul.f32 0.6931472, %v4336_v35  ;;  %4357 = vlog2.f32 %v2373_v39  ;;  %v2435_v52 = vadd.f32 %v2434_v47, %v2433_v9 }
0x2eb6   :  { %v4340_v10 = vpop.eup %4339  ;;  %v2350_v17 = vmul.f32 0.6931472, %v4338_v7  ;;  %v2389_v31 = vmax.f32 %v2377_v4, -100.0 }
0x2eb7   :  { %v4342_v37 = vpop.eup %4341  ;;  %v2340_v13 = vmul.f32 0.6931472, %v4340_v10  ;;  %v2357_v23 = vmax.f32 %v2348_v8, -100.0 }
0x2eb8   :  { %v4344_v18 = vpop.eup %4343  ;;  %v2352_v29 = vmul.f32 0.6931472, %v4342_v37  ;;  %v2358_v21 = vmax.f32 %v2350_v17, -100.0  ;;  %v2437_v17 = vadd.f32 %v2436_v3, %v2435_v52 }
0x2eb9   :  { %v4346_v2 = vpop.eup %4345  ;;  %v2342_v25 = vmul.f32 0.6931472, %v4344_v18  ;;  %v2353_v16 = vmax.f32 %v2340_v13, -100.0  ;;  %v2364_v38 = vsub.f32 0.0, %v2357_v23  ;;  %v3713_v18 = vsel %vm2323_vm3, 1.0, %v4393_v1 }
0x2eba   :  { %v4348_v57 = vpop.eup %4347  ;;  %v2344_v22 = vmul.f32 0.6931472, %v4346_v2  ;;  %v2359_v46 = vmax.f32 %v2352_v29, -100.0  ;;  %v2365_v48 = vsub.f32 0.0, %v2358_v21  ;;  %v2440_v3 = vsel %vm1620_vm12, %v3713_v18, 0.0 }
0x2ebb   :  { %v4350_v14 = vpop.eup %4349  ;;  %v2346_v6 = vmul.f32 0.6931472, %v4348_v57  ;;  %v2354_v30 = vmax.f32 %v2342_v25, -100.0  ;;  %v2360_v60 = vsub.f32 0.0, %v2353_v16  ;;  %v2438_v25 = vsel %vm1620_vm12, %v3712_v24, 0.0 }
0x2ebc   :  { %v4352_v34 = vpop.eup %4351  ;;  %v2355_v58 = vmax.f32 %v2344_v22, -100.0  ;;  %v2379_v40 = vmul.f32 0.6931472, %v4350_v14  ;;  %v2366_v8 = vsub.f32 0.0, %v2359_v46  ;;  %v2439_v29 = vadd.f32 %v2438_v25, %v2437_v17 }
0x2ebd   :  { %v4354_v33 = vpop.eup %4353  ;;  %v2356_v62 = vmax.f32 %v2346_v6, -100.0  ;;  %v2361_v43 = vsub.f32 0.0, %v2354_v30  ;;  %v2381_v26 = vmul.f32 0.6931472, %v4352_v34  ;;  %v2395_v44 = vsub.f32 %v2360_v60, %v2388_v59  ;;  %v3584_v34 = vld [vmem:[#allocation5 + $0xe] sm:$0x3] }
0x2ebe   :  { %v4356_v15 = vpop.eup %4355  ;;  %v2362_v42 = vsub.f32 0.0, %v2355_v58  ;;  %v2383_v49 = vmul.f32 0.6931472, %v4354_v33  ;;  %v2390_v50 = vmax.f32 %v2379_v40, -100.0  ;;  %v3473_v58 = vld [vmem:[#allocation4 + $0xe] sm:$0x3] }
0x2ebf   :  { %v4358_v51 = vpop.eup %4357  ;;  %v2363_v54 = vsub.f32 0.0, %v2356_v62  ;;  %v2385_v28 = vmul.f32 0.6931472, %v4356_v15  ;;  %v2391_v56 = vmax.f32 %v2381_v26, -100.0  ;;  %v2396_v27 = vsub.f32 %v2361_v43, %v2389_v31 }
0x2ec0   :  { %v2387_v45 = vmul.f32 0.6931472, %v4358_v51  ;;  %v2392_v20 = vmax.f32 %v2383_v49, -100.0  ;;  %v2397_v39 = vsub.f32 %v2362_v42, %v2390_v50  ;;  %v2402_v61 = vmul.f32 %v5344_v53, %v2395_v44 }
0x2ec1   :  { %v2393_v0 = vmax.f32 %v2385_v28, -100.0  ;;  %v2398_v35 = vsub.f32 %v2363_v54, %v2391_v56  ;;  %v2403_v7 = vmul.f32 %v5347_v63, %v2396_v27 }
0x2ec2   :  { %v2394_v10 = vmax.f32 %v2387_v45, -100.0  ;;  %v2399_v12 = vsub.f32 %v2364_v38, %v2392_v20  ;;  %v2404_v9 = vmul.f32 %v3710_v11, %v2397_v39  ;;  %v2409_v4 = vsel %vm1620_vm12, %v2402_v61, 0.0 }
0x2ec3   :  { %v2400_v37 = vsub.f32 %v2365_v48, %v2393_v0  ;;  %v2405_v13 = vmul.f32 %v3711_v19, %v2398_v35  ;;  %v2410_v47 = vsel %vm1620_vm12, %v2403_v7, 0.0  ;;  %v3714_v11 = vsel %vm2324_vm6, 1.0, %v4393_v1 }
0x2ec4   :  { %v2411_v53 = vadd.f32 %v2410_v47, %v2409_v4  ;;  %v2401_v23 = vsub.f32 %v2366_v8, %v2394_v10  ;;  %v2406_v2 = vmul.f32 %v3712_v24, %v2399_v12  ;;  %v2412_v63 = vsel %vm1620_vm12, %v2404_v9, 0.0 }
0x2ec5   :  { %v2407_v16 = vmul.f32 %v3713_v18, %v2400_v37  ;;  %v2414_v57 = vsel %vm1620_vm12, %v2405_v13, 0.0  ;;  %v2441_v24 = vadd.f32 %v2440_v3, %v2439_v29  ;;  %v2442_v1 = vsel %vm1620_vm12, %v3714_v11, 0.0 }
0x2ec6   :  { %v2413_v19 = vadd.f32 %v2412_v63, %v2411_v53  ;;  %v2408_v59 = vmul.f32 %v3714_v11, %v2401_v23  ;;  %v2416_v14 = vsel %vm1620_vm12, %v2406_v2, 0.0 }
0x2ec7   :  { %v2418_v6 = vsel %vm1620_vm12, %v2407_v16, 0.0  ;;  %v2443_v31 = vadd.f32 %v2442_v1, %v2441_v24 }
0x2ec8   :  { %v2415_v22 = vadd.f32 %v2414_v57, %v2413_v19  ;;  %v2420_v60 = vsel %vm1620_vm12, %v2408_v59, 0.0 }
0x2eca   :  { %v2417_v52 = vadd.f32 %v2416_v14, %v2415_v22 }
0x2ecc   :  { %v2419_v30 = vadd.f32 %v2418_v6, %v2417_v52 }
0x2ece   :  { %v2421_v36 = vadd.f32 %v2420_v60, %v2419_v30 }
0x2ed0   :  { %2422 = vadd.xlane.f32.xlu1 %v2421_v36 }
0x2ed4   :  { %2444 = vadd.xlane.f32.xlu1 %v2443_v31 }
0x2ee5   :  { %3587 = vperm.xlu1 %4150, %v3584_v34  }
0x2f22   :  { %v3515_v21 = vpop.f32.mrb[64].mxu1 }
0x2f23   :  { %v3521_v38 = vadd.f32 %v3515_v21, %v3473_v58  ;;  %v4128_v40 = vpop.f32.mrb[65].mxu1 }
0x2f24   :  { %v3518_v33 = vpop.f32.mrb[66].mxu1 }
0x2f25   :  { %v3742_v62 = vmul.f32 -1.442695, %v3521_v38  ;;  %v4129_v43 = vpop.f32.mrb[67].mxu1 }
0x2f27   :  { %4359 = vpow2.f32 %v3742_v62 }
0x2f31   :  { %v4360_v26 = vpop.eup %4359 }
0x2f32   :  { %v3525_v44 = vadd.f32 1.0, %v4360_v26 }
0x2f34   :  { %4361 = vrcp.f32 %v3525_v44 }
0x2f3e   :  { %v4362_v15 = vpop.eup %4361 }
0x2f3f   :  { %v3532_v46 = vmul.f32 %v4362_v15, %v5323_v32  ;;  %v2454_v32 = vand.u32 127, %v97_v5 }
0x2f41   :  { %v3533_v42 = vpack.c.bf16 %v3532_v46, %v3532_v46  ;;  %vm2455_vm12 = vcmp.eq.s32.totalorder %v2454_v32, 0 }
0x2f43   :  { %4135 = vmatmul.mubr.msk.bf16.vlgmr.msra.gmra.mrb[68].mxu0 %vm151_vm1, %v3533_v42  ;;  %vm2456_vm1 = vcmp.eq.s32.totalorder %v2454_v32, 1 }
0x2f5d   :  { %v2423_v49 = vpop.xlane.xlu1 %2422 }
0x2f5e   :  { %v2424_v50 = vrot.slane %v2423_v49, 4 }
0x2f60   :  { %v2425_v51 = vadd.f32 %v2424_v50, %v2423_v49 }
0x2f61   :  { %v2445_v54 = vpop.xlane.xlu1 %2444 }
0x2f62   :  { %v2426_v28 = vrot.slane %v2425_v51, 2  ;;  %v2446_v56 = vrot.slane %v2445_v54, 4 }
0x2f64   :  { %v2447_v27 = vadd.f32 %v2446_v56, %v2445_v54  ;;  %v2427_v45 = vadd.f32 %v2426_v28, %v2425_v51 }
0x2f65   :  { %v3588_v53 = vpop.permute.xlu1 %3587 }
0x2f66   :  { %v2448_v20 = vrot.slane %v2447_v27, 2  ;;  %v2428_v39 = vrot.slane %v2427_v45, 1  ;;  %v3590_v17 = vmul.f32 %v4362_v15, %v3588_v53 }
0x2f68   :  { %v2429_v61 = vadd.f32 %v2428_v39, %v2427_v45  ;;  %v2449_v48 = vadd.f32 %v2448_v20, %v2447_v27  ;;  %v3591_v23 = vsub.f32 1.0, %v3590_v17 }
0x2f6a   :  { %4138 = vpush %v2429_v61  ;;  %v2450_v0 = vrot.slane %v2449_v48, 1  ;;  %v3592_v63 = vmul.f32 %v3591_v23, %v5310_v41 }
0x2f6c   :  { %v2451_v35 = vadd.f32 %v2450_v0, %v2449_v48 }
0x2f6e   :  { %4140 = vpush %v2451_v35 }
0x2f9b   :  { %s4139_s0 = spop %4138 }
0x2f9c   :  { %v2459_v8 = vstv %s4139_s0 }
0x2f9f   :  { %s4141_s1 = spop %4140 }
0x2fa0   :  { %v2457_v7 = vstv %s4141_s1 }
0x2fa1   :  { %v2458_v10 = vsel %vm2456_vm1, %v2457_v7, 0.0 }
0x2fa2   :  { %v2460_v12 = vsel %vm2455_vm12, %v2459_v8, %v2458_v10 }
0x2fa3   :  { %2461 = vst [vmem:[%s5419_s12] sm:$0x1] %v2460_v12  ;;  %s4400_s12 = smov [#allocation6]  }
0x3016   :  { %v3571_v9 = vpop.f32.mrb[68].mxu0 }
0x3017   :  { %3578 = vrot.lane.b32.xlu0 %v3571_v9, %s4397_s13  ;;  %v4136_v37 = vpop.f32.mrb[69].mxu0  ;;  %s3611_s13 = sshll.u32 %s4400_s12, 4  ;;  %s3612_s13 = int_to_ptr.vmem [resolvable:$true] %s3611_s13 }
0x3018   :  { %v3574_v13 = vpop.f32.mrb[70].mxu0  ;;  %s4369_s30 = scalar_lea.vmem %s3612_s13, 32  ;;  %p4374_p1 = scmp.lt.s32.totalorder %s3612_s13, %s3612_s13 }
0x3019   :  { %v4137_v4 = vpop.f32.mrb[71].mxu0  ;;  %p4370_p0 = scmp.ne.s32.totalorder %s3612_s13, %s4369_s30  ;;  %p4375_p2 = scmp.lt.s32.totalorder %s4369_s30, %s4369_s30 }
0x301b   :  { %p4376_p3 = por %p4375_p2, %p4374_p1 }
0x301d   :  { %p4377_p4 = pnand %p4376_p3, %p4370_p0 }
0x3089   :  { %v3579_v47 = vpop.permute.xlu0 %3578 }
0x308a   :  { %v3581_v5 = vadd.f32 %v3579_v47, %v3473_v58 }
0x308c   :  { %4363 = vtanh.f32 %v3581_v5 }
0x3096   :  { %v4364_v18 = vpop.eup %4363 }
0x3097   :  { %3594 = vrot.lane.b32.xlu0 %v4364_v18, %s4399_s16 }
0x3109   :  { %v3595_v2 = vpop.permute.xlu0 %3594 }
0x310a   :  { %v3597_v25 = vmul.f32 %v3595_v2, %v3590_v17 }
0x310c   :  { %v3598_v11 = vadd.f32 %v3597_v25, %v3592_v63 }
0x310e   :  { %v3599_v19 = vsel %vm5449_vm8, %v3598_v11, %v5310_v41 }
0x310f   :  { %3601 = vrot.lane.b32.xlu0 %v3599_v19, %s4399_s16 }
0x3181   :  { %v3602_v16 = vpop.permute.xlu0 %3601 }
0x3182   :  { %3604 = vst.msk [vmem:[#allocation6] sm:$0x3] %vm5450_vm10, %v3602_v16 }
0x3183   :  { %4380 = shalt.err (!%p4377_p4)
}
0x3184   :  { %s4381_s15 = scalar_lea.hbm %s5418_s11, 32 }
0x3185   :  { %p4382_p5 = scmp.ne.s32.totalorder %s5418_s11, %s4381_s15  ;;  %p4385_p6 = scmp.lt.u32.totalorder %s4381_s15, %s5418_s11 }
0x3187   :  { %p4387_p7 = pnand %p4385_p6, %p4382_p5 }
0x3189   :  { %4390 = shalt.err (!%p4387_p7)
}
0x318a   :  { %3614 = dma.vmem_to_hbm [thread:$0]  %s3612_s13, 32, %s5418_s11, [#allocation7]  }
0x318b   :  { %4391 = dma.done.wait [#allocation7], 32  }
0x318c   :  { %4392 = vsyncadd [#allocation7], 4294967264 }
0x318d   :  { %3622 = vsyncpa [#allocation7], 1 }

</bundles_post_ra>
